<compile_context>
chip_gen: v7x
topology: tpu7x:2x2x1
jax: 0.10.0
libtpu: 0.0.40
codegen_flags: <defaults>
</compile_context>

<pallas_src>
import functools

import jax
import jax.numpy as jnp
from jax.experimental import pallas as pl
from jax.experimental.pallas import tpu as pltpu

_LANE = 128
_SUBLANE = 8


def _round_up(x, m):
    return (x + m - 1) // m * m


def _pad_to(a, shape):
    widths = [(0, t - s) for s, t in zip(a.shape, shape)]
    if all(w == (0, 0) for w in widths):
        return a
    return jnp.pad(a, widths)


def _identity_block_kernel(x_ref, w1_ref, s1_ref, b1_ref,
                           w2_ref, s2_ref, b2_ref,
                           w3_ref, s3_ref, b3_ref,
                           o_ref, pad_ref, *cols,
                           H, W, K, P, use_im2col):
    # One grid step == one batch element.  x_ref: (1, H, W, Cp) f32.
    Cp = x_ref.shape[-1]
    F1p = w1_ref.shape[-1]
    F2p = w2_ref.shape[-1]
    F3p = w3_ref.shape[-1]

    # --- conv1: 1x1 conv == channel matmul, BN-affine + ReLU -----------------
    # Short-lived bf16 view of x; x_ref is re-read at the residual add so the
    # f32 activation is not kept live across the conv2/conv3 matmuls.
    xb = x_ref[...].reshape(H * W, Cp).astype(jnp.bfloat16)
    h1 = jnp.dot(xb, w1_ref[...], preferred_element_type=jnp.float32)
    h1 = jnp.maximum(h1 * s1_ref[...] + b1_ref[...], 0.0)

    # --- stage h1 into the padded VMEM scratch (zero only the halo strips) ---
    # (Not zero-once: with a "parallel" batch axis on 2-TC chips, only core 0
    #  sees program_id 0, and scratch is per-core / uninitialized.)
    if P > 0:
        zrow = jnp.zeros((P, W + 2 * P, F1p), jnp.bfloat16)
        zcol = jnp.zeros((H, P, F1p), jnp.bfloat16)
        pad_ref[pl.ds(0, P), pl.ds(0, W + 2 * P), :] = zrow
        pad_ref[pl.ds(P + H, P), pl.ds(0, W + 2 * P), :] = zrow
        pad_ref[pl.ds(P, H), pl.ds(0, P), :] = zcol
        pad_ref[pl.ds(P, H), pl.ds(P + W, P), :] = zcol
    pad_ref[pl.ds(P, H), pl.ds(P, W), :] = (
        h1.astype(jnp.bfloat16).reshape(H, W, F1p))

    # --- conv2: KxK conv ------------------------------------------------------
    if use_im2col:
        # Deep contraction (K*K*F1p) matmul -> keeps v6e/v7x 256-deep MXUs full.
        # Each tap is copied as a 3-D window slice (no per-tap relayout); the
        # single reshape happens once, when the columns feed the matmul.
        cols_ref = cols[0]
        for dy in range(K):
            for dx in range(K):
                cols_ref[:, :, pl.ds((dy * K + dx) * F1p, F1p)] = (
                    pad_ref[pl.ds(dy, H), pl.ds(dx, W), :])
        h2 = jnp.dot(cols_ref[...].reshape(H * W, K * K * F1p), w2_ref[...],
                     preferred_element_type=jnp.float32)
    else:
        # v5e: MXU is 128-deep, so K*K accumulated tap matmuls are already at
        # full MXU efficiency; skip the im2col store pass and its scratch.
        h2 = jnp.zeros((H * W, F2p), jnp.float32)
        for dy in range(K):
            for dx in range(K):
                win = pad_ref[pl.ds(dy, H), pl.ds(dx, W), :].reshape(H * W, F1p)
                h2 = h2 + jnp.dot(
                    win, w2_ref[pl.ds((dy * K + dx) * F1p, F1p), :],
                    preferred_element_type=jnp.float32)
    h2 = jnp.maximum(h2 * s2_ref[...] + b2_ref[...], 0.0)

    # --- conv3: 1x1 conv + BN-affine (no ReLU yet) ----------------------------
    h3 = jnp.dot(h2.astype(jnp.bfloat16), w3_ref[...],
                 preferred_element_type=jnp.float32)
    h3 = h3 * s3_ref[...] + b3_ref[...]

    # --- residual add (f32, x_ref re-read) + final ReLU ------------------------
    o_ref[...] = jnp.maximum(h3.reshape(1, H, W, F3p) + x_ref[...], 0.0)


def prepare_params(params, *, kernel_size):
    """Pad channel dims to lane (128) multiples; weights to bf16, BN affine f32."""
    w1, s1, b1, w2, s2, b2, w3, s3, b3 = params
    K = kernel_size
    C, F1 = w1.shape
    F2 = w2.shape[3]
    F3 = w3.shape[1]
    Cp, F1p, F2p, F3p = (_round_up(c, _LANE) for c in (C, F1, F2, F3))
    w1p = _pad_to(w1, (Cp, F1p)).astype(jnp.bfloat16)
    w2p = _pad_to(w2, (K, K, F1p, F2p)).reshape(K * K * F1p, F2p).astype(jnp.bfloat16)
    w3p = _pad_to(w3, (F2p, F3p)).astype(jnp.bfloat16)
    s1p, b1p = _pad_to(s1, (1, F1p)), _pad_to(b1, (1, F1p))
    s2p, b2p = _pad_to(s2, (1, F2p)), _pad_to(b2, (1, F2p))
    s3p, b3p = _pad_to(s3, (1, F3p)), _pad_to(b3, (1, F3p))
    return (w1p, s1p, b1p, w2p, s2p, b2p, w3p, s3p, b3p)


def _default_conv2_strategy():
    # v5e MXU is 128-deep -> accumulated tap matmuls; v6e/v7x are 256-deep ->
    # keep the deep-contraction im2col matmul.
    try:
        kind = jax.devices()[0].device_kind.lower()
    except Exception:
        return "im2col"
    if ("v5 lite" in kind) or ("v5e" in kind) or ("v5litepod" in kind):
        return "taps"
    return "im2col"


def identity_block_nhwc(x_nhwc, padded_params, *, kernel_size,
                        conv2_strategy=None):
    """Fused IdentityBlock on a lane-padded NHWC activation.

    x_nhwc: (N, H, W, Cp) float32 with Cp a multiple of 128 (zero-padded).
    Returns (N, H, W, F3p) float32 with the same lane padding, so consecutive
    blocks chain with no NCHW<->NHWC transposes or pad/slice HBM passes.
    """
    w1p, s1p, b1p, w2p, s2p, b2p, w3p, s3p, b3p = padded_params
    N, H, W, Cp = x_nhwc.shape
    F1p = w1p.shape[1]
    F2p = w2p.shape[1]
    F3p = w3p.shape[1]
    K = kernel_size
    P = K // 2  # autopad; TODO(synk): even kernel_size not supported (differs from nn.Conv2d)
    assert F3p == Cp, "residual add requires filters3 == in_channel"

    if conv2_strategy is None:
        conv2_strategy = _default_conv2_strategy()
    use_im2col = (conv2_strategy == "im2col")

    Wpad = _round_up(W + 2 * P, _SUBLANE)

    kernel = functools.partial(_identity_block_kernel, H=H, W=W, K=K, P=P,
                               use_im2col=use_im2col)

    def rep(shape):
        # Grid-invariant operand: single-buffer it (index never changes, so
        # default double-buffering would only duplicate it in VMEM).
        return pl.BlockSpec(shape, lambda n: (0,) * len(shape),
                            pipeline_mode=pl.Buffered(1))

    scratch_shapes = [pltpu.VMEM((H + 2 * P, Wpad, F1p), jnp.bfloat16)]
    if use_im2col:
        scratch_shapes.append(pltpu.VMEM((H, W, K * K * F1p), jnp.bfloat16))

    # VMEM footprint: double-buffered activation blocks + single-buffered
    # weights + scratch; clamp the scoped limit under v7x's 64 MiB physical.
    act_bytes = 2 * (H * W * Cp * 4 + H * W * F3p * 4)
    weight_bytes = ((w1p.size + w2p.size + w3p.size) * 2
                    + (s1p.size + b1p.size + s2p.size + b2p.size
                       + s3p.size + b3p.size) * 4)
    scratch_bytes = (H + 2 * P) * Wpad * F1p * 2
    if use_im2col:
        scratch_bytes += H * W * K * K * F1p * 2
    footprint = act_bytes + weight_bytes + scratch_bytes
    vmem_limit = int(min(56 * 2 ** 20, max(2 * footprint, 16 * 2 ** 20)))

    flops = 2 * N * H * W * (Cp * F1p + K * K * F1p * F2p + F2p * F3p)
    bytes_accessed = int(x_nhwc.size * 4 + N * H * W * F3p * 4 + weight_bytes)

    return pl.pallas_call(
        kernel,
        out_shape=jax.ShapeDtypeStruct((N, H, W, F3p), jnp.float32),
        grid_spec=pltpu.PrefetchScalarGridSpec(
            num_scalar_prefetch=0,
            grid=(N,),
            in_specs=[
                pl.BlockSpec((1, H, W, Cp), lambda n: (n, 0, 0, 0)),    # x
                rep((Cp, F1p)), rep((1, F1p)), rep((1, F1p)),           # conv1/bn1
                rep((K * K * F1p, F2p)), rep((1, F2p)), rep((1, F2p)),  # conv2/bn2
                rep((F2p, F3p)), rep((1, F3p)), rep((1, F3p)),          # conv3/bn3
            ],
            out_specs=pl.BlockSpec((1, H, W, F3p), lambda n: (n, 0, 0, 0)),
            scratch_shapes=scratch_shapes),
        compiler_params=pltpu.CompilerParams(
            dimension_semantics=("parallel",),
            vmem_limit_bytes=vmem_limit),
        cost_estimate=pl.CostEstimate(
            flops=flops, transcendentals=0, bytes_accessed=bytes_accessed),
    )(x_nhwc, w1p, s1p, b1p, w2p, s2p, b2p, w3p, s3p, b3p)


def identity_block(x_nchw, params, *, kernel_size, conv2_strategy=None):
    """PyTorch-interface wrapper: (N,C,H,W) f32 in / (N,C,H,W) f32 out.

    NOTE: the NCHW<->NHWC transposes + channel pad/slice here cost extra HBM
    passes; when chaining blocks, keep activations NHWC / lane-padded and call
    identity_block_nhwc directly.
    """
    N, C, H, W = x_nchw.shape
    F3 = params[6].shape[1]
    assert F3 == C, "residual add requires filters3 == in_channel"
    padded = prepare_params(params, kernel_size=kernel_size)
    Cp = padded[0].shape[0]
    x_nhwc = _pad_to(jnp.transpose(x_nchw, (0, 2, 3, 1)).astype(jnp.float32),
                     (N, H, W, Cp))
    out = identity_block_nhwc(x_nhwc, padded, kernel_size=kernel_size,
                              conv2_strategy=conv2_strategy)
    return jnp.transpose(out[..., :C], (0, 3, 1, 2))


def _fold_bn(gamma, beta, mean, var, eps=1e-5):
    scale = gamma / jnp.sqrt(var + eps)
    bias = beta - mean * scale
    return scale[None, :], bias[None, :]


def _make_params(key, in_channel, kernel_size, filters):
    f1, f2, f3 = filters
    ks = jax.random.split(key, 15)
    # Conv weights (PyTorch layout is (out, in, kH, kW)); stored here already
    # transposed into the kernel's matmul form.
    w1 = 0.1 * jax.random.normal(ks[0], (in_channel, f1), jnp.float32)           # (Cin, F1)
    w2 = 0.1 * jax.random.normal(ks[1], (kernel_size, kernel_size, f1, f2),
                                 jnp.float32)                                    # (kH,kW,F1,F2)
    w3 = 0.1 * jax.random.normal(ks[2], (f2, f3), jnp.float32)                   # (F2, F3)

    def bn(i, c):
        k0, k1, k2, k3 = ks[3 + 4 * i: 7 + 4 * i]
        gamma = 1.0 + 0.1 * jax.random.normal(k0, (c,), jnp.float32)
        beta = 0.1 * jax.random.normal(k1, (c,), jnp.float32)
        mean = 0.1 * jax.random.normal(k2, (c,), jnp.float32)
        var = jnp.abs(1.0 + 0.1 * jax.random.normal(k3, (c,), jnp.float32))
        return _fold_bn(gamma, beta, mean, var)

    s1, b1 = bn(0, f1)
    s2, b2 = bn(1, f2)
    s3, b3 = bn(2, f3)
    return (w1, s1, b1, w2, s2, b2, w3, s3, b3)


def _reference(x_nchw, params, kernel_size):
    """Pure-JAX f32 reference using lax.conv for validation."""
    w1, s1, b1, w2, s2, b2, w3, s3, b3 = params
    P = kernel_size // 2

    def conv1x1(x, w):  # w: (Cin, Cout)
        k = jnp.transpose(w)[:, :, None, None]                  # (Cout, Cin, 1, 1)
        return jax.lax.conv_general_dilated(x, k, (1, 1), "VALID",
                                            dimension_numbers=("NCHW", "OIHW", "NCHW"))

    def convkxk(x, w):  # w: (kH, kW, Cin, Cout)
        k = jnp.transpose(w, (3, 2, 0, 1))                       # (Cout, Cin, kH, kW)
        return jax.lax.conv_general_dilated(x, k, (1, 1), [(P, P), (P, P)],
                                            dimension_numbers=("NCHW", "OIHW", "NCHW"))

    def affine(x, s, b):
        return x * s[0][None, :, None, None] + b[0][None, :, None, None]

    h = jnp.maximum(affine(conv1x1(x_nchw, w1), s1, b1), 0.0)
    h = jnp.maximum(affine(convkxk(h, w2), s2, b2), 0.0)
    h = affine(conv1x1(h, w3), s3, b3)
    return jnp.maximum(h + x_nchw, 0.0)


if __name__ == "__main__":
    key = jax.random.PRNGKey(0)
    kx, kp = jax.random.split(key)

    # NOTE: toy config for correctness only -- at these widths most MXU flops
    # are zero-padding; do not benchmark/tune at this size.
    N, C, H, W = 2, 4, 16, 16
    kernel_size = 3
    filters = (8, 8, C)          # filters3 must equal in_channel for residual add

    x = jax.random.normal(kx, (N, C, H, W), jnp.float32)
    params = _make_params(kp, C, kernel_size, filters)

    out = jax.block_until_ready(identity_block(x, params, kernel_size=kernel_size))

    ref = _reference(x, params, kernel_size)
    assert out.shape == (N, C, H, W)
    # Tolerance accounts for bf16 MXU operands (f32 accumulation) vs f32 reference.
    assert jnp.allclose(out, ref, atol=2e-2, rtol=2e-2), "mismatch vs reference"

    print("KERNEL_OK")
</pallas_src>

<mosaic_0001>
module attributes {stable_mosaic.version = 11 : i64} {
  func.func @_identity_block_kernel(%arg0: i32, %arg1: memref<1x16x16x128xf32, #tpu.memory_space<vmem>>, %arg2: memref<128x128xbf16, #tpu.memory_space<vmem>>, %arg3: memref<1x128xf32, #tpu.memory_space<vmem>>, %arg4: memref<1x128xf32, #tpu.memory_space<vmem>>, %arg5: memref<1152x128xbf16, #tpu.memory_space<vmem>>, %arg6: memref<1x128xf32, #tpu.memory_space<vmem>>, %arg7: memref<1x128xf32, #tpu.memory_space<vmem>>, %arg8: memref<128x128xbf16, #tpu.memory_space<vmem>>, %arg9: memref<1x128xf32, #tpu.memory_space<vmem>>, %arg10: memref<1x128xf32, #tpu.memory_space<vmem>>, %arg11: memref<1x16x16x128xf32, #tpu.memory_space<vmem>>, %arg12: memref<18x24x128xbf16, #tpu.memory_space<vmem>>, %arg13: memref<16x16x1152xbf16, #tpu.memory_space<vmem>>) attributes {dimension_semantics = [#tpu.dimension_semantics<parallel>], iteration_bounds = array<i64: 2>, scalar_prefetch = 0 : i64, scratch_operands = 2 : i64, tpu.core_type = #tpu.core_type<tc>, window_params = [{transform_indices = @transform_0, window_bounds = array<i64: 1, 16, 16, 128>}, {pipeline_mode = #tpu.pipeline_mode<synchronous>, transform_indices = @transform_1, window_bounds = array<i64: 128, 128>}, {pipeline_mode = #tpu.pipeline_mode<synchronous>, transform_indices = @transform_2, window_bounds = array<i64: 1, 128>}, {pipeline_mode = #tpu.pipeline_mode<synchronous>, transform_indices = @transform_3, window_bounds = array<i64: 1, 128>}, {pipeline_mode = #tpu.pipeline_mode<synchronous>, transform_indices = @transform_4, window_bounds = array<i64: 1152, 128>}, {pipeline_mode = #tpu.pipeline_mode<synchronous>, transform_indices = @transform_5, window_bounds = array<i64: 1, 128>}, {pipeline_mode = #tpu.pipeline_mode<synchronous>, transform_indices = @transform_6, window_bounds = array<i64: 1, 128>}, {pipeline_mode = #tpu.pipeline_mode<synchronous>, transform_indices = @transform_7, window_bounds = array<i64: 128, 128>}, {pipeline_mode = #tpu.pipeline_mode<synchronous>, transform_indices = @transform_8, window_bounds = array<i64: 1, 128>}, {pipeline_mode = #tpu.pipeline_mode<synchronous>, transform_indices = @transform_9, window_bounds = array<i64: 1, 128>}, {transform_indices = @transform_10, window_bounds = array<i64: 1, 16, 16, 128>}]} {
    %c0 = arith.constant 0 : index
    %c0_0 = arith.constant 0 : index
    %c0_1 = arith.constant 0 : index
    %c0_2 = arith.constant 0 : index
    %0 = vector.load %arg1[%c0, %c0_0, %c0_1, %c0_2] : memref<1x16x16x128xf32, #tpu.memory_space<vmem>>, vector<1x16x16x128xf32>
    %1 = vector.shape_cast %0 : vector<1x16x16x128xf32> to vector<256x128xf32>
    %2 = arith.truncf %1 : vector<256x128xf32> to vector<256x128xbf16>
    %c0_3 = arith.constant 0 : index
    %c0_4 = arith.constant 0 : index
    %3 = vector.load %arg2[%c0_3, %c0_4] : memref<128x128xbf16, #tpu.memory_space<vmem>>, vector<128x128xbf16>
    %cst = arith.constant dense<0.000000e+00> : vector<256x128xf32>
    %4 = tpu.matmul %2, %3, %cst {dimension_numbers = #tpu.dot_dimension_numbers<[1], [0], [0], [1], [0, 0, 1, 1], [], []>} : vector<256x128xbf16>, vector<128x128xbf16>, vector<256x128xf32> -> vector<256x128xf32>
    %c0_5 = arith.constant 0 : index
    %c0_6 = arith.constant 0 : index
    %5 = vector.load %arg3[%c0_5, %c0_6] : memref<1x128xf32, #tpu.memory_space<vmem>>, vector<1x128xf32>
    %6 = vector.broadcast %5 : vector<1x128xf32> to vector<256x128xf32>
    %7 = arith.mulf %4, %6 : vector<256x128xf32>
    %c0_7 = arith.constant 0 : index
    %c0_8 = arith.constant 0 : index
    %8 = vector.load %arg4[%c0_7, %c0_8] : memref<1x128xf32, #tpu.memory_space<vmem>>, vector<1x128xf32>
    %9 = vector.broadcast %8 : vector<1x128xf32> to vector<256x128xf32>
    %10 = arith.addf %7, %9 : vector<256x128xf32>
    %cst_9 = arith.constant 0.000000e+00 : f32
    %11 = vector.broadcast %cst_9 : f32 to vector<256x128xf32>
    %12 = arith.maximumf %10, %11 : vector<256x128xf32>
    %cst_10 = arith.constant 0.000000e+00 : bf16
    %13 = vector.broadcast %cst_10 : bf16 to vector<1x18x128xbf16>
    %cst_11 = arith.constant 0.000000e+00 : bf16
    %14 = vector.broadcast %cst_11 : bf16 to vector<16x1x128xbf16>
    %c0_12 = arith.constant 0 : index
    %c0_13 = arith.constant 0 : index
    %c0_14 = arith.constant 0 : index
    %15 = vector.load %arg12[%c0_12, %c0_13, %c0_14] : memref<18x24x128xbf16, #tpu.memory_space<vmem>>, vector<1x18x128xbf16>
    tpu.vector_store %arg12[%c0_12, %c0_13, %c0_14], %13 {strides = array<i32>} : memref<18x24x128xbf16, #tpu.memory_space<vmem>>, vector<1x18x128xbf16>,
    %c17 = arith.constant 17 : index
    %c0_15 = arith.constant 0 : index
    %c0_16 = arith.constant 0 : index
    %16 = vector.load %arg12[%c17, %c0_15, %c0_16] : memref<18x24x128xbf16, #tpu.memory_space<vmem>>, vector<1x18x128xbf16>
    tpu.vector_store %arg12[%c17, %c0_15, %c0_16], %13 {strides = array<i32>} : memref<18x24x128xbf16, #tpu.memory_space<vmem>>, vector<1x18x128xbf16>,
    %c1 = arith.constant 1 : index
    %c0_17 = arith.constant 0 : index
    %c0_18 = arith.constant 0 : index
    %17 = vector.load %arg12[%c1, %c0_17, %c0_18] : memref<18x24x128xbf16, #tpu.memory_space<vmem>>, vector<16x1x128xbf16>
    tpu.vector_store %arg12[%c1, %c0_17, %c0_18], %14 {strides = array<i32>} : memref<18x24x128xbf16, #tpu.memory_space<vmem>>, vector<16x1x128xbf16>,
    %c1_19 = arith.constant 1 : index
    %c17_20 = arith.constant 17 : index
    %c0_21 = arith.constant 0 : index
    %18 = vector.load %arg12[%c1_19, %c17_20, %c0_21] : memref<18x24x128xbf16, #tpu.memory_space<vmem>>, vector<16x1x128xbf16>
    tpu.vector_store %arg12[%c1_19, %c17_20, %c0_21], %14 {strides = array<i32>} : memref<18x24x128xbf16, #tpu.memory_space<vmem>>, vector<16x1x128xbf16>,
    %19 = arith.truncf %12 : vector<256x128xf32> to vector<256x128xbf16>
    %20 = vector.shape_cast %19 : vector<256x128xbf16> to vector<16x16x128xbf16>
    %c1_22 = arith.constant 1 : index
    %c1_23 = arith.constant 1 : index
    %c0_24 = arith.constant 0 : index
    %21 = vector.load %arg12[%c1_22, %c1_23, %c0_24] : memref<18x24x128xbf16, #tpu.memory_space<vmem>>, vector<16x16x128xbf16>
    tpu.vector_store %arg12[%c1_22, %c1_23, %c0_24], %20 {strides = array<i32>} : memref<18x24x128xbf16, #tpu.memory_space<vmem>>, vector<16x16x128xbf16>,
    %c0_25 = arith.constant 0 : index
    %c0_26 = arith.constant 0 : index
    %c0_27 = arith.constant 0 : index
    %22 = vector.load %arg12[%c0_25, %c0_26, %c0_27] : memref<18x24x128xbf16, #tpu.memory_space<vmem>>, vector<16x16x128xbf16>
    %c0_28 = arith.constant 0 : index
    %c0_29 = arith.constant 0 : index
    %c0_30 = arith.constant 0 : index
    %23 = vector.load %arg13[%c0_28, %c0_29, %c0_30] : memref<16x16x1152xbf16, #tpu.memory_space<vmem>>, vector<16x16x128xbf16>
    tpu.vector_store %arg13[%c0_28, %c0_29, %c0_30], %22 {strides = array<i32>} : memref<16x16x1152xbf16, #tpu.memory_space<vmem>>, vector<16x16x128xbf16>,
    %c0_31 = arith.constant 0 : index
    %c1_32 = arith.constant 1 : index
    %c0_33 = arith.constant 0 : index
    %24 = vector.load %arg12[%c0_31, %c1_32, %c0_33] : memref<18x24x128xbf16, #tpu.memory_space<vmem>>, vector<16x16x128xbf16>
    %c0_34 = arith.constant 0 : index
    %c0_35 = arith.constant 0 : index
    %c128 = arith.constant 128 : index
    %25 = vector.load %arg13[%c0_34, %c0_35, %c128] : memref<16x16x1152xbf16, #tpu.memory_space<vmem>>, vector<16x16x128xbf16>
    tpu.vector_store %arg13[%c0_34, %c0_35, %c128], %24 {strides = array<i32>} : memref<16x16x1152xbf16, #tpu.memory_space<vmem>>, vector<16x16x128xbf16>,
    %c0_36 = arith.constant 0 : index
    %c2 = arith.constant 2 : index
    %c0_37 = arith.constant 0 : index
    %26 = vector.load %arg12[%c0_36, %c2, %c0_37] : memref<18x24x128xbf16, #tpu.memory_space<vmem>>, vector<16x16x128xbf16>
    %c0_38 = arith.constant 0 : index
    %c0_39 = arith.constant 0 : index
    %c256 = arith.constant 256 : index
    %27 = vector.load %arg13[%c0_38, %c0_39, %c256] : memref<16x16x1152xbf16, #tpu.memory_space<vmem>>, vector<16x16x128xbf16>
    tpu.vector_store %arg13[%c0_38, %c0_39, %c256], %26 {strides = array<i32>} : memref<16x16x1152xbf16, #tpu.memory_space<vmem>>, vector<16x16x128xbf16>,
    %c1_40 = arith.constant 1 : index
    %c0_41 = arith.constant 0 : index
    %c0_42 = arith.constant 0 : index
    %28 = vector.load %arg12[%c1_40, %c0_41, %c0_42] : memref<18x24x128xbf16, #tpu.memory_space<vmem>>, vector<16x16x128xbf16>
    %c0_43 = arith.constant 0 : index
    %c0_44 = arith.constant 0 : index
    %c384 = arith.constant 384 : index
    %29 = vector.load %arg13[%c0_43, %c0_44, %c384] : memref<16x16x1152xbf16, #tpu.memory_space<vmem>>, vector<16x16x128xbf16>
    tpu.vector_store %arg13[%c0_43, %c0_44, %c384], %28 {strides = array<i32>} : memref<16x16x1152xbf16, #tpu.memory_space<vmem>>, vector<16x16x128xbf16>,
    %c1_45 = arith.constant 1 : index
    %c1_46 = arith.constant 1 : index
    %c0_47 = arith.constant 0 : index
    %30 = vector.load %arg12[%c1_45, %c1_46, %c0_47] : memref<18x24x128xbf16, #tpu.memory_space<vmem>>, vector<16x16x128xbf16>
    %c0_48 = arith.constant 0 : index
    %c0_49 = arith.constant 0 : index
    %c512 = arith.constant 512 : index
    %31 = vector.load %arg13[%c0_48, %c0_49, %c512] : memref<16x16x1152xbf16, #tpu.memory_space<vmem>>, vector<16x16x128xbf16>
    tpu.vector_store %arg13[%c0_48, %c0_49, %c512], %30 {strides = array<i32>} : memref<16x16x1152xbf16, #tpu.memory_space<vmem>>, vector<16x16x128xbf16>,
    %c1_50 = arith.constant 1 : index
    %c2_51 = arith.constant 2 : index
    %c0_52 = arith.constant 0 : index
    %32 = vector.load %arg12[%c1_50, %c2_51, %c0_52] : memref<18x24x128xbf16, #tpu.memory_space<vmem>>, vector<16x16x128xbf16>
    %c0_53 = arith.constant 0 : index
    %c0_54 = arith.constant 0 : index
    %c640 = arith.constant 640 : index
    %33 = vector.load %arg13[%c0_53, %c0_54, %c640] : memref<16x16x1152xbf16, #tpu.memory_space<vmem>>, vector<16x16x128xbf16>
    tpu.vector_store %arg13[%c0_53, %c0_54, %c640], %32 {strides = array<i32>} : memref<16x16x1152xbf16, #tpu.memory_space<vmem>>, vector<16x16x128xbf16>,
    %c2_55 = arith.constant 2 : index
    %c0_56 = arith.constant 0 : index
    %c0_57 = arith.constant 0 : index
    %34 = vector.load %arg12[%c2_55, %c0_56, %c0_57] : memref<18x24x128xbf16, #tpu.memory_space<vmem>>, vector<16x16x128xbf16>
    %c0_58 = arith.constant 0 : index
    %c0_59 = arith.constant 0 : index
    %c768 = arith.constant 768 : index
    %35 = vector.load %arg13[%c0_58, %c0_59, %c768] : memref<16x16x1152xbf16, #tpu.memory_space<vmem>>, vector<16x16x128xbf16>
    tpu.vector_store %arg13[%c0_58, %c0_59, %c768], %34 {strides = array<i32>} : memref<16x16x1152xbf16, #tpu.memory_space<vmem>>, vector<16x16x128xbf16>,
    %c2_60 = arith.constant 2 : index
    %c1_61 = arith.constant 1 : index
    %c0_62 = arith.constant 0 : index
    %36 = vector.load %arg12[%c2_60, %c1_61, %c0_62] : memref<18x24x128xbf16, #tpu.memory_space<vmem>>, vector<16x16x128xbf16>
    %c0_63 = arith.constant 0 : index
    %c0_64 = arith.constant 0 : index
    %c896 = arith.constant 896 : index
    %37 = vector.load %arg13[%c0_63, %c0_64, %c896] : memref<16x16x1152xbf16, #tpu.memory_space<vmem>>, vector<16x16x128xbf16>
    tpu.vector_store %arg13[%c0_63, %c0_64, %c896], %36 {strides = array<i32>} : memref<16x16x1152xbf16, #tpu.memory_space<vmem>>, vector<16x16x128xbf16>,
    %c2_65 = arith.constant 2 : index
    %c2_66 = arith.constant 2 : index
    %c0_67 = arith.constant 0 : index
    %38 = vector.load %arg12[%c2_65, %c2_66, %c0_67] : memref<18x24x128xbf16, #tpu.memory_space<vmem>>, vector<16x16x128xbf16>
    %c0_68 = arith.constant 0 : index
    %c0_69 = arith.constant 0 : index
    %c1024 = arith.constant 1024 : index
    %39 = vector.load %arg13[%c0_68, %c0_69, %c1024] : memref<16x16x1152xbf16, #tpu.memory_space<vmem>>, vector<16x16x128xbf16>
    tpu.vector_store %arg13[%c0_68, %c0_69, %c1024], %38 {strides = array<i32>} : memref<16x16x1152xbf16, #tpu.memory_space<vmem>>, vector<16x16x128xbf16>,
    %c0_70 = arith.constant 0 : index
    %c0_71 = arith.constant 0 : index
    %c0_72 = arith.constant 0 : index
    %40 = vector.load %arg13[%c0_70, %c0_71, %c0_72] : memref<16x16x1152xbf16, #tpu.memory_space<vmem>>, vector<16x16x1152xbf16>
    %41 = vector.shape_cast %40 : vector<16x16x1152xbf16> to vector<256x1152xbf16>
    %c0_73 = arith.constant 0 : index
    %c0_74 = arith.constant 0 : index
    %42 = vector.load %arg5[%c0_73, %c0_74] : memref<1152x128xbf16, #tpu.memory_space<vmem>>, vector<1152x128xbf16>
    %cst_75 = arith.constant dense<0.000000e+00> : vector<256x128xf32>
    %43 = tpu.matmul %41, %42, %cst_75 {dimension_numbers = #tpu.dot_dimension_numbers<[1], [0], [0], [1], [0, 0, 1, 1], [], []>} : vector<256x1152xbf16>, vector<1152x128xbf16>, vector<256x128xf32> -> vector<256x128xf32>
    %c0_76 = arith.constant 0 : index
    %c0_77 = arith.constant 0 : index
    %44 = vector.load %arg6[%c0_76, %c0_77] : memref<1x128xf32, #tpu.memory_space<vmem>>, vector<1x128xf32>
    %45 = vector.broadcast %44 : vector<1x128xf32> to vector<256x128xf32>
    %46 = arith.mulf %43, %45 : vector<256x128xf32>
    %c0_78 = arith.constant 0 : index
    %c0_79 = arith.constant 0 : index
    %47 = vector.load %arg7[%c0_78, %c0_79] : memref<1x128xf32, #tpu.memory_space<vmem>>, vector<1x128xf32>
    %48 = vector.broadcast %47 : vector<1x128xf32> to vector<256x128xf32>
    %49 = arith.addf %46, %48 : vector<256x128xf32>
    %cst_80 = arith.constant 0.000000e+00 : f32
    %50 = vector.broadcast %cst_80 : f32 to vector<256x128xf32>
    %51 = arith.maximumf %49, %50 : vector<256x128xf32>
    %52 = arith.truncf %51 : vector<256x128xf32> to vector<256x128xbf16>
    %c0_81 = arith.constant 0 : index
    %c0_82 = arith.constant 0 : index
    %53 = vector.load %arg8[%c0_81, %c0_82] : memref<128x128xbf16, #tpu.memory_space<vmem>>, vector<128x128xbf16>
    %cst_83 = arith.constant dense<0.000000e+00> : vector<256x128xf32>
    %54 = tpu.matmul %52, %53, %cst_83 {dimension_numbers = #tpu.dot_dimension_numbers<[1], [0], [0], [1], [0, 0, 1, 1], [], []>} : vector<256x128xbf16>, vector<128x128xbf16>, vector<256x128xf32> -> vector<256x128xf32>
    %c0_84 = arith.constant 0 : index
    %c0_85 = arith.constant 0 : index
    %55 = vector.load %arg9[%c0_84, %c0_85] : memref<1x128xf32, #tpu.memory_space<vmem>>, vector<1x128xf32>
    %56 = vector.broadcast %55 : vector<1x128xf32> to vector<256x128xf32>
    %57 = arith.mulf %54, %56 : vector<256x128xf32>
    %c0_86 = arith.constant 0 : index
    %c0_87 = arith.constant 0 : index
    %58 = vector.load %arg10[%c0_86, %c0_87] : memref<1x128xf32, #tpu.memory_space<vmem>>, vector<1x128xf32>
    %59 = vector.broadcast %58 : vector<1x128xf32> to vector<256x128xf32>
    %60 = arith.addf %57, %59 : vector<256x128xf32>
    %61 = vector.shape_cast %60 : vector<256x128xf32> to vector<1x16x16x128xf32>
    %c0_88 = arith.constant 0 : index
    %c0_89 = arith.constant 0 : index
    %c0_90 = arith.constant 0 : index
    %c0_91 = arith.constant 0 : index
    %62 = vector.load %arg1[%c0_88, %c0_89, %c0_90, %c0_91] : memref<1x16x16x128xf32, #tpu.memory_space<vmem>>, vector<1x16x16x128xf32>
    %63 = arith.addf %61, %62 : vector<1x16x16x128xf32>
    %cst_92 = arith.constant 0.000000e+00 : f32
    %64 = vector.broadcast %cst_92 : f32 to vector<1x16x16x128xf32>
    %65 = arith.maximumf %63, %64 : vector<1x16x16x128xf32>
    %c0_93 = arith.constant 0 : index
    %c0_94 = arith.constant 0 : index
    %c0_95 = arith.constant 0 : index
    %c0_96 = arith.constant 0 : index
    %66 = vector.load %arg11[%c0_93, %c0_94, %c0_95, %c0_96] : memref<1x16x16x128xf32, #tpu.memory_space<vmem>>, vector<1x16x16x128xf32>
    tpu.vector_store %arg11[%c0_93, %c0_94, %c0_95, %c0_96], %65 {strides = array<i32>} : memref<1x16x16x128xf32, #tpu.memory_space<vmem>>, vector<1x16x16x128xf32>,
    return
  }
  func.func @transform_0(%arg0: i32) -> (i32, i32, i32, i32) {
    %c0_i32 = arith.constant 0 : i32
    %c0_i32_0 = arith.constant 0 : i32
    %c0_i32_1 = arith.constant 0 : i32
    %c0_i32_2 = arith.constant 0 : i32
    return %arg0, %c0_i32, %c0_i32_0, %c0_i32_1 : i32, i32, i32, i32
  }
  func.func @transform_1(%arg0: i32) -> (i32, i32) {
    %c0_i32 = arith.constant 0 : i32
    %c0_i32_0 = arith.constant 0 : i32
    %c0_i32_1 = arith.constant 0 : i32
    return %c0_i32, %c0_i32_0 : i32, i32
  }
  func.func @transform_2(%arg0: i32) -> (i32, i32) {
    %c0_i32 = arith.constant 0 : i32
    %c0_i32_0 = arith.constant 0 : i32
    %c0_i32_1 = arith.constant 0 : i32
    return %c0_i32, %c0_i32_0 : i32, i32
  }
  func.func @transform_3(%arg0: i32) -> (i32, i32) {
    %c0_i32 = arith.constant 0 : i32
    %c0_i32_0 = arith.constant 0 : i32
    %c0_i32_1 = arith.constant 0 : i32
    return %c0_i32, %c0_i32_0 : i32, i32
  }
  func.func @transform_4(%arg0: i32) -> (i32, i32) {
    %c0_i32 = arith.constant 0 : i32
    %c0_i32_0 = arith.constant 0 : i32
    %c0_i32_1 = arith.constant 0 : i32
    return %c0_i32, %c0_i32_0 : i32, i32
  }
  func.func @transform_5(%arg0: i32) -> (i32, i32) {
    %c0_i32 = arith.constant 0 : i32
    %c0_i32_0 = arith.constant 0 : i32
    %c0_i32_1 = arith.constant 0 : i32
    return %c0_i32, %c0_i32_0 : i32, i32
  }
  func.func @transform_6(%arg0: i32) -> (i32, i32) {
    %c0_i32 = arith.constant 0 : i32
    %c0_i32_0 = arith.constant 0 : i32
    %c0_i32_1 = arith.constant 0 : i32
    return %c0_i32, %c0_i32_0 : i32, i32
  }
  func.func @transform_7(%arg0: i32) -> (i32, i32) {
    %c0_i32 = arith.constant 0 : i32
    %c0_i32_0 = arith.constant 0 : i32
    %c0_i32_1 = arith.constant 0 : i32
    return %c0_i32, %c0_i32_0 : i32, i32
  }
  func.func @transform_8(%arg0: i32) -> (i32, i32) {
    %c0_i32 = arith.constant 0 : i32
    %c0_i32_0 = arith.constant 0 : i32
    %c0_i32_1 = arith.constant 0 : i32
    return %c0_i32, %c0_i32_0 : i32, i32
  }
  func.func @transform_9(%arg0: i32) -> (i32, i32) {
    %c0_i32 = arith.constant 0 : i32
    %c0_i32_0 = arith.constant 0 : i32
    %c0_i32_1 = arith.constant 0 : i32
    return %c0_i32, %c0_i32_0 : i32, i32
  }
  func.func @transform_10(%arg0: i32) -> (i32, i32, i32, i32) {
    %c0_i32 = arith.constant 0 : i32
    %c0_i32_0 = arith.constant 0 : i32
    %c0_i32_1 = arith.constant 0 : i32
    %c0_i32_2 = arith.constant 0 : i32
    return %arg0, %c0_i32, %c0_i32_0, %c0_i32_1 : i32, i32, i32, i32
  }
}

</mosaic_0001>

<bundles_post_ra>
// kernel: tpu_custom_call.1
= control target key start
LH: loop header
LB: loop body
LE: loop exit
PB: predicated region body
PF: predicated region fallthrough
CT: control target
= control target key end

     0   :  { %s9040_s0 = inlined_call_operand.hbm [shape: f32[2,16,16,128], index: 0, kind: input, shape index: {}]   ;;  %s9041_s1 = inlined_call_operand.hbm [shape: bf16[128,128], index: 1, kind: input, shape index: {}]   ;;  %s9042_s2 = inlined_call_operand.vmem [shape: f32[1,128], index: 2, kind: input, shape index: {}]   ;;  %s9043_s3 = inlined_call_operand.vmem [shape: f32[1,128], index: 3, kind: input, shape index: {}]   ;;  %s9044_s4 = inlined_call_operand.hbm [shape: bf16[1152,128], index: 4, kind: input, shape index: {}]   ;;  %s9045_s5 = inlined_call_operand.vmem [shape: f32[1,128], index: 5, kind: input, shape index: {}]   ;;  %s9046_s6 = inlined_call_operand.vmem [shape: f32[1,128], index: 6, kind: input, shape index: {}]   ;;  %s9047_s7 = inlined_call_operand.hbm [shape: bf16[128,128], index: 7, kind: input, shape index: {}]   ;;  %s9048_s8 = inlined_call_operand.vmem [shape: f32[1,128], index: 8, kind: input, shape index: {}]   ;;  %s9049_s9 = inlined_call_operand.vmem [shape: f32[1,128], index: 9, kind: input, shape index: {}]   ;;  %s9050_s10 = inlined_call_operand.hbm [shape: f32[2,16,16,128], index: 10, kind: output, shape index: {}]  }
   0x1   :  { %9057 = sst [smem:[#allocation19_spill]] %s9049_s9 }
   0x2   :  { %9058 = sst [smem:[#allocation20_spill]] %s9050_s10 }
   0x3   :  { %15 = vsyncpa [#allocation5], 0 }
   0x4   :  { %17 = vsyncpa [#allocation5 + $0x1], 0 }
   0x5   :  { %18 = vsyncpa [#allocation8], 0 }
   0x6   :  { %19 = vsyncpa [#allocation11], 0 }
   0x7   :  { %20 = vsyncpa [#allocation6], 0 }
   0x8   :  { %22 = vsyncpa [#allocation6 + $0x1], 0  ;;  %s7819_s13 = smov 0   ;;  %s7821_s14 = smov 0  }
   0x9   :  { %s7823_s15 = smov 0   ;;  %s7825_s16 = smov 0  }
   0xa LB: > { %9059 = sst [smem:[#allocation17_spill]] %s7738_s13  ;;  %s7840_s17 = sadd.s32 4294967295, %s7750_s16   ;;  %s7750_s16 = sphi %s7825_s16, %s9093_s16   ;;  %s7746_s15 = sphi %s7823_s15, %s9092_s15   ;;  %s7742_s14 = sphi %s7821_s14, %s9091_s14   ;;  %s7738_s13 = sphi %s7819_s13, %s9090_s13  }
   0xb   : > { %s6048_s18 = sadd.s32 4294967294, %s7750_s16   ;;  %p48_p0 = scmp.ne.s32.totalorder %s7742_s14, %s7738_s13 }
   0xc   : > { %p9051_p1 = scmp.eq.s32.totalorder %s7840_s17, 0  ;;  %p267_p3 = scmp.eq.s32.totalorder %s6048_s18, 1 }
   0xd   : > { %p6049_p5 = scmp.ge.s32.totalorder %s7750_s16, 1  ;;  %p274_p7 = scmp.lt.s32.totalorder %s7750_s16, 3 }
   0xe   : > { %p7849_p4 = por %p9051_p1, %p48_p0  ;;  %p7854_p6 = por %p267_p3, %p48_p0 }
   0xf   : > { %p7859_p8 = pnand %p6049_p5, %p274_p7  ;;  %s7752_s22 = smov [#allocation7]  }
  0x10   : > { %s9060_s19 = scalar_select %p7849_p4, 1, 0 }
  0x11   : > { %s9061_s20 = scalar_select %p7854_p6, 1, 0 }
  0x12   : > { %s9063_s21 = scalar_select %p7859_p8, 1, 0 }
  0x13   : > { %9062 = sst [smem:[#allocation18_spill]] %s9061_s20  ;;  %s286_s23 = sshll.u32 %s7752_s22, 4  ;;  %s7863_s23 = int_to_ptr.vmem [resolvable:$true] %s286_s23 }
  0x14   : > { %p7164_p9 = pneg %p7859_p8  ;;  %s7753_s25 = smov [#allocation9]  }
  0x15   : > { %s305_s26 = sshll.u32 %s7753_s25, 4  ;;  %s7754_s27 = smov [#allocation10]   ;;  %s7874_s26 = int_to_ptr.vmem [resolvable:$true] %s305_s26 }
  0x16   : > { %p7870_p11 = pnand %p7164_p9, %p9051_p1  ;;  %s7876_s28 = sshll.u32 %s7754_s27, 4  ;;  %s325_s28 = int_to_ptr.vmem [resolvable:$true] %s7876_s28 }
  0x17   : > { %s7562_s11 = scalar_lea.hbm %s9041_s1, 1024 }
  0x18   : > { %p7563_p12 = scmp.ne.s32.totalorder %s9041_s1, %s7562_s11  ;;  %p7886_p13 = pneg %p7870_p11 }
  0x19   : > { %p7569_p5 = scmp.lt.u32.totalorder %s7562_s11, %s9041_s1 }
  0x1a   : > { %p7565_p0 = pnand %p7886_p13, %p7563_p12 }
  0x1c   : > { %p7566_p3 = pneg %p7565_p0 }
  0x1e   : > { %p7571_p7 = pnand %p7569_p5, %p7566_p3 }
  0x20   : > { %7574 = shalt.err (!%p7571_p7)
}
  0x21   : > { %s7575_s29 = scalar_lea.vmem %s7863_s23, 1024  ;;  %p7583_p2 = scmp.lt.s32.totalorder %s7863_s23, %s7863_s23 }
  0x22   : > { %p7576_p9 = scmp.ne.s32.totalorder %s7863_s23, %s7575_s29  ;;  %p7584_p6 = scmp.lt.s32.totalorder %s7575_s29, %s7575_s29 }
  0x24   : > { %p7578_p10 = pnand %p7576_p9, %p7886_p13  ;;  %p7585_p12 = por %p7584_p6, %p7583_p2 }
  0x26   : > { %p7579_p1 = pneg %p7578_p10 }
  0x28   : > { %p7586_p0 = pnand %p7585_p12, %p7579_p1 }
  0x2a   : > { %7589 = shalt.err (!%p7586_p0)
}
  0x2b   : > { %s7755_s30 = smov 64   ;;  %s7756_s11 = smov 4  }
  0x2c   : > { %7167 = dma.hbm_to_vmem [thread:$0]  (!%p7870_p11), %s9041_s1, 1024, %s7863_s23, [#allocation8], %s7755_s30, %s7755_s30, %s7756_s11  }
  0x2d   : > { %s7590_s29 = scalar_lea.hbm %s9044_s4, 9216 }
  0x2e   : > { %p7591_p1 = scmp.ne.s32.totalorder %s9044_s4, %s7590_s29  ;;  %p7597_p10 = scmp.lt.u32.totalorder %s7590_s29, %s9044_s4 }
  0x30   : > { %p7593_p2 = pnand %p7591_p1, %p7886_p13 }
  0x32   : > { %p7594_p6 = pneg %p7593_p2 }
  0x34   : > { %p7599_p3 = pnand %p7597_p10, %p7594_p6 }
  0x36   : > { %7602 = shalt.err (!%p7599_p3)
}
  0x37   : > { %s7603_s23 = scalar_lea.vmem %s7874_s26, 9216  ;;  %p7611_p12 = scmp.lt.s32.totalorder %s7874_s26, %s7874_s26 }
  0x38   : > { %p7604_p5 = scmp.ne.s32.totalorder %s7874_s26, %s7603_s23  ;;  %p7612_p0 = scmp.lt.s32.totalorder %s7603_s23, %s7603_s23 }
  0x3a   : > { %p7606_p7 = pnand %p7604_p5, %p7886_p13  ;;  %p7613_p1 = por %p7612_p0, %p7611_p12 }
  0x3c   : > { %p7607_p9 = pneg %p7606_p7 }
  0x3e   : > { %p7614_p2 = pnand %p7613_p1, %p7607_p9 }
  0x40   : > { %7617 = shalt.err (!%p7614_p2)
}
  0x41   : > { %7170 = dma.hbm_to_vmem [thread:$0]  (!%p7870_p11), %s9044_s4, 9216, %s7874_s26, [#allocation8], %s7755_s30, %s7755_s30, %s7756_s11  }
  0x42   : > { %s7618_s12 = scalar_lea.hbm %s9047_s7, 1024 }
  0x43   : > { %p7619_p6 = scmp.ne.s32.totalorder %s9047_s7, %s7618_s12  ;;  %p7625_p5 = scmp.lt.u32.totalorder %s7618_s12, %s9047_s7 }
  0x45   : > { %p7621_p10 = pnand %p7619_p6, %p7886_p13 }
  0x47   : > { %p7622_p3 = pneg %p7621_p10 }
  0x49   : > { %p7627_p7 = pnand %p7625_p5, %p7622_p3 }
  0x4b   : > { %7630 = shalt.err (!%p7627_p7)
}
  0x4c   : > { %s7631_s23 = scalar_lea.vmem %s325_s28, 1024  ;;  %p7639_p1 = scmp.lt.s32.totalorder %s325_s28, %s325_s28 }
  0x4d   : > { %p7632_p9 = scmp.ne.s32.totalorder %s325_s28, %s7631_s23  ;;  %p7640_p2 = scmp.lt.s32.totalorder %s7631_s23, %s7631_s23 }
  0x4f   : > { %p7634_p12 = pnand %p7632_p9, %p7886_p13  ;;  %p7641_p4 = por %p7640_p2, %p7639_p1 }
  0x51   : > { %p7635_p0 = pneg %p7634_p12 }
  0x53   : > { %p7642_p8 = pnand %p7641_p4, %p7635_p0 }
  0x55   : > { %7645 = shalt.err (!%p7642_p8)
}
  0x56   : > { %7173 = dma.hbm_to_vmem [thread:$0]  (!%p7870_p11), %s9047_s7, 1024, %s325_s28, [#allocation11], %s7755_s30, %s7755_s30, %s7756_s11  }
  0x57   : > { %s7959_s22 = sadd.s32 1, %s7750_s16   ;;  %s35_s10 = sadd.s32 1, %s7746_s15 }
  0x58   : > { %s32_s24 = ssub.s32 %s7750_s16, %s7959_s22  ;;  %p42_p8 = scmp.ne.s32.totalorder %s7746_s15, %s7742_s14 }
  0x59   : > { %p33_p4 = scmp.eq.s32.totalorder %s32_s24, 0  ;;  %p43_p13 = scmp.eq.s32.totalorder %s7750_s16, 0 }
  0x5a   : > { %p7185_p6 = scmp.lt.s32.totalorder %s7750_s16, 2  ;;  %p9066_p3 = scmp.eq.s32.totalorder %s7840_s17, 1 }
  0x5b   : > { %s7969_s13 = scalar_select %p33_p4, %s7746_s15, %s35_s10  }
  0x5c   : > { %p44_p10 = por %p43_p13, %p42_p8  ;;  %p7973_p5 = por %p9066_p3, %p42_p8 }
  0x5d   : > { %s344_s12 = sand.u32 1, %s7746_s15   ;;  %s6434_s18 = sshll.u32 %s7750_s16, 12 }
  0x5e   : > { %s6054_s28 = sshll.u32 %s344_s12, 8  ;;  %s7982_s25 = scalar_lea.hbm %s9040_s0, %s6434_s18 }
  0x5f   : > { %s348_s27 = scalar_lea.vmem [#allocation4], %s6054_s28  ;;  %p7984_p11 = pnand %p7185_p6, %p44_p10 }
  0x60   : > { %s355_s29 = sshll.u32 %s348_s27, 4  ;;  %s7990_s26 = scalar_lea.sflag [#allocation5], %s344_s12  ;;  %s7988_s29 = int_to_ptr.vmem [resolvable:$true] %s355_s29 }
  0x61   : > { %s7646_s9 = scalar_lea.hbm %s7982_s25, 4096  ;;  %p7648_p9 = pneg %p7984_p11 }
  0x62   : > { %p7647_p7 = scmp.ne.s32.totalorder %s7982_s25, %s7646_s9  ;;  %s7651_s18 = scalar_lea.hbm %s9040_s0, 8192 }
  0x63   : > { %p7652_p1 = scmp.lt.u32.totalorder %s7982_s25, %s9040_s0  ;;  %p7653_p2 = scmp.lt.u32.totalorder %s7651_s18, %s7646_s9 }
  0x64   : > { %p7649_p12 = pnand %p7648_p9, %p7647_p7  ;;  %p7655_p8 = scmp.lt.u32.totalorder %s7646_s9, %s7982_s25 }
  0x65   : > { %p7654_p4 = por %p7653_p2, %p7652_p1 }
  0x66   : > { %p7650_p0 = pneg %p7649_p12 }
  0x67   : > { %p7656_p13 = por %p7655_p8, %p7654_p4 }
  0x69   : > { %p7657_p6 = pnand %p7656_p13, %p7650_p0 }
  0x6b   : > { %7660 = shalt.err (!%p7657_p6)
}
  0x6c   : > { %s7661_s12 = scalar_lea.vmem %s7988_s29, 4096  ;;  %s7757_s11 = smov [#allocation4]  }
  0x6d   : > { %p7662_p10 = scmp.ne.s32.totalorder %s7988_s29, %s7661_s12  ;;  %s7666_s27 = sshll.u32 %s7757_s11, 4  ;;  %s7667_s27 = int_to_ptr.vmem [resolvable:$false] %s7666_s27 }
  0x6e   : > { %s7668_s24 = scalar_lea.vmem %s7667_s27, 8192  ;;  %p7669_p12 = scmp.lt.s32.totalorder %s7988_s29, %s7667_s27 }
  0x6f   : > { %p7664_p3 = pnand %p7662_p10, %p7648_p9  ;;  %p7670_p1 = scmp.lt.s32.totalorder %s7668_s24, %s7661_s12 }
  0x71   : > { %p7665_p7 = pneg %p7664_p3  ;;  %p7671_p2 = por %p7670_p1, %p7669_p12 }
  0x73   : > { %p7672_p4 = pnand %p7671_p2, %p7665_p7 }
  0x75   : > { %7675 = shalt.err (!%p7672_p4)
}
  0x76   : > { %s7758_s9 = smov 128   ;;  %s7759_s10 = smov 8  }
  0x77   : > { %7177 = dma.hbm_to_vmem [thread:$0]  (!%p7984_p11), %s7982_s25, 4096, %s7988_s29, %s7990_s26, %s7758_s9, %s7758_s9, %s7759_s10  }
  0x78   : > { %p9069_p9 = scmp.ne.s32.totalorder %s9063_s21, 0 }
  0x79   : > { %s8021_s18 = sand.u32 (!%p9069_p9), 1, %s7742_s14   ;;  %p9070_p0 = scmp.ne.s32.totalorder (!%p9069_p9), %s9060_s19, 0 }
  0x7a   : > { %367 = sbr.rel (%p9069_p9) target bundleno = 1192 (0x4a8), region = 60  ;;  %s6058_s28 = sshll.u32 (!%p9069_p9), %s8021_s18, 8 }
  0x7b   : > { %s370_s30 = scalar_lea.sflag (!%p9069_p9), [#allocation5], %s8021_s18  ;;  %s8027_s12 = scalar_lea.vmem (!%p9069_p9), [#allocation4], %s6058_s28 }
  0x81   : > { %7721 = dma.done.wait (%p9070_p0), %s370_s30, 4096  }
  0x82   : > { %7723 = vsyncadd (%p9070_p0), %s370_s30, 4294963200  ;;  %p9071_p11 = scmp.eq.s32.totalorder %s7840_s17, 0 }
  0x84   : > { %7725 = dma.done.wait (%p9071_p11), [#allocation8], 10240   ;;  %p9072_p8 = pmov %p9071_p11 }
  0x86   : > { %7727 = vsyncadd (%p9072_p8), [#allocation8], 4294957056  ;;  %p9073_p13 = pmov %p9072_p8 }
  0x87   : > { %p9074_p6 = pmov %p9072_p8 }
  0x88   : > { %7729 = dma.done.wait (%p9073_p13), [#allocation11], 1024  }
  0x89   : > { %7731 = vsyncadd (%p9074_p6), [#allocation11], 4294966272  ;;  %v7232_v0 = vld [vmem:[#allocation7] sm:$0xff]   ;;  %v7233_v1 = vld [vmem:[#allocation7 + $0x8] sm:$0xff]   ;;  %vm814_vm0 = vcmask 1040384   ;;  %vm2168_vm6 = vcmask 1046528  }
  0x8a   : > { %6988 = vmatprep.subr.bf16.mxu0 %v7232_v0  ;;  %7132 = vmatprep.subr.bf16.mxu1 %v7232_v0  ;;  %v7234_v2 = vld [vmem:[#allocation7 + $0x10] sm:$0xff]   ;;  %v7235_v3 = vld [vmem:[#allocation7 + $0x18] sm:$0xff]   ;;  %v423_v4 = vld [vmem:[%s8027_s12] sm:$0xff]  ;;  %vm815_vm1 = vsmask.f32 256  ;;  %vm1333_vm7 = vcmask 1043456  }
  0x8b   : > { %6989 = vmatpush3.bf16.msra.mxu0 %v7232_v0  ;;  %7140 = vmatpush3.bf16.msra.mxu1 %v7232_v0  ;;  %v424_v5 = vld [vmem:[%s8027_s12 + $0x8] sm:$0xff]  ;;  %v7236_v7 = vld [vmem:[#allocation7 + $0x20] sm:$0xff]   ;;  %v7238_v12 = vld [vmem:[#allocation7 + $0x30] sm:$0xff]   ;;  %vm865_vm3 = vsmask.f32 7938  ;;  %s9083_s23 = sld [smem:[#allocation19_spill]] }
  0x8c   : > { %6990 = vmatprep.subr.bf16.mxu0 %v7233_v1  ;;  %7133 = vmatprep.subr.bf16.mxu1 %v7233_v1  ;;  %v455_v6 = vpack.c.bf16 %v424_v5, %v423_v4  ;;  %v439_v8 = vld [vmem:[%s8027_s12 + $0x80] sm:$0xff]  ;;  %v440_v9 = vld [vmem:[%s8027_s12 + $0x88] sm:$0xff]  ;;  %v7239_v13 = vld [vmem:[#allocation7 + $0x38] sm:$0xff]   ;;  %vm1767_vm5 = vsmask.f32 7424  ;;  %s8871_s26 = scalar_lea.vmem [#allocation12], %s6058_s28 }
  0x8d   : > { %v463_v10 = vpack.c.bf16 %v440_v9, %v439_v8  ;;  %v7237_v11 = vld [vmem:[#allocation7 + $0x28] sm:$0xff]   ;;  %v425_v14 = vld [vmem:[%s8027_s12 + $0x10] sm:$0xff]  ;;  %v426_v15 = vld [vmem:[%s8027_s12 + $0x18] sm:$0xff]  ;;  %vm1011_vm8 = vsmask.f32 4368  ;;  %s6467_s28 = sshll.u32 %s7840_s17, 12 }
  0x8e   : > { %7004 = vmatprep.mubr.bf16.mxu0 %v455_v6  ;;  %v427_v16 = vld [vmem:[%s8027_s12 + $0x20] sm:$0xff]  ;;  %v428_v17 = vld [vmem:[%s8027_s12 + $0x28] sm:$0xff]  ;;  %v441_v18 = vld [vmem:[%s8027_s12 + $0x90] sm:$0xff]  ;;  %v456_v24 = vpack.c.bf16 %v426_v15, %v425_v14  ;;  %s5946_s11 = sshll.u32 %s8871_s26, 4  ;;  %s9084_s9 = sld [smem:[#allocation20_spill]]  ;;  %s8993_s11 = int_to_ptr.vmem [resolvable:$true] %s5946_s11 }
  0x8f   : > { %6991 = vmatpush3.bf16.msra.mxu0 %v7233_v1  ;;  %7141 = vmatpush3.bf16.msra.mxu1 %v7233_v1  ;;  %v442_v19 = vld [vmem:[%s8027_s12 + $0x98] sm:$0xff]  ;;  %v7243_v20 = vld [vmem:[#allocation9 + $0xc0] sm:$0xff]   ;;  %v444_v22 = vld [vmem:[%s8027_s12 + $0xa8] sm:$0xff]  ;;  %v457_v26 = vpack.c.bf16 %v428_v17, %v427_v16  ;;  %s5933_s17 = scalar_lea.sflag [#allocation6], %s8021_s18  ;;  %s7761_s30 = smov [#allocation12]  }
  0x90   : > { %6992 = vmatprep.subr.bf16.mxu0 %v7234_v2  ;;  %7134 = vmatprep.subr.bf16.mxu1 %v7234_v2  ;;  %v443_v21 = vld [vmem:[%s8027_s12 + $0xa0] sm:$0xff]  ;;  %v464_v27 = vpack.c.bf16 %v442_v19, %v441_v18  ;;  %v7242_v28 = vld [vmem:[#allocation9 + $0x48] sm:$0xff]   ;;  %v429_v31 = vld [vmem:[%s8027_s12 + $0x30] sm:$0xff]  ;;  %v7760_v19 = vmov 0   ;;  %s7680_s19 = sshll.u32 %s7761_s30, 4  ;;  %s7681_s19 = int_to_ptr.vmem [resolvable:$false] %s7680_s19 }
  0x91   : > { %7020 = vmatprep.mubr.bf16.mxu1 %v463_v10  ;;  %v7240_v23 = vld [vmem:[#allocation9 + $0x40] sm:$0xff]   ;;  %v465_v30 = vpack.c.bf16 %v444_v22, %v443_v21  ;;  %v430_v32 = vld [vmem:[%s8027_s12 + $0x38] sm:$0xff]  ;;  %v432_v34 = vld [vmem:[%s8027_s12 + $0x48] sm:$0xff]  ;;  %806 = vst [vmem:[#allocation2] sm:$0xf] %v7760_v19  ;;  %s7682_s21 = scalar_lea.vmem %s7681_s19, 8192  ;;  %p7683_p12 = scmp.lt.s32.totalorder %s8993_s11, %s7681_s19 }
  0x92   : > { %v7241_v25 = vld [vmem:[#allocation9] sm:$0xff]   ;;  %v445_v35 = vld [vmem:[%s8027_s12 + $0xb0] sm:$0xff]  ;;  %v446_v36 = vld [vmem:[%s8027_s12 + $0xb8] sm:$0xff]  ;;  %v458_v40 = vpack.c.bf16 %v430_v32, %v429_v31  ;;  %807 = vst [vmem:[#allocation2 + $0x4] sm:$0xf] %v7760_v19 }
  0x93   : > { %6993 = vmatpush3.bf16.msra.mxu0 %v7234_v2  ;;  %7142 = vmatpush3.bf16.msra.mxu1 %v7234_v2  ;;  %v7245_v29 = vld [vmem:[#allocation9 + $0x80] sm:$0xff]   ;;  %v7244_v37 = vld [vmem:[#allocation9 + $0x8] sm:$0xff]   ;;  %v466_v42 = vpack.c.bf16 %v446_v36, %v445_v35  ;;  %v433_v44 = vld [vmem:[%s8027_s12 + $0x50] sm:$0xff]  ;;  %808 = vst [vmem:[#allocation2 + $0x8] sm:$0x1] %v7760_v19 }
  0x94   : > { %6994 = vmatprep.subr.bf16.mxu0 %v7235_v3  ;;  %7135 = vmatprep.subr.bf16.mxu1 %v7235_v3  ;;  %v431_v33 = vld [vmem:[%s8027_s12 + $0x40] sm:$0xff]  ;;  %v448_v39 = vld [vmem:[%s8027_s12 + $0xc8] sm:$0xff]  ;;  %v434_v45 = vld [vmem:[%s8027_s12 + $0x58] sm:$0xff]  ;;  %810 = vst [vmem:[#allocation2 + $0xcc] sm:$0xf] %v7760_v19  ;;  %s8991_s10 = scalar_lea.hbm %s9084_s9, %s6467_s28 }
  0x95   : > { %v447_v38 = vld [vmem:[%s8027_s12 + $0xc0] sm:$0xff]  ;;  %v459_v41 = vpack.c.bf16 %v432_v34, %v431_v33  ;;  %v436_v47 = vld [vmem:[%s8027_s12 + $0x68] sm:$0xff]  ;;  %v449_v48 = vld [vmem:[%s8027_s12 + $0xd0] sm:$0xff]  ;;  %v460_v52 = vpack.c.bf16 %v434_v45, %v433_v44  ;;  %811 = vst [vmem:[#allocation2 + $0xd0] sm:$0xf] %v7760_v19 }
  0x96   : > { %v467_v43 = vpack.c.bf16 %v448_v39, %v447_v38  ;;  %v435_v46 = vld [vmem:[%s8027_s12 + $0x60] sm:$0xff]  ;;  %v450_v49 = vld [vmem:[%s8027_s12 + $0xd8] sm:$0xff]  ;;  %v452_v51 = vld [vmem:[%s8027_s12 + $0xe8] sm:$0xff]  ;;  %812 = vst [vmem:[#allocation2 + $0xd4] sm:$0x1] %v7760_v19 }
  0x97   : > { %6995 = vmatpush3.bf16.msra.mxu0 %v7235_v3  ;;  %7143 = vmatpush3.bf16.msra.mxu1 %v7235_v3  ;;  %v451_v50 = vld [vmem:[%s8027_s12 + $0xe0] sm:$0xff]  ;;  %v461_v53 = vpack.c.bf16 %v436_v47, %v435_v46  ;;  %v468_v54 = vpack.c.bf16 %v450_v49, %v449_v48  ;;  %v437_v56 = vld [vmem:[%s8027_s12 + $0x70] sm:$0xff]  ;;  %v438_v57 = vld [vmem:[%s8027_s12 + $0x78] sm:$0xff] }
  0x98   : > { %6996 = vmatprep.subr.bf16.mxu0 %v7236_v7  ;;  %7136 = vmatprep.subr.bf16.mxu1 %v7236_v7  ;;  %v469_v55 = vpack.c.bf16 %v452_v51, %v451_v50  ;;  %v453_v58 = vld [vmem:[%s8027_s12 + $0xf0] sm:$0xff]  ;;  %v454_v59 = vld [vmem:[%s8027_s12 + $0xf8] sm:$0xff]  ;;  %v462_v60 = vpack.c.bf16 %v438_v57, %v437_v56  ;;  %v7247_v63 = vld [vmem:[#allocation9 + $0xc8] sm:$0xff]  }
  0x99   : > { %v470_v61 = vpack.c.bf16 %v454_v59, %v453_v58  ;;  %v7246_v62 = vld [vmem:[#allocation9 + $0x50] sm:$0xff]   ;;  %v7249_v1 = vld [vmem:[#allocation9 + $0x88] sm:$0xff]   ;;  %v7250_v2 = vld [vmem:[#allocation9 + $0x58] sm:$0xff]  }
  0x9a   : > { %v7248_v0 = vld [vmem:[#allocation9 + $0x10] sm:$0xff]   ;;  %v7252_v4 = vld [vmem:[#allocation9 + $0x18] sm:$0xff]   ;;  %vm8074_vm2 = vmand %vm814_vm0, %vm815_vm1 }
  0x9b   : > { %6997 = vmatpush3.bf16.msra.mxu0 %v7236_v7  ;;  %7144 = vmatpush3.bf16.msra.mxu1 %v7236_v7  ;;  %v7251_v3 = vld [vmem:[#allocation9 + $0xd0] sm:$0xff]   ;;  %v820_v7 = vld [vmem:[#allocation2 + $0x18] sm:$0x1]  ;;  %vm8081_vm4 = vmand %vm814_vm0, %vm865_vm3 }
  0x9c   : > { %6998 = vmatprep.subr.bf16.mxu0 %v7237_v11  ;;  %7137 = vmatprep.subr.bf16.mxu1 %v7237_v11  ;;  %v7253_v5 = vld [vmem:[#allocation9 + $0x90] sm:$0xff]   ;;  %v821_v8 = vsel %vm8074_vm2, 0, %v820_v7  ;;  %v7255_v14 = vld [vmem:[#allocation9 + $0xd8] sm:$0xff]   ;;  %v7256_v18 = vld [vmem:[#allocation9 + $0x20] sm:$0xff]  }
  0x9d   : > { %v817_v10 = vld [vmem:[#allocation2 + $0xc] sm:$0x1]  ;;  %822 = vst [vmem:[#allocation2 + $0x18] sm:$0x1] %v821_v8  ;;  %v867_v16 = vld [vmem:[#allocation2 + $0x14] sm:$0x1]  ;;  %vm8198_vm9 = vmand %vm1333_vm7, %vm865_vm3 }
  0x9e   : > { %v868_v17 = vsel %vm8081_vm4, 0, %v867_v16  ;;  %v826_v21 = vld [vmem:[#allocation2 + $0x30] sm:$0x1]  ;;  %v823_v22 = vld [vmem:[#allocation2 + $0x24] sm:$0x1]  ;;  %v7264_v31 = vld [vmem:[#allocation9 + $0x30] sm:$0xff]  }
  0x9f   : > { %6999 = vmatpush3.bf16.msra.mxu0 %v7237_v11  ;;  %7145 = vmatpush3.bf16.msra.mxu1 %v7237_v11  ;;  %v818_v11 = vsel %vm8074_vm2, 0, %v817_v10  ;;  %869 = vst [vmem:[#allocation2 + $0x14] sm:$0x1] %v868_v17  ;;  %v7265_v32 = vld [vmem:[#allocation9 + $0xa8] sm:$0xff]   ;;  %v876_v35 = vld [vmem:[#allocation2 + $0x38] sm:$0x1]  ;;  %vm8207_vm10 = vmor %vm815_vm1, %vm1011_vm8 }
  0xa0   : > { %7000 = vmatprep.subr.bf16.mxu0 %v7238_v12  ;;  %7138 = vmatprep.subr.bf16.mxu1 %v7238_v12  ;;  %819 = vst [vmem:[#allocation2 + $0xc] sm:$0x1] %v818_v11  ;;  %v7270_v33 = vld [vmem:[#allocation2] sm:$0xff]   ;;  %v7271_v34 = vld [vmem:[#allocation2 + $0x8] ss:$0 sps:$4 sm:$0x11]  }
  0xa1   : > { %v873_v36 = vld [vmem:[#allocation2 + $0x2c] sm:$0x1]  ;;  %v877_v38 = vsel %vm8081_vm4, 0, %v876_v35  ;;  %v1771_v44 = vshll.u32 %v7270_v33, 16  ;;  %v1776_v45 = vshll.u32 %v7271_v34, 16  ;;  %v7273_v48 = vld [vmem:[#allocation9 + $0xf8] sm:$0xff]  }
  0xa2   : > { %v874_v39 = vsel %vm8081_vm4, 0, %v873_v36  ;;  %878 = vst [vmem:[#allocation2 + $0x38] sm:$0x1] %v877_v38  ;;  %v7272_v49 = vld [vmem:[#allocation2] sm:$0xff]   ;;  %v7274_v50 = vld [vmem:[#allocation9 + $0xb8] sm:$0xff]   ;;  %v7303_v19 = vld [vmem:[#allocation9 + $0x150] sm:$0xff]  }
  0xa3   : > { %7001 = vmatpush3.bf16.msra.mxu0 %v7238_v12  ;;  %7146 = vmatpush3.bf16.msra.mxu1 %v7238_v12  ;;  %v870_v12 = vld [vmem:[#allocation2 + $0x20] sm:$0x1]  ;;  %875 = vst [vmem:[#allocation2 + $0x2c] sm:$0x1] %v874_v39  ;;  %v1773_v46 = vrot.slane %v1771_v44, 1  ;;  %v1778_v47 = vrot.slane %v1776_v45, 1 }
  0xa4   : > { %7002 = vmatprep.subr.bf16.mxu0 %v7239_v13  ;;  %7139 = vmatprep.subr.bf16.mxu1 %v7239_v13  ;;  %v871_v15 = vsel %vm8081_vm4, 0, %v870_v12  ;;  %v882_v56 = vld [vmem:[#allocation2 + $0x50] sm:$0x1]  ;;  %v879_v59 = vld [vmem:[#allocation2 + $0x44] sm:$0x1]  ;;  %v7333_v39 = vld [vmem:[#allocation9 + $0x160] sm:$0xff]  }
  0xa5   : > { %872 = vst [vmem:[#allocation2 + $0x20] sm:$0x1] %v871_v15  ;;  %v883_v58 = vsel %vm8081_vm4, 0, %v882_v56  ;;  %v7289_v8 = vld [vmem:[#allocation9 + $0x148] sm:$0xff]   ;;  %v844_v11 = vld [vmem:[#allocation2 + $0x78] sm:$0x1] }
  0xa6   : > { %884 = vst [vmem:[#allocation2 + $0x50] sm:$0x1] %v883_v58  ;;  %v7291_v10 = vld [vmem:[#allocation9 + $0x108] sm:$0xff]   ;;  %v845_v12 = vsel %vm8074_vm2, 0, %v844_v11  ;;  %v891_v17 = vld [vmem:[#allocation2 + $0x74] sm:$0x1] }
  0xa7   : > { %7003 = vmatpush3.bf16.msra.mxu0 %v7239_v13  ;;  %7147 = vmatpush3.bf16.msra.mxu1 %v7239_v13  ;;  %v7254_v13 = vld [vmem:[#allocation9 + $0x60] sm:$0xff]   ;;  %846 = vst [vmem:[#allocation2 + $0x78] sm:$0x1] %v845_v12  ;;  %v894_v15 = vld [vmem:[#allocation2 + $0x80] sm:$0x1]  ;;  %v7365_v58 = vld [vmem:[#allocation9 + $0x170] sm:$0xff]  }
  0xa8   : > { %6604 = vmatprep.subr.bf16.mxu0 %v7243_v20  ;;  %6492 = vmatprep.subr.bf16.mxu1 %v7240_v23  ;;  %v7257_v20 = vld [vmem:[#allocation9 + $0x98] sm:$0xff]   ;;  %v827_v23 = vsel %vm8074_vm2, 0, %v826_v21  ;;  %v895_v16 = vsel %vm8081_vm4, 0, %v894_v15  ;;  %v903_v38 = vld [vmem:[#allocation2 + $0xa4] sm:$0x1] }
  0xa9   : > { %828 = vst [vmem:[#allocation2 + $0x30] sm:$0x1] %v827_v23  ;;  %896 = vst [vmem:[#allocation2 + $0x80] sm:$0x1] %v895_v16  ;;  %v850_v21 = vld [vmem:[#allocation2 + $0x90] sm:$0x1] }
  0xaa   : > { %7005 = vmatmul.mubr.bf16.vlgmr.msra.gmra.mrb[0].mxu0 %v456_v24  ;;  %7021 = vmatmul.mubr.bf16.vlgmr.msra.gmra.mrb[0].mxu1 %v464_v27  ;;  %v824_v24 = vsel %vm8074_vm2, 0, %v823_v22  ;;  %v7260_v27 = vld [vmem:[#allocation9 + $0x28] sm:$0xff]   ;;  %v851_v22 = vsel %vm8074_vm2, 0, %v850_v21  ;;  %v906_v36 = vld [vmem:[#allocation2 + $0xb0] sm:$0x1] }
  0xab   : > { %7008 = vmatprep.mubr.bf16.mxu0 %v457_v26  ;;  %7024 = vmatprep.mubr.bf16.mxu1 %v465_v30  ;;  %v7259_v26 = vld [vmem:[#allocation9 + $0xe0] sm:$0xff]   ;;  %825 = vst [vmem:[#allocation2 + $0x24] sm:$0x1] %v824_v24  ;;  %v7263_v30 = vld [vmem:[#allocation9 + $0xe8] sm:$0xff]   ;;  %852 = vst [vmem:[#allocation2 + $0x90] sm:$0x1] %v851_v22 }
  0xac   : > { %6493 = vmatpush3.bf16.msra.mxu1 %v7241_v25  ;;  %6605 = vmatpush3.bf16.msra.mxu0 %v7245_v29  ;;  %v7258_v25 = vld [vmem:[#allocation9 + $0x68] sm:$0xff]   ;;  %v7262_v29 = vld [vmem:[#allocation9 + $0x70] sm:$0xff]   ;;  %v900_v24 = vld [vmem:[#allocation2 + $0x98] sm:$0x1] }
  0xad   : > { %6494 = vmatprep.subr.bf16.mxu1 %v7242_v28  ;;  %6606 = vmatprep.subr.bf16.mxu0 %v7247_v63  ;;  %v7261_v28 = vld [vmem:[#allocation9 + $0xa0] sm:$0xff]   ;;  %v838_v63 = vld [vmem:[#allocation2 + $0x60] sm:$0x1]  ;;  %v847_v23 = vld [vmem:[#allocation2 + $0x84] sm:$0x1] }
  0xae   : > { %v859_v44 = vld [vmem:[#allocation2 + $0xb4] sm:$0x1]  ;;  %v8156_v9 = vld [vmem:[%s9043_s3] ss:$0 sm:$0xff] }
  0xaf   : > { %v860_v45 = vsel %vm8074_vm2, 0, %v859_v44 }
  0xb0   : > { %6495 = vmatpush3.bf16.msra.mxu1 %v7244_v37  ;;  %6607 = vmatpush3.bf16.msra.mxu0 %v7249_v1  ;;  %v7266_v37 = vld [vmem:[#allocation9 + $0x78] sm:$0xff]   ;;  %861 = vst [vmem:[#allocation2 + $0xb4] sm:$0x1] %v860_v45 }
  0xb1   : > { %6496 = vmatprep.subr.bf16.mxu1 %v7246_v62  ;;  %6608 = vmatprep.subr.bf16.mxu0 %v7251_v3  ;;  %v7277_v62 = vld [vmem:[#allocation9 + $0x100] sm:$0xff]   ;;  %v835_v1 = vld [vmem:[#allocation2 + $0x54] sm:$0x1]  ;;  %v888_v3 = vld [vmem:[#allocation2 + $0x68] sm:$0x1] }
  0xb2   : > { %7009 = vmatmul.mubr.bf16.gmra.mrb[4].mxu0 %v458_v40  ;;  %7025 = vmatmul.mubr.bf16.gmra.mrb[4].mxu1 %v466_v42  ;;  %v7267_v40 = vld [vmem:[#allocation9 + $0xf0] sm:$0xff]  }
  0xb3   : > { %7012 = vmatprep.mubr.bf16.mxu0 %v459_v41  ;;  %7028 = vmatprep.mubr.bf16.mxu1 %v467_v43  ;;  %v7268_v41 = vld [vmem:[#allocation9 + $0x38] sm:$0xff]   ;;  %v7269_v42 = vld [vmem:[#allocation9 + $0xb0] sm:$0xff]   ;;  %v1769_v43 = vshrl.u32 %v7270_v33, 16  ;;  %v853_v33 = vld [vmem:[#allocation2 + $0x9c] sm:$0x1] }
  0xb4   : > { %6497 = vmatpush3.bf16.msra.mxu1 %v7248_v0  ;;  %6609 = vmatpush3.bf16.msra.mxu0 %v7253_v5  ;;  %v839_v0 = vsel %vm8074_vm2, 0, %v838_v63  ;;  %v885_v5 = vld [vmem:[#allocation2 + $0x5c] sm:$0x1]  ;;  %v854_v35 = vsel %vm8074_vm2, 0, %v853_v33 }
  0xb5   : > { %6498 = vmatprep.subr.bf16.mxu1 %v7250_v2  ;;  %6610 = vmatprep.subr.bf16.mxu0 %v7255_v14  ;;  %v1774_v51 = vor.u32 %v1773_v46, %v1769_v43  ;;  %840 = vst [vmem:[#allocation2 + $0x60] sm:$0x1] %v839_v0  ;;  %v836_v2 = vsel %vm8074_vm2, 0, %v835_v1  ;;  %v886_v7 = vsel %vm8081_vm4, 0, %v885_v5  ;;  %855 = vst [vmem:[#allocation2 + $0x9c] sm:$0x1] %v854_v35 }
  0xb6   : > { %837 = vst [vmem:[#allocation2 + $0x54] sm:$0x1] %v836_v2  ;;  %887 = vst [vmem:[#allocation2 + $0x5c] sm:$0x1] %v886_v7  ;;  %v912_v46 = vld [vmem:[#allocation2 + $0xc8] sm:$0x1] }
  0xb8   : > { %6499 = vmatpush3.bf16.msra.mxu1 %v7252_v4  ;;  %6611 = vmatpush3.bf16.msra.mxu0 %v7257_v20  ;;  %v889_v4 = vsel %vm8081_vm4, 0, %v888_v3  ;;  %v7305_v20 = vld [vmem:[#allocation9 + $0x110] sm:$0xff]  }
  0xb9   : > { %6500 = vmatprep.subr.bf16.mxu1 %v7254_v13  ;;  %6612 = vmatprep.subr.bf16.mxu0 %v7259_v26  ;;  %890 = vst [vmem:[#allocation2 + $0x68] sm:$0x1] %v889_v4  ;;  %v841_v13 = vld [vmem:[#allocation2 + $0x6c] sm:$0x1]  ;;  %v901_v26 = vsel %vm8081_vm4, 0, %v900_v24 }
  0xba   : > { %7013 = vmatmul.mubr.bf16.gmra.mrb[8].mxu0 %v460_v52  ;;  %7029 = vmatmul.mubr.bf16.gmra.mrb[8].mxu1 %v468_v54  ;;  %v1779_v52 = vsel %vm1767_vm5, %v1774_v51, %v1778_v47  ;;  %v842_v14 = vsel %vm8074_vm2, 0, %v841_v13  ;;  %902 = vst [vmem:[#allocation2 + $0x98] sm:$0x1] %v901_v26  ;;  %v909_v47 = vld [vmem:[#allocation2 + $0xbc] sm:$0x1]  ;;  %v7351_v51 = vld [vmem:[#allocation9 + $0x128] sm:$0xff]  }
  0xbb   : > { %7016 = vmatprep.mubr.bf16.mxu0 %v461_v53  ;;  %7032 = vmatprep.mubr.bf16.mxu1 %v469_v55  ;;  %v832_v53 = vld [vmem:[#allocation2 + $0x48] sm:$0x1]  ;;  %v829_v55 = vld [vmem:[#allocation2 + $0x3c] sm:$0x1]  ;;  %843 = vst [vmem:[#allocation2 + $0x6c] sm:$0x1] %v842_v14 }
  0xbc   : > { %6501 = vmatpush3.bf16.msra.mxu1 %v7256_v18  ;;  %6613 = vmatpush3.bf16.msra.mxu0 %v7261_v28  ;;  %v833_v54 = vsel %vm8074_vm2, 0, %v832_v53  ;;  %v830_v57 = vsel %vm8074_vm2, 0, %v829_v55  ;;  %v892_v18 = vsel %vm8081_vm4, 0, %v891_v17  ;;  %v7317_v28 = vld [vmem:[#allocation9 + $0x158] sm:$0xff]  }
  0xbd   : > { %6502 = vmatprep.subr.bf16.mxu1 %v7258_v25  ;;  %6614 = vmatprep.subr.bf16.mxu0 %v7263_v30  ;;  %834 = vst [vmem:[#allocation2 + $0x48] sm:$0x1] %v833_v54  ;;  %831 = vst [vmem:[#allocation2 + $0x3c] sm:$0x1] %v830_v57  ;;  %v848_v25 = vsel %vm8074_vm2, 0, %v847_v23 }
  0xbe   : > { %893 = vst [vmem:[#allocation2 + $0x74] sm:$0x1] %v892_v18  ;;  %849 = vst [vmem:[#allocation2 + $0x84] sm:$0x1] %v848_v25  ;;  %v8151_v54 = vld [vmem:[%s9042_s2] ss:$0 sm:$0xff] }
  0xbf   : > { %v7279_v53 = vld [vmem:[#allocation2 + $0x8] ss:$0 sps:$4 sm:$0x11]  }
  0xc0   : > { %6503 = vmatpush3.bf16.msra.mxu1 %v7260_v27  ;;  %6615 = vmatpush3.bf16.msra.mxu0 %v7265_v32  ;;  %v897_v27 = vld [vmem:[#allocation2 + $0x8c] sm:$0x1]  ;;  %v7331_v32 = vld [vmem:[#allocation9 + $0x1c0] sm:$0xff]   ;;  %v2170_v56 = vrot.slane %v7279_v53, 1 }
  0xc1   : > { %6504 = vmatprep.subr.bf16.mxu1 %v7262_v29  ;;  %6616 = vmatprep.subr.bf16.mxu0 %v7267_v40  ;;  %v7319_v29 = vld [vmem:[#allocation9 + $0x118] sm:$0xff]   ;;  %v898_v30 = vsel %vm8081_vm4, 0, %v897_v27  ;;  %v7335_v40 = vld [vmem:[#allocation9 + $0x120] sm:$0xff]  }
  0xc2   : > { %7017 = vmatmul.mubr.bf16.gmra.mrb[12].mxu0 %v462_v60  ;;  %7033 = vmatmul.mubr.bf16.gmra.mrb[12].mxu1 %v470_v61  ;;  %v880_v60 = vsel %vm8081_vm4, 0, %v879_v59  ;;  %v7275_v61 = vld [vmem:[#allocation9 + $0x140] sm:$0xff]   ;;  %899 = vst [vmem:[#allocation2 + $0x8c] sm:$0x1] %v898_v30 }
  0xc3   : > { %4602 = vmatprep.mubr.bf16.mxu1 %v1779_v52  ;;  %881 = vst [vmem:[#allocation2 + $0x44] sm:$0x1] %v880_v60  ;;  %v7278_v52 = vld [vmem:[#allocation2] sm:$0xfe]  }
  0xc4   : > { %6505 = vmatpush3.bf16.msra.mxu1 %v7264_v31  ;;  %6617 = vmatpush3.bf16.msra.mxu0 %v7269_v42  ;;  %v856_v31 = vld [vmem:[#allocation2 + $0xa8] sm:$0x1]  ;;  %v862_v42 = vld [vmem:[#allocation2 + $0xc0] sm:$0x1]  ;;  %v2169_v55 = vrot.slane %v7278_v52, 1 }
  0xc5   : > { %6506 = vmatprep.subr.bf16.mxu1 %v7266_v37  ;;  %6618 = vmatprep.subr.bf16.mxu0 %v7273_v48  ;;  %v857_v34 = vsel %vm8074_vm2, 0, %v856_v31  ;;  %v907_v37 = vsel %vm8081_vm4, 0, %v906_v36  ;;  %v863_v43 = vsel %vm8074_vm2, 0, %v862_v42  ;;  %v913_v48 = vsel %vm8081_vm4, 0, %v912_v46  ;;  %v1342_v52 = vld [vmem:[#allocation2 + $0x18] sm:$0xf] }
  0xc6   : > { %858 = vst [vmem:[#allocation2 + $0xa8] sm:$0x1] %v857_v34  ;;  %908 = vst [vmem:[#allocation2 + $0xb0] sm:$0x1] %v907_v37  ;;  %v8164_v7 = vsel %vm2168_vm6, %v2169_v55, %v2170_v56 }
  0xc7   : > { %864 = vst [vmem:[#allocation2 + $0xc0] sm:$0x1] %v863_v43  ;;  %914 = vst [vmem:[#allocation2 + $0xc8] sm:$0x1] %v913_v48 }
  0xc8   : > { %6507 = vmatpush3.bf16.msra.mxu1 %v7268_v41  ;;  %6619 = vmatpush3.bf16.msra.mxu0 %v7274_v50  ;;  %v904_v41 = vsel %vm8081_vm4, 0, %v903_v38  ;;  %v7349_v50 = vld [vmem:[#allocation9 + $0x168] sm:$0xff]  }
  0xc9   : > { %6716 = vmatprep.subr.bf16.mxu1 %v7275_v61  ;;  %6828 = vmatprep.subr.bf16.mxu0 %v7331_v32  ;;  %905 = vst [vmem:[#allocation2 + $0xa4] sm:$0x1] %v904_v41 }
  0xcb   : > { %4603 = vmatmul.mubr.bf16.vlgmr.msra.gmra.mrb[16].mxu1 %v7272_v49  ;;  %v910_v49 = vsel %vm8081_vm4, 0, %v909_v47 }
  0xcc   : > { %6717 = vmatpush3.bf16.msra.mxu1 %v7277_v62  ;;  %911 = vst [vmem:[#allocation2 + $0xbc] sm:$0x1] %v910_v49  ;;  %v7367_v62 = vld [vmem:[#allocation9 + $0x130] sm:$0xff]  }
  0xcd   : > { %6718 = vmatprep.subr.bf16.mxu1 %v7289_v8 }
  0xd0   : > { %6719 = vmatpush3.bf16.msra.mxu1 %v7291_v10 }
  0xd1   : > { %6720 = vmatprep.subr.bf16.mxu1 %v7303_v19 }
  0xd4   : > { %6721 = vmatpush3.bf16.msra.mxu1 %v7305_v20 }
  0xd5   : > { %6722 = vmatprep.subr.bf16.mxu1 %v7317_v28 }
  0xd8   : > { %6723 = vmatpush3.bf16.msra.mxu1 %v7319_v29 }
  0xd9   : > { %6724 = vmatprep.subr.bf16.mxu1 %v7333_v39 }
  0xdc   : > { %6725 = vmatpush3.bf16.msra.mxu1 %v7335_v40 }
  0xdd   : > { %6726 = vmatprep.subr.bf16.mxu1 %v7349_v50 }
  0xe0   : > { %6727 = vmatpush3.bf16.msra.mxu1 %v7351_v51 }
  0xe1   : > { %6728 = vmatprep.subr.bf16.mxu1 %v7365_v58 }
  0xe4   : > { %6729 = vmatpush3.bf16.msra.mxu1 %v7367_v62 }
 0x17d   : > { %v7006_v57 = vpop.f32.mrb[0].mxu0  ;;  %v7022_v61 = vpop.f32.mrb[0].mxu1 }
 0x17e   : > { %v705_v59 = vmul.f32 %v7006_v57, %v8151_v54  ;;  %v569_v60 = vpop.f32.mrb[1].mxu0  ;;  %v721_v1 = vmul.f32 %v7022_v61, %v8151_v54  ;;  %v633_v2 = vpop.f32.mrb[1].mxu1  ;;  %v1335_v61 = vld [vmem:[#allocation2 + $0xc] sm:$0xf] }
 0x17f   : > { %v703_v63 = vmul.f32 %v8151_v54, %v569_v60  ;;  %v7007_v0 = vpop.f32.mrb[2].mxu0  ;;  %v719_v8 = vmul.f32 %v8151_v54, %v633_v2  ;;  %v7023_v10 = vpop.f32.mrb[2].mxu1 }
 0x180   : > { %v744_v3 = vadd.f32 %v8156_v9, %v705_v59  ;;  %v706_v4 = vmul.f32 %v7007_v0, %v8151_v54  ;;  %v572_v5 = vpop.f32.mrb[3].mxu0  ;;  %v760_v13 = vadd.f32 %v8156_v9, %v721_v1  ;;  %v722_v14 = vmul.f32 %v7023_v10, %v8151_v54  ;;  %v636_v15 = vpop.f32.mrb[3].mxu1 }
 0x181   : > { %v742_v11 = vadd.f32 %v8156_v9, %v703_v63  ;;  %v704_v12 = vmul.f32 %v8151_v54, %v572_v5  ;;  %v8173_v18 = vadd.f32 %v8156_v9, %v719_v8  ;;  %v720_v19 = vmul.f32 %v8151_v54, %v636_v15 }
 0x182   : > { %v776_v16 = vmax.f32 %v744_v3, 0.0  ;;  %v745_v17 = vadd.f32 %v8156_v9, %v706_v4  ;;  %v792_v22 = vmax.f32 %v760_v13, 0.0  ;;  %v8178_v23 = vadd.f32 %v8156_v9, %v722_v14  ;;  %v1346_v3 = vld [vmem:[#allocation2 + $0x20] sm:$0x1] }
 0x183   : > { %v774_v20 = vmax.f32 %v742_v11, 0.0  ;;  %v743_v21 = vadd.f32 %v8156_v9, %v704_v12  ;;  %v790_v26 = vmax.f32 %v8173_v18, 0.0  ;;  %v8182_v27 = vadd.f32 %v8156_v9, %v720_v19  ;;  %v1339_v12 = vld [vmem:[#allocation2 + $0x14] sm:$0x1] }
 0x184   : > { %v6437_v24 = vpack.c.bf16 %v776_v16, %v776_v16  ;;  %v777_v25 = vmax.f32 %v745_v17, 0.0  ;;  %v8184_v31 = vpack.c.bf16 %v792_v22, %v792_v22  ;;  %v793_v32 = vmax.f32 %v8178_v23, 0.0 }
 0x185   : > { %v6435_v28 = vpack.c.bf16 %v774_v20, %v774_v20  ;;  %v775_v29 = vmax.f32 %v743_v21, 0.0  ;;  %v7010_v30 = vpop.f32.mrb[4].mxu0  ;;  %v8188_v38 = vpop.f32.mrb[4].mxu1  ;;  %v7381_v20 = vld [vmem:[#allocation9 + $0x178] sm:$0xff]  }
 0x186   : > { %v1031_v33 = vshrl.u32 %v6437_v24, 16  ;;  %v1034_v34 = vshll.u32 %v6437_v24, 16  ;;  %v6438_v35 = vpack.c.bf16 %v777_v25, %v777_v25  ;;  %v709_v36 = vmul.f32 %v7010_v30, %v8151_v54  ;;  %v585_v37 = vpop.f32.mrb[5].mxu0  ;;  %v8191_v44 = vpop.f32.mrb[5].mxu1  ;;  %v7383_v30 = vld [vmem:[#allocation9 + $0x138] sm:$0xff]   ;;  %6730 = vmatprep.subr.bf16.mxu1 %v7381_v20  ;;  %v7347_v20 = vld [vmem:[#allocation9 + $0x1c8] sm:$0xff]  }
 0x187   : > { %v1014_v39 = vshrl.u32 %v6435_v28, 16  ;;  %v1017_v40 = vshll.u32 %v6435_v28, 16  ;;  %v6436_v41 = vpack.c.bf16 %v775_v29, %v775_v29  ;;  %v707_v42 = vmul.f32 %v8151_v54, %v585_v37  ;;  %v7011_v43 = vpop.f32.mrb[6].mxu0  ;;  %v8194_v50 = vpop.f32.mrb[6].mxu1  ;;  %6731 = vmatpush3.bf16.msra.mxu1 %v7383_v30 }
 0x188   : > { %v1033_v45 = vrot.slane %v1031_v33, 7  ;;  %v1039_v46 = vshrl.u32 %v6438_v35, 16  ;;  %v1042_v47 = vshll.u32 %v6438_v35, 16  ;;  %v748_v48 = vadd.f32 %v8156_v9, %v709_v36  ;;  %v588_v49 = vpop.f32.mrb[7].mxu0  ;;  %v8203_v58 = vpop.f32.mrb[7].mxu1 }
 0x189   : > { %v1016_v53 = vrot.slane %v1014_v39, 7  ;;  %v1022_v55 = vshrl.u32 %v6436_v41, 16  ;;  %v1025_v56 = vshll.u32 %v6436_v41, 16  ;;  %v746_v57 = vadd.f32 %v8156_v9, %v707_v42 }
 0x18a   : > { %v1036_v59 = vor.u32 %v1034_v34, %v1033_v45  ;;  %v1037_v60 = vrot.slane %v1033_v45, 4  ;;  %v1041_v62 = vrot.slane %v1039_v46, 7  ;;  %v780_v63 = vmax.f32 %v748_v48, 0.0  ;;  %v1356_v48 = vld [vmem:[#allocation2 + $0x30] sm:$0xf] }
 0x18b   : > { %v1019_v0 = vor.u32 %v1017_v40, %v1016_v53  ;;  %v1020_v1 = vrot.slane %v1016_v53, 4  ;;  %v1024_v4 = vrot.slane %v1022_v55, 7  ;;  %v778_v5 = vmax.f32 %v746_v57, 0.0 }
 0x18c   : > { %v1343_v8 = vsel %vm8198_vm9, %v1036_v59, %v1342_v52  ;;  %v1044_v10 = vor.u32 %v1042_v47, %v1041_v62  ;;  %v1046_v11 = vrot.slane %v1041_v62, 4  ;;  %v6441_v13 = vpack.c.bf16 %v780_v63, %v780_v63  ;;  %v1349_v59 = vld [vmem:[#allocation2 + $0x24] sm:$0xf] }
 0x18d   : > { %1344 = vst [vmem:[#allocation2 + $0x18] sm:$0xf] %v1343_v8  ;;  %v1336_v14 = vsel %vm8198_vm9, %v1019_v0, %v1335_v61  ;;  %v1027_v15 = vor.u32 %v1025_v56, %v1024_v4  ;;  %v1029_v16 = vrot.slane %v1024_v4, 4  ;;  %v6439_v17 = vpack.c.bf16 %v778_v5, %v778_v5  ;;  %v7014_v19 = vpop.f32.mrb[8].mxu0  ;;  %v8219_v29 = vpop.f32.mrb[8].mxu1 }
 0x18e   : > { %1337 = vst [vmem:[#allocation2 + $0xc] sm:$0xf] %v1336_v14  ;;  %v1045_v21 = vsel %vm8207_vm10, %v1037_v60, %v1044_v10  ;;  %v1347_v22 = vsel %vm8074_vm2, %v1046_v11, %v1346_v3  ;;  %v1065_v24 = vshrl.u32 %v6441_v13, 16  ;;  %v1068_v25 = vshll.u32 %v6441_v13, 16  ;;  %v601_v28 = vpop.f32.mrb[9].mxu0  ;;  %v8225_v39 = vpop.f32.mrb[9].mxu1 }
 0x18f   : > { %1345 = vst [vmem:[#allocation2 + $0x1c] sm:$0xf] %v1045_v21  ;;  %1348 = vst [vmem:[#allocation2 + $0x20] sm:$0x1] %v1347_v22  ;;  %v1028_v33 = vsel %vm8207_vm10, %v1020_v1, %v1027_v15  ;;  %v1340_v34 = vsel %vm8074_vm2, %v1029_v16, %v1339_v12  ;;  %v1048_v35 = vshrl.u32 %v6439_v17, 16  ;;  %v1051_v36 = vshll.u32 %v6439_v17, 16 }
 0x190   : > { %v7015_v37 = vpop.f32.mrb[10].mxu0  ;;  %1338 = vst [vmem:[#allocation2 + $0x10] sm:$0xf] %v1028_v33  ;;  %1341 = vst [vmem:[#allocation2 + $0x14] sm:$0x1] %v1340_v34  ;;  %v8227_v40 = vrot.slane %v1065_v24, 7  ;;  %v710_v41 = vmul.f32 %v7011_v43, %v8151_v54  ;;  %v708_v42 = vmul.f32 %v8151_v54, %v588_v49  ;;  %v713_v45 = vmul.f32 %v7014_v19, %v8151_v54 }
 0x191   : > { %v604_v46 = vpop.f32.mrb[11].mxu0  ;;  %v8232_v47 = vpop.f32.mrb[10].mxu1  ;;  %v8234_v52 = vrot.slane %v1048_v35, 7  ;;  %v711_v53 = vmul.f32 %v8151_v54, %v601_v28  ;;  %v714_v55 = vmul.f32 %v7015_v37, %v8151_v54  ;;  %v7332_v14 = vld [vmem:[#allocation9 + $0x180] sm:$0xff]   ;;  %v8258_v19 = vpack.c.bf16 %v790_v26, %v790_v26  ;;  %v1353_v37 = vld [vmem:[#allocation2 + $0x2c] sm:$0x1] }
 0x192   : > { %v712_v56 = vmul.f32 %v8151_v54, %v604_v46  ;;  %v8239_v57 = vpop.f32.mrb[11].mxu1  ;;  %v1070_v43 = vor.u32 %v1068_v25, %v8227_v40  ;;  %v1071_v49 = vrot.slane %v8227_v40, 4  ;;  %v749_v60 = vadd.f32 %v8156_v9, %v710_v41 }
 0x193   : > { %v747_v61 = vadd.f32 %v8156_v9, %v708_v42  ;;  %v1053_v62 = vor.u32 %v1051_v36, %v8234_v52  ;;  %v1054_v63 = vrot.slane %v8234_v52, 4  ;;  %v752_v0 = vadd.f32 %v8156_v9, %v713_v45  ;;  %v1360_v36 = vld [vmem:[#allocation2 + $0x38] sm:$0x1]  ;;  %v1374_v52 = vld [vmem:[#allocation2 + $0x50] sm:$0x1] }
 0x194   : > { %v750_v1 = vadd.f32 %v8156_v9, %v711_v53  ;;  %v1357_v3 = vsel %vm8198_vm9, %v1070_v43, %v1356_v48  ;;  %v781_v4 = vmax.f32 %v749_v60, 0.0  ;;  %v753_v8 = vadd.f32 %v8156_v9, %v714_v55  ;;  %v7348_v48 = vld [vmem:[#allocation9 + $0x188] sm:$0xff]   ;;  %v1370_v55 = vld [vmem:[#allocation2 + $0x48] sm:$0xf] }
 0x195   : > { %v779_v5 = vmax.f32 %v747_v61, 0.0  ;;  %1358 = vst [vmem:[#allocation2 + $0x30] sm:$0xf] %v1357_v3  ;;  %v1350_v10 = vsel %vm8198_vm9, %v1053_v62, %v1349_v59  ;;  %v784_v11 = vmax.f32 %v752_v0, 0.0  ;;  %v751_v13 = vadd.f32 %v8156_v9, %v712_v56  ;;  %v7363_v60 = vld [vmem:[#allocation9 + $0x1d0] sm:$0xff]  }
 0x196   : > { %v782_v12 = vmax.f32 %v750_v1, 0.0  ;;  %1351 = vst [vmem:[#allocation2 + $0x24] sm:$0xf] %v1350_v10  ;;  %v6442_v15 = vpack.c.bf16 %v781_v4, %v781_v4  ;;  %v785_v17 = vmax.f32 %v753_v8, 0.0  ;;  %v8263_v28 = vpack.c.bf16 %v793_v32, %v793_v32  ;;  %v7280_v45 = vld [vmem:[#allocation2 + $0x18] sm:$0xff]  }
 0x197   : > { %v6440_v16 = vpack.c.bf16 %v779_v5, %v779_v5  ;;  %v6445_v21 = vpack.c.bf16 %v784_v11, %v784_v11  ;;  %v783_v24 = vmax.f32 %v751_v13, 0.0  ;;  %v7276_v25 = vld [vmem:[#allocation2 + $0xc] sm:$0xff]   ;;  %v1363_v32 = vld [vmem:[#allocation2 + $0x3c] sm:$0xf] }
 0x198   : > { %v6443_v22 = vpack.c.bf16 %v782_v12, %v782_v12  ;;  %v1073_v30 = vshrl.u32 %v6442_v15, 16  ;;  %v1076_v33 = vshll.u32 %v6442_v15, 16  ;;  %4763 = vmatprep.mubr.bf16.mxu0 %v7276_v25  ;;  %v8265_v46 = vld [vmem:[#allocation2 + $0xc] sm:$0xff]   ;;  %v6446_v56 = vpack.c.bf16 %v785_v17, %v785_v17  ;;  %v7282_v59 = vld [vmem:[#allocation2 + $0x14] ss:$0 sps:$4 sm:$0x11]  }
 0x199   : > { %v1056_v34 = vshrl.u32 %v6440_v16, 16  ;;  %v1059_v35 = vshll.u32 %v6440_v16, 16  ;;  %v1099_v18 = vshrl.u32 %v6445_v21, 16  ;;  %v1102_v41 = vshll.u32 %v6445_v21, 16  ;;  %4764 = vmatmul.mubr.bf16.vlgmr.msra.gmra.mrb[16].mxu0 %v8164_v7  ;;  %v8276_v3 = vld [vmem:[#allocation2 + $0x18] sm:$0xff]   ;;  %v7018_v16 = vpop.f32.mrb[12].mxu0 }
 0x19a   : > { %v1082_v26 = vshrl.u32 %v6443_v22, 16  ;;  %v1085_v42 = vshll.u32 %v6443_v22, 16  ;;  %v1075_v53 = vrot.slane %v1073_v30, 7  ;;  %v8267_v43 = vpack.c.bf16 %v783_v24, %v783_v24  ;;  %4771 = vmatprep.mubr.bf16.mxu0 %v7280_v45  ;;  %6829 = vmatpush3.bf16.msra.mxu0 %v7332_v14  ;;  %v7285_v15 = vld [vmem:[#allocation2 + $0x20] ss:$0 sps:$4 sm:$0x11]  }
 0x19b   : > { %v1058_v23 = vrot.slane %v1056_v34, 7  ;;  %v8270_v61 = vrot.slane %v1099_v18, 7  ;;  %v1781_v0 = vshrl.u32 %v8265_v46, 16  ;;  %v1783_v1 = vshll.u32 %v8265_v46, 16  ;;  %6830 = vmatprep.subr.bf16.mxu0 %v7347_v20  ;;  %v7364_v17 = vld [vmem:[#allocation9 + $0x190] sm:$0xff]  }
 0x19c   : > { %v8272_v62 = vrot.slane %v1082_v26, 7  ;;  %v1078_v4 = vor.u32 %v1076_v33, %v1075_v53  ;;  %v1080_v5 = vrot.slane %v1075_v53, 4  ;;  %v1107_v24 = vshrl.u32 %v6446_v56, 16  ;;  %v7286_v30 = vld [vmem:[#allocation2 + $0xc] sm:$0xfe]  }
 0x19d   : > { %v1061_v8 = vor.u32 %v1059_v35, %v1058_v23  ;;  %v1063_v10 = vrot.slane %v1058_v23, 4  ;;  %v1104_v7 = vor.u32 %v1102_v41, %v8270_v61  ;;  %v1105_v11 = vrot.slane %v8270_v61, 4  ;;  %v1367_v41 = vld [vmem:[#allocation2 + $0x44] sm:$0x1] }
 0x19e   : > { %v1087_v12 = vor.u32 %v1085_v42, %v8272_v62  ;;  %v1088_v13 = vrot.slane %v8272_v62, 4  ;;  %v1079_v14 = vsel %vm8207_vm10, %v1071_v49, %v1078_v4  ;;  %v1361_v21 = vsel %vm8074_vm2, %v1080_v5, %v1360_v36  ;;  %6831 = vmatpush3.bf16.msra.mxu0 %v7348_v48  ;;  %v617_v36 = vpop.f32.mrb[13].mxu0  ;;  %v8302_v48 = vpop.f32.mrb[12].mxu1  ;;  %v7380_v4 = vld [vmem:[#allocation9 + $0x198] sm:$0xff]  }
 0x19f   : > { %v1062_v20 = vsel %vm8207_vm10, %v1054_v63, %v1061_v8  ;;  %v1354_v22 = vsel %vm8074_vm2, %v1063_v10, %v1353_v37  ;;  %1359 = vst [vmem:[#allocation2 + $0x34] sm:$0xf] %v1079_v14  ;;  %1362 = vst [vmem:[#allocation2 + $0x38] sm:$0x1] %v1361_v21  ;;  %v1371_v40 = vsel %vm8198_vm9, %v1104_v7, %v1370_v55  ;;  %v1110_v25 = vshll.u32 %v6446_v56, 16  ;;  %v7379_v37 = vld [vmem:[#allocation9 + $0x1d8] sm:$0xff]  }
 0x1a0   : > { %1352 = vst [vmem:[#allocation2 + $0x28] sm:$0xf] %v1062_v20  ;;  %1355 = vst [vmem:[#allocation2 + $0x2c] sm:$0x1] %v1354_v22  ;;  %v1364_v49 = vsel %vm8198_vm9, %v1087_v12, %v1363_v32  ;;  %v1090_v63 = vshrl.u32 %v8267_v43, 16  ;;  %v1093_v33 = vshll.u32 %v8267_v43, 16  ;;  %6832 = vmatprep.subr.bf16.mxu0 %v7363_v60 }
 0x1a1   : > { %1372 = vst [vmem:[#allocation2 + $0x48] sm:$0xf] %v1371_v40  ;;  %1365 = vst [vmem:[#allocation2 + $0x3c] sm:$0xf] %v1364_v49  ;;  %v1785_v34 = vrot.slane %v1783_v1, 1  ;;  %v1788_v35 = vshll.u32 %v7282_v59, 16 }
 0x1a2   : > { %v1109_v18 = vrot.slane %v1107_v24, 7  ;;  %v1793_v26 = vshrl.u32 %v8276_v3, 16  ;;  %v1795_v42 = vshll.u32 %v8276_v3, 16  ;;  %v1800_v45 = vshll.u32 %v7285_v15, 16  ;;  %v7019_v46 = vpop.f32.mrb[14].mxu0  ;;  %v7283_v32 = vld [vmem:[#allocation2 + $0xc] sm:$0xff]   ;;  %6833 = vmatpush3.bf16.msra.mxu0 %v7364_v17 }
 0x1a3   : > { %v1092_v53 = vrot.slane %v1090_v63, 7  ;;  %v1786_v23 = vor.u32 %v1785_v34, %v1781_v0  ;;  %v1790_v55 = vrot.slane %v1788_v35, 1  ;;  %v7287_v56 = vld [vmem:[#allocation2 + $0x14] ss:$0 sps:$4 sm:$0x11]   ;;  %v2172_v43 = vrot.slane %v7286_v30, 1  ;;  %6834 = vmatprep.subr.bf16.mxu0 %v7379_v37 }
 0x1a4   : > { %v1112_v59 = vor.u32 %v1110_v25, %v1109_v18  ;;  %v1114_v61 = vrot.slane %v1109_v18, 4  ;;  %v1797_v60 = vrot.slane %v1795_v42, 1  ;;  %v1802_v62 = vrot.slane %v1800_v45, 1  ;;  %v620_v1 = vpop.f32.mrb[15].mxu0  ;;  %v8316_v22 = vpop.f32.mrb[13].mxu1 }
 0x1a5   : > { %v1095_v5 = vor.u32 %v1093_v33, %v1092_v53  ;;  %v1097_v8 = vrot.slane %v1092_v53, 4  ;;  %v1791_v3 = vsel %vm1767_vm5, %v1786_v23, %v1790_v55  ;;  %v2173_v10 = vrot.slane %v7287_v56, 1  ;;  %v7295_v63 = vld [vmem:[#allocation2 + $0x20] ss:$0 sps:$4 sm:$0x11]   ;;  %v7290_v55 = vld [vmem:[#allocation2 + $0x18] sm:$0xff]  }
 0x1a6   : > { %v1113_v0 = vsel %vm8207_vm10, %v1105_v11, %v1112_v59  ;;  %v1375_v7 = vsel %vm8074_vm2, %v1114_v61, %v1374_v52  ;;  %4610 = vmatprep.mubr.bf16.mxu1 %v1791_v3  ;;  %v1798_v12 = vor.u32 %v1797_v60, %v1793_v26  ;;  %v717_v15 = vmul.f32 %v7018_v16, %v8151_v54  ;;  %v7294_v52 = vld [vmem:[#allocation2 + $0x18] sm:$0xfe]  }
 0x1a7   : > { %1373 = vst [vmem:[#allocation2 + $0x4c] sm:$0xf] %v1113_v0  ;;  %1376 = vst [vmem:[#allocation2 + $0x50] sm:$0x1] %v1375_v7  ;;  %v1096_v17 = vsel %vm8207_vm10, %v1088_v13, %v1095_v5  ;;  %v1368_v14 = vsel %vm8074_vm2, %v1097_v8, %v1367_v41  ;;  %4611 = vmatmul.mubr.bf16.gmra.mrb[20].mxu1 %v7283_v32  ;;  %v2174_v21 = vsel %vm2168_vm6, %v2172_v43, %v2173_v10  ;;  %v7288_v20 = vld [vmem:[#allocation2 + $0x24] sm:$0xff]   ;;  %v7298_v0 = vld [vmem:[#allocation2 + $0x30] sm:$0xff]  }
 0x1a8   : > { %v715_v11 = vmul.f32 %v8151_v54, %v617_v36  ;;  %1366 = vst [vmem:[#allocation2 + $0x40] sm:$0xf] %v1096_v17  ;;  %1369 = vst [vmem:[#allocation2 + $0x44] sm:$0x1] %v1368_v14  ;;  %v1803_v16 = vsel %vm1767_vm5, %v1798_v12, %v1802_v62  ;;  %4772 = vmatmul.mubr.bf16.gmra.mrb[20].mxu0 %v2174_v21  ;;  %v756_v40 = vadd.f32 %v8156_v9, %v717_v15  ;;  %v7292_v24 = vld [vmem:[#allocation2 + $0x24] sm:$0xff]  }
 0x1a9   : > { %v718_v13 = vmul.f32 %v7019_v46, %v8151_v54  ;;  %v716_v49 = vmul.f32 %v8151_v54, %v620_v1  ;;  %v7293_v25 = vld [vmem:[#allocation2 + $0x2c] ss:$0 sps:$4 sm:$0x11]   ;;  %4618 = vmatprep.mubr.bf16.mxu1 %v1803_v16  ;;  %4779 = vmatprep.mubr.bf16.mxu0 %v7288_v20  ;;  %v725_v33 = vmul.f32 %v8188_v38, %v8151_v54  ;;  %v1805_v18 = vshrl.u32 %v7292_v24, 16  ;;  %v7296_v1 = vld [vmem:[#allocation2 + $0x30] sm:$0xff]  }
 0x1aa   : > { %v754_v30 = vadd.f32 %v8156_v9, %v715_v11  ;;  %v8327_v34 = vmul.f32 %v8151_v54, %v8191_v44  ;;  %v788_v35 = vmax.f32 %v756_v40, 0.0  ;;  %6835 = vmatpush3.bf16.msra.mxu0 %v7380_v4  ;;  %v1807_v26 = vshll.u32 %v7292_v24, 16  ;;  %v1384_v4 = vld [vmem:[#allocation2 + $0x60] sm:$0xf]  ;;  %v1377_v15 = vld [vmem:[#allocation2 + $0x54] sm:$0xf] }
 0x1ab   : > { %v757_v36 = vadd.f32 %v8156_v9, %v718_v13  ;;  %v755_v37 = vadd.f32 %v8156_v9, %v716_v49  ;;  %v1812_v42 = vshll.u32 %v7293_v25, 16  ;;  %v2175_v45 = vrot.slane %v7294_v52, 1  ;;  %v7299_v7 = vld [vmem:[#allocation2 + $0x38] ss:$0 sps:$4 sm:$0x11]  }
 0x1ac   : > { %v786_v41 = vmax.f32 %v754_v30, 0.0  ;;  %v6449_v46 = vpack.c.bf16 %v788_v35, %v788_v35  ;;  %v2176_v38 = vrot.slane %v7295_v63, 1  ;;  %v1809_v56 = vrot.slane %v1807_v26, 1  ;;  %v1388_v11 = vld [vmem:[#allocation2 + $0x68] sm:$0x1] }
 0x1ad   : > { %v789_v53 = vmax.f32 %v757_v36, 0.0  ;;  %v787_v23 = vmax.f32 %v755_v37, 0.0  ;;  %v1814_v44 = vrot.slane %v1812_v42, 1  ;;  %v8332_v43 = vadd.f32 %v8156_v9, %v725_v33  ;;  %v1381_v52 = vld [vmem:[#allocation2 + $0x5c] sm:$0x1]  ;;  %v7297_v35 = vld [vmem:[#allocation2 + $0x24] sm:$0xff]  }
 0x1ae   : > { %v6447_v32 = vpack.c.bf16 %v786_v41, %v786_v41  ;;  %v1133_v59 = vshrl.u32 %v6449_v46, 16  ;;  %v1136_v61 = vshll.u32 %v6449_v46, 16  ;;  %v1810_v3 = vor.u32 %v1809_v56, %v1805_v18  ;;  %v7300_v18 = vld [vmem:[#allocation2 + $0x24] sm:$0xfe]  }
 0x1af   : > { %v6450_v60 = vpack.c.bf16 %v789_v53, %v789_v53  ;;  %v6448_v62 = vpack.c.bf16 %v787_v23, %v787_v23  ;;  %4619 = vmatmul.mubr.bf16.gmra.mrb[24].mxu1 %v7290_v55  ;;  %v2177_v10 = vsel %vm2168_vm6, %v2175_v45, %v2176_v38  ;;  %v1817_v13 = vshrl.u32 %v7298_v0, 16  ;;  %v7301_v46 = vld [vmem:[#allocation2 + $0x2c] ss:$0 sps:$4 sm:$0x11]  }
 0x1b0   : > { %v1116_v5 = vshrl.u32 %v6447_v32, 16  ;;  %v1119_v8 = vshll.u32 %v6447_v32, 16  ;;  %v1135_v12 = vrot.slane %v1133_v59, 7  ;;  %4780 = vmatmul.mubr.bf16.gmra.mrb[24].mxu0 %v2177_v10  ;;  %v1815_v40 = vsel %vm1767_vm5, %v1810_v3, %v1814_v44  ;;  %v7302_v32 = vld [vmem:[#allocation2 + $0x3c] sm:$0xff]   ;;  %v1398_v3 = vld [vmem:[#allocation2 + $0x78] sm:$0xf] }
 0x1b1   : > { %v1141_v17 = vshrl.u32 %v6450_v60, 16  ;;  %v1144_v14 = vshll.u32 %v6450_v60, 16  ;;  %v1124_v21 = vshrl.u32 %v6448_v62, 16  ;;  %v1127_v16 = vshll.u32 %v6448_v62, 16  ;;  %4787 = vmatprep.mubr.bf16.mxu0 %v7296_v1  ;;  %4626 = vmatprep.mubr.bf16.mxu1 %v1815_v40  ;;  %v7306_v60 = vld [vmem:[#allocation2 + $0x3c] sm:$0xff]  }
 0x1b2   : > { %v1118_v20 = vrot.slane %v1116_v5, 7  ;;  %v1138_v49 = vor.u32 %v1136_v61, %v1135_v12  ;;  %v1139_v24 = vrot.slane %v1135_v12, 4  ;;  %v1819_v36 = vshll.u32 %v7298_v0, 16 }
 0x1b3   : > { %v1143_v25 = vrot.slane %v1141_v17, 7  ;;  %v1126_v30 = vrot.slane %v1124_v21, 7  ;;  %v1824_v37 = vshll.u32 %v7299_v7, 16  ;;  %v2178_v61 = vrot.slane %v7300_v18, 1 }
 0x1b4   : > { %v1121_v63 = vor.u32 %v1119_v8, %v1118_v20  ;;  %v1122_v33 = vrot.slane %v1118_v20, 4  ;;  %v1385_v41 = vsel %vm8198_vm9, %v1138_v49, %v1384_v4  ;;  %v1821_v55 = vrot.slane %v1819_v36, 1  ;;  %v1402_v20 = vld [vmem:[#allocation2 + $0x80] sm:$0x1] }
 0x1b5   : > { %v1146_v26 = vor.u32 %v1144_v14, %v1143_v25  ;;  %v1148_v42 = vrot.slane %v1143_v25, 4  ;;  %v1129_v45 = vor.u32 %v1127_v16, %v1126_v30  ;;  %1386 = vst [vmem:[#allocation2 + $0x60] sm:$0xf] %v1385_v41  ;;  %v1131_v23 = vrot.slane %v1126_v30, 4  ;;  %v1391_v14 = vld [vmem:[#allocation2 + $0x6c] sm:$0xf] }
 0x1b6   : > { %v1378_v53 = vsel %vm8198_vm9, %v1121_v63, %v1377_v15  ;;  %v1826_v38 = vrot.slane %v1824_v37, 1  ;;  %v1822_v1 = vor.u32 %v1821_v55, %v1817_v13  ;;  %v2179_v4 = vrot.slane %v7301_v46, 1  ;;  %v8356_v16 = vpop.f32.mrb[14].mxu1  ;;  %v7304_v25 = vld [vmem:[#allocation2 + $0x30] sm:$0xff]  }
 0x1b7   : > { %1379 = vst [vmem:[#allocation2 + $0x54] sm:$0xf] %v1378_v53  ;;  %v1147_v56 = vsel %vm8207_vm10, %v1139_v24, %v1146_v26  ;;  %v1389_v44 = vsel %vm8074_vm2, %v1148_v42, %v1388_v11  ;;  %v1130_v59 = vsel %vm8207_vm10, %v1122_v33, %v1129_v45  ;;  %v1382_v62 = vsel %vm8074_vm2, %v1131_v23, %v1381_v52  ;;  %v7307_v11 = vld [vmem:[#allocation2 + $0x44] ss:$0 sps:$4 sm:$0x11]   ;;  %v8361_v63 = vpop.f32.mrb[15].mxu1 }
 0x1b8   : > { %1387 = vst [vmem:[#allocation2 + $0x64] sm:$0xf] %v1147_v56  ;;  %1390 = vst [vmem:[#allocation2 + $0x68] sm:$0x1] %v1389_v44  ;;  %4627 = vmatmul.mubr.bf16.gmra.mrb[28].mxu1 %v7297_v35  ;;  %v1167_v5 = vshrl.u32 %v8184_v31, 16  ;;  %v1170_v8 = vshll.u32 %v8184_v31, 16  ;;  %v1827_v12 = vsel %vm1767_vm5, %v1822_v1, %v1826_v38  ;;  %v2180_v15 = vsel %vm2168_vm6, %v2178_v61, %v2179_v4 }
 0x1b9   : > { %1380 = vst [vmem:[#allocation2 + $0x58] sm:$0xf] %v1130_v59  ;;  %1383 = vst [vmem:[#allocation2 + $0x5c] sm:$0x1] %v1382_v62  ;;  %v1150_v10 = vshrl.u32 %v8258_v19, 16  ;;  %v1153_v0 = vshll.u32 %v8258_v19, 16  ;;  %4634 = vmatprep.mubr.bf16.mxu1 %v1827_v12  ;;  %4788 = vmatmul.mubr.bf16.gmra.mrb[28].mxu0 %v2180_v15  ;;  %v762_v62 = vadd.f32 %v8156_v9, %v8327_v34 }
 0x1ba   : > { %v1175_v7 = vshrl.u32 %v8263_v28, 16  ;;  %v1169_v17 = vrot.slane %v1167_v5, 7  ;;  %v1178_v21 = vshll.u32 %v8263_v28, 16  ;;  %v791_v19 = vmax.f32 %v8182_v27, 0.0  ;;  %4795 = vmatprep.mubr.bf16.mxu0 %v7302_v32  ;;  %v7308_v37 = vld [vmem:[#allocation2 + $0x30] sm:$0xfe]  }
 0x1bb   : > { %v8358_v31 = vrot.slane %v1150_v10, 7  ;;  %v1829_v13 = vshrl.u32 %v7306_v60, 16  ;;  %v1831_v30 = vshll.u32 %v7306_v60, 16  ;;  %v1836_v52 = vshll.u32 %v7307_v11, 16  ;;  %v7388_v45 = vld [vmem:[#allocation9 + $0x1e0] sm:$0xff]   ;;  %v7312_v38 = vld [vmem:[#allocation2 + $0x48] sm:$0xff]  }
 0x1bc   : > { %v1177_v40 = vrot.slane %v1175_v7, 7  ;;  %v1172_v49 = vor.u32 %v1170_v8, %v1169_v17  ;;  %v1173_v24 = vrot.slane %v1169_v17, 4  ;;  %v6452_v27 = vpack.c.bf16 %v791_v19, %v791_v19  ;;  %v7309_v42 = vld [vmem:[#allocation2 + $0x38] ss:$0 sps:$4 sm:$0x11]   ;;  %v7310_v61 = vld [vmem:[#allocation2 + $0x48] sm:$0xff]   ;;  %6836 = vmatprep.subr.bf16.mxu0 %v7388_v45 }
 0x1bd   : > { %v1155_v28 = vor.u32 %v1153_v0, %v8358_v31  ;;  %v1156_v33 = vrot.slane %v8358_v31, 4  ;;  %v1833_v41 = vrot.slane %v1831_v30, 1  ;;  %v1838_v26 = vrot.slane %v1836_v52, 1  ;;  %v1395_v60 = vld [vmem:[#allocation2 + $0x74] sm:$0x1] }
 0x1be   : > { %v1180_v35 = vor.u32 %v1178_v21, %v1177_v40  ;;  %v1182_v36 = vrot.slane %v1177_v40, 4  ;;  %v1399_v18 = vsel %vm8198_vm9, %v1172_v49, %v1398_v3  ;;  %v2181_v55 = vrot.slane %v7308_v37, 1  ;;  %v7313_v0 = vld [vmem:[#allocation2 + $0x50] ss:$0 sps:$4 sm:$0x11]  }
 0x1bf   : > { %1400 = vst [vmem:[#allocation2 + $0x78] sm:$0xf] %v1399_v18  ;;  %v1392_v46 = vsel %vm8198_vm9, %v1155_v28, %v1391_v14  ;;  %v1158_v32 = vshrl.u32 %v6452_v27, 16  ;;  %v1161_v56 = vshll.u32 %v6452_v27, 16  ;;  %v1834_v44 = vor.u32 %v1833_v41, %v1829_v13  ;;  %v7314_v21 = vld [vmem:[#allocation2 + $0x3c] sm:$0xfe]  }
 0x1c0   : > { %v1181_v53 = vsel %vm8207_vm10, %v1173_v24, %v1180_v35  ;;  %v1403_v23 = vsel %vm8074_vm2, %v1182_v36, %v1402_v20  ;;  %1393 = vst [vmem:[#allocation2 + $0x6c] sm:$0xf] %v1392_v46  ;;  %4635 = vmatmul.mubr.bf16.gmra.mrb[32].mxu1 %v7304_v25  ;;  %v2182_v59 = vrot.slane %v7309_v42, 1  ;;  %v726_v1 = vmul.f32 %v8194_v50, %v8151_v54  ;;  %v8387_v20 = vld [vmem:[#allocation2 + $0x54] sm:$0xff]  }
 0x1c1   : > { %1401 = vst [vmem:[#allocation2 + $0x7c] sm:$0xf] %v1181_v53  ;;  %1404 = vst [vmem:[#allocation2 + $0x80] sm:$0x1] %v1403_v23  ;;  %v724_v4 = vmul.f32 %v8151_v54, %v8203_v58  ;;  %v729_v5 = vmul.f32 %v8219_v29, %v8151_v54  ;;  %v1160_v8 = vrot.slane %v1158_v32, 7  ;;  %v1839_v3 = vsel %vm1767_vm5, %v1834_v44, %v1838_v26  ;;  %v7311_v29 = vld [vmem:[#allocation2 + $0x3c] sm:$0xff]  }
 0x1c2   : > { %v2183_v10 = vsel %vm2168_vm6, %v2181_v55, %v2182_v59  ;;  %v727_v7 = vmul.f32 %v8151_v54, %v8225_v39  ;;  %4642 = vmatprep.mubr.bf16.mxu1 %v1839_v3  ;;  %v1841_v34 = vshrl.u32 %v7312_v38, 16  ;;  %v1843_v12 = vshll.u32 %v7312_v38, 16  ;;  %v7315_v31 = vld [vmem:[#allocation2 + $0x44] ss:$0 sps:$4 sm:$0x11]  }
 0x1c3   : > { %4796 = vmatmul.mubr.bf16.gmra.mrb[32].mxu0 %v2183_v10  ;;  %v765_v50 = vadd.f32 %v8156_v9, %v726_v1  ;;  %v763_v58 = vadd.f32 %v8156_v9, %v724_v4  ;;  %v1163_v15 = vor.u32 %v1161_v56, %v1160_v8  ;;  %v1165_v17 = vrot.slane %v1160_v8, 4  ;;  %v7321_v26 = vld [vmem:[#allocation2 + $0x5c] ss:$0 sps:$4 sm:$0x11]   ;;  %v1412_v56 = vld [vmem:[#allocation2 + $0x90] sm:$0xf] }
 0x1c4   : > { %4803 = vmatprep.mubr.bf16.mxu0 %v7310_v61  ;;  %v1848_v14 = vshll.u32 %v7313_v0, 16  ;;  %v8390_v11 = vadd.f32 %v8156_v9, %v729_v5  ;;  %v1845_v39 = vrot.slane %v1843_v12, 1  ;;  %v8393_v40 = vadd.f32 %v8156_v9, %v727_v7  ;;  %v7316_v9 = vld [vmem:[#allocation2 + $0x54] sm:$0xff]   ;;  %v1405_v44 = vld [vmem:[#allocation2 + $0x84] sm:$0xf]  ;;  %v7318_v1 = vld [vmem:[#allocation2 + $0x48] sm:$0xff]  }
 0x1c5   : > { %v730_v19 = vmul.f32 %v8232_v47, %v8151_v54  ;;  %v728_v13 = vmul.f32 %v8151_v54, %v8239_v57  ;;  %v1164_v49 = vsel %vm8207_vm10, %v1156_v33, %v1163_v15  ;;  %v1396_v24 = vsel %vm8074_vm2, %v1165_v17, %v1395_v60  ;;  %v8407_v54 = vld [vmem:[%s9043_s3] ss:$0 sm:$0xff]  ;;  %v7322_v4 = vld [vmem:[#allocation2 + $0x48] sm:$0xfe]   ;;  %v1416_v3 = vld [vmem:[#allocation2 + $0x98] sm:$0x1] }
 0x1c6   : > { %v1850_v25 = vrot.slane %v1848_v14, 1  ;;  %v2184_v30 = vrot.slane %v7314_v21, 1  ;;  %1394 = vst [vmem:[#allocation2 + $0x70] sm:$0xf] %v1164_v49  ;;  %1397 = vst [vmem:[#allocation2 + $0x74] sm:$0x1] %v1396_v24  ;;  %v1846_v52 = vor.u32 %v1845_v39, %v1841_v34 }
 0x1c7   : > { %v2185_v28 = vrot.slane %v7315_v31, 1  ;;  %v796_v35 = vmax.f32 %v8332_v43, 0.0  ;;  %v794_v36 = vmax.f32 %v762_v62, 0.0  ;;  %v797_v47 = vmax.f32 %v765_v50, 0.0  ;;  %v1409_v10 = vld [vmem:[#allocation2 + $0x8c] sm:$0x1] }
 0x1c8   : > { %4643 = vmatmul.mubr.bf16.gmra.mrb[36].mxu1 %v7311_v29  ;;  %v795_v37 = vmax.f32 %v763_v58, 0.0  ;;  %v8410_v57 = vadd.f32 %v8407_v54, %v730_v19  ;;  %v8413_v33 = vadd.f32 %v8407_v54, %v728_v13  ;;  %v1851_v18 = vsel %vm1767_vm5, %v1846_v52, %v1850_v25  ;;  %v7323_v50 = vld [vmem:[#allocation2 + $0x50] ss:$0 sps:$4 sm:$0x11]   ;;  %v8422_v15 = vld [vmem:[%s9042_s2] ss:$0 sm:$0xff] }
 0x1c9   : > { %v2186_v27 = vsel %vm2168_vm6, %v2184_v30, %v2185_v28  ;;  %v6457_v43 = vpack.c.bf16 %v796_v35, %v796_v35  ;;  %v6455_v41 = vpack.c.bf16 %v794_v36, %v794_v36  ;;  %4650 = vmatprep.mubr.bf16.mxu1 %v1851_v18  ;;  %v6458_v42 = vpack.c.bf16 %v797_v47, %v797_v47  ;;  %v7326_v52 = vld [vmem:[#allocation2 + $0x60] sm:$0xff]   ;;  %v7327_v36 = vld [vmem:[#allocation2 + $0x68] ss:$0 sps:$4 sm:$0x11]  }
 0x1ca   : > { %v6456_v45 = vpack.c.bf16 %v795_v37, %v795_v37  ;;  %v1853_v46 = vshrl.u32 %v8387_v20, 16  ;;  %v1855_v53 = vshll.u32 %v8387_v20, 16  ;;  %v1860_v7 = vshll.u32 %v7321_v26, 16  ;;  %v7324_v18 = vld [vmem:[#allocation2 + $0x60] sm:$0xff]   ;;  %v7328_v26 = vld [vmem:[#allocation2 + $0x54] sm:$0xfe]  }
 0x1cb   : > { %4804 = vmatmul.mubr.bf16.gmra.mrb[36].mxu0 %v2186_v27  ;;  %v1201_v23 = vshrl.u32 %v6457_v43, 16  ;;  %v1204_v55 = vshll.u32 %v6457_v43, 16  ;;  %v1184_v38 = vshrl.u32 %v6455_v41, 16  ;;  %v1187_v32 = vshll.u32 %v6455_v41, 16 }
 0x1cc   : > { %4811 = vmatprep.mubr.bf16.mxu0 %v7316_v9  ;;  %v1209_v59 = vshrl.u32 %v6458_v42, 16  ;;  %v1212_v61 = vshll.u32 %v6458_v42, 16  ;;  %v1192_v60 = vshrl.u32 %v6456_v45, 16  ;;  %v1195_v62 = vshll.u32 %v6456_v45, 16 }
 0x1cd   : > { %v1203_v5 = vrot.slane %v1201_v23, 7  ;;  %v1186_v8 = vrot.slane %v1184_v38, 7  ;;  %v1857_v0 = vrot.slane %v1855_v53, 1  ;;  %v2187_v58 = vrot.slane %v7322_v4, 1 }
 0x1ce   : > { %v1211_v34 = vrot.slane %v1209_v59, 7  ;;  %v1194_v12 = vrot.slane %v1192_v60, 7  ;;  %v733_v17 = vmul.f32 %v8422_v15, %v8302_v48  ;;  %v1862_v30 = vrot.slane %v1860_v7, 1  ;;  %v7329_v53 = vld [vmem:[#allocation2 + $0x5c] ss:$0 sps:$4 sm:$0x11]  }
 0x1cf   : > { %v1206_v29 = vor.u32 %v1204_v55, %v1203_v5  ;;  %v1207_v14 = vrot.slane %v1203_v5, 4  ;;  %v1189_v21 = vor.u32 %v1187_v32, %v1186_v8  ;;  %v1190_v20 = vrot.slane %v1186_v8, 4  ;;  %v7325_v55 = vld [vmem:[#allocation2 + $0x54] sm:$0xff]  }
 0x1d0   : > { %v1214_v39 = vor.u32 %v1212_v61, %v1211_v34  ;;  %v1216_v31 = vrot.slane %v1211_v34, 4  ;;  %v1197_v19 = vor.u32 %v1195_v62, %v1194_v12  ;;  %v1199_v13 = vrot.slane %v1194_v12, 4  ;;  %4651 = vmatmul.mubr.bf16.gmra.mrb[40].mxu1 %v7318_v1  ;;  %v8447_v62 = vld [vmem:[#allocation2 + $0x6c] sm:$0xff]  }
 0x1d1   : > { %v1413_v49 = vsel %vm8198_vm9, %v1206_v29, %v1412_v56  ;;  %v1406_v24 = vsel %vm8198_vm9, %v1189_v21, %v1405_v44  ;;  %v1858_v25 = vor.u32 %v1857_v0, %v1853_v46  ;;  %v2188_v37 = vrot.slane %v7323_v50, 1 }
 0x1d2   : > { %1414 = vst [vmem:[#allocation2 + $0x90] sm:$0xf] %v1413_v49  ;;  %1407 = vst [vmem:[#allocation2 + $0x84] sm:$0xf] %v1406_v24  ;;  %v1215_v48 = vsel %vm8207_vm10, %v1207_v14, %v1214_v39  ;;  %v1417_v28 = vsel %vm8074_vm2, %v1216_v31, %v1416_v3  ;;  %v1198_v9 = vsel %vm8207_vm10, %v1190_v20, %v1197_v19  ;;  %v1865_v27 = vshrl.u32 %v7326_v52, 16  ;;  %v7334_v49 = vld [vmem:[#allocation2 + $0x60] sm:$0xff]  }
 0x1d3   : > { %v1410_v35 = vsel %vm8074_vm2, %v1199_v13, %v1409_v10  ;;  %1415 = vst [vmem:[#allocation2 + $0x94] sm:$0xf] %v1215_v48  ;;  %1418 = vst [vmem:[#allocation2 + $0x98] sm:$0x1] %v1417_v28  ;;  %v1863_v47 = vsel %vm1767_vm5, %v1858_v25, %v1862_v30  ;;  %v1867_v43 = vshll.u32 %v7326_v52, 16  ;;  %v1872_v41 = vshll.u32 %v7327_v36, 16 }
 0x1d4   : > { %1408 = vst [vmem:[#allocation2 + $0x88] sm:$0xf] %v1198_v9  ;;  %1411 = vst [vmem:[#allocation2 + $0x8c] sm:$0x1] %v1410_v35  ;;  %4658 = vmatprep.mubr.bf16.mxu1 %v1863_v47  ;;  %v800_v42 = vmax.f32 %v8390_v11, 0.0  ;;  %v2189_v45 = vsel %vm2168_vm6, %v2187_v58, %v2188_v37  ;;  %v8442_v23 = vadd.f32 %v8407_v54, %v733_v17  ;;  %v2190_v32 = vrot.slane %v7328_v26, 1 }
 0x1d5   : > { %v1869_v46 = vrot.slane %v1867_v43, 1  ;;  %4812 = vmatmul.mubr.bf16.gmra.mrb[40].mxu0 %v2189_v45  ;;  %v1874_v38 = vrot.slane %v1872_v41, 1  ;;  %v798_v44 = vmax.f32 %v8393_v40, 0.0  ;;  %v2191_v61 = vrot.slane %v7329_v53, 1  ;;  %v7330_v10 = vld [vmem:[#allocation2 + $0x6c] sm:$0xff]  }
 0x1d6   : > { %v6461_v56 = vpack.c.bf16 %v800_v42, %v800_v42  ;;  %4819 = vmatprep.mubr.bf16.mxu0 %v7324_v18  ;;  %v801_v60 = vmax.f32 %v8410_v57, 0.0  ;;  %v799_v11 = vmax.f32 %v8413_v33, 0.0  ;;  %v731_v8 = vmul.f32 %v8422_v15, %v8316_v22  ;;  %v1426_v40 = vld [vmem:[#allocation2 + $0xa8] sm:$0xf]  ;;  %v1419_v17 = vld [vmem:[#allocation2 + $0x9c] sm:$0xf] }
 0x1d7   : > { %v1870_v59 = vor.u32 %v1869_v46, %v1865_v27  ;;  %v6459_v5 = vpack.c.bf16 %v798_v44, %v798_v44  ;;  %v734_v57 = vmul.f32 %v8422_v15, %v8356_v16  ;;  %v2192_v33 = vsel %vm2168_vm6, %v2190_v32, %v2191_v61  ;;  %v7337_v58 = vld [vmem:[#allocation2 + $0x74] ss:$0 sps:$4 sm:$0x11]   ;;  %v1430_v19 = vld [vmem:[#allocation2 + $0xb0] sm:$0x1]  ;;  %v7342_v46 = vld [vmem:[#allocation2 + $0x78] sm:$0xff]  }
 0x1d8   : > { %4659 = vmatmul.mubr.bf16.gmra.mrb[44].mxu1 %v7325_v55  ;;  %v1235_v1 = vshrl.u32 %v6461_v56, 16  ;;  %v1238_v4 = vshll.u32 %v6461_v56, 16  ;;  %v6462_v0 = vpack.c.bf16 %v801_v60, %v801_v60  ;;  %v6460_v7 = vpack.c.bf16 %v799_v11, %v799_v11  ;;  %v1423_v13 = vld [vmem:[#allocation2 + $0xa4] sm:$0x1] }
 0x1d9   : > { %v1875_v3 = vsel %vm1767_vm5, %v1870_v59, %v1874_v38  ;;  %v1218_v12 = vshrl.u32 %v6459_v5, 16  ;;  %v1221_v50 = vshll.u32 %v6459_v5, 16  ;;  %v1877_v16 = vshrl.u32 %v8447_v62, 16  ;;  %v7338_v48 = vld [vmem:[#allocation2 + $0x60] sm:$0xfe]  }
 0x1da   : > { %4666 = vmatprep.mubr.bf16.mxu1 %v1875_v3  ;;  %v1237_v34 = vrot.slane %v1235_v1, 7  ;;  %v1243_v29 = vshrl.u32 %v6462_v0, 16  ;;  %v1246_v14 = vshll.u32 %v6462_v0, 16  ;;  %v1226_v22 = vshrl.u32 %v6460_v7, 16  ;;  %v7344_v5 = vld [vmem:[#allocation2 + $0x6c] sm:$0xfe]  }
 0x1db   : > { %v1229_v21 = vshll.u32 %v6460_v7, 16  ;;  %v1220_v31 = vrot.slane %v1218_v12, 7  ;;  %v1879_v30 = vshll.u32 %v8447_v62, 16  ;;  %v1884_v52 = vshll.u32 %v7337_v58, 16  ;;  %v7341_v0 = vld [vmem:[#allocation2 + $0x6c] sm:$0xff]   ;;  %v7357_v6 = vld [vmem:[#allocation2 + $0x84] sm:$0xff]  }
 0x1dc   : > { %v1240_v20 = vor.u32 %v1238_v4, %v1237_v34  ;;  %v1241_v39 = vrot.slane %v1237_v34, 4  ;;  %v1245_v24 = vrot.slane %v1243_v29, 7  ;;  %v1228_v25 = vrot.slane %v1226_v22, 7  ;;  %v7339_v36 = vld [vmem:[#allocation2 + $0x68] ss:$0 sps:$4 sm:$0x11]  }
 0x1dd   : > { %4820 = vmatmul.mubr.bf16.gmra.mrb[44].mxu0 %v2192_v33  ;;  %v1223_v9 = vor.u32 %v1221_v50, %v1220_v31  ;;  %v1224_v35 = vrot.slane %v1220_v31, 4  ;;  %v732_v47 = vmul.f32 %v8422_v15, %v8361_v63  ;;  %v1881_v26 = vrot.slane %v1879_v30, 1  ;;  %v7343_v56 = vld [vmem:[#allocation2 + $0x80] ss:$0 sps:$4 sm:$0x11]   ;;  %v7346_v29 = vld [vmem:[#allocation2 + $0x84] sm:$0xff]  }
 0x1de   : > { %v1427_v28 = vsel %vm8198_vm9, %v1240_v20, %v1426_v40  ;;  %4827 = vmatprep.mubr.bf16.mxu0 %v7330_v10  ;;  %v1248_v37 = vor.u32 %v1246_v14, %v1245_v24  ;;  %v1250_v18 = vrot.slane %v1245_v24, 4  ;;  %v1231_v27 = vor.u32 %v1229_v21, %v1228_v25  ;;  %v7340_v10 = vld [vmem:[#allocation2 + $0x78] sm:$0xff]   ;;  %v7345_v40 = vld [vmem:[#allocation2 + $0x74] ss:$0 sps:$4 sm:$0x11]   ;;  %v7352_v20 = vld [vmem:[#allocation2 + $0x84] sm:$0xff]  }
 0x1df   : > { %1428 = vst [vmem:[#allocation2 + $0xa8] sm:$0xf] %v1427_v28  ;;  %v1233_v43 = vrot.slane %v1228_v25, 4  ;;  %v1420_v41 = vsel %vm8198_vm9, %v1223_v9, %v1419_v17  ;;  %v1886_v42 = vrot.slane %v1884_v52, 1  ;;  %v2193_v45 = vrot.slane %v7338_v48, 1  ;;  %v7356_v2 = vld [vmem:[#allocation2 + $0x90] sm:$0xff]  }
 0x1e0   : > { %4667 = vmatmul.mubr.bf16.gmra.mrb[48].mxu1 %v7334_v49  ;;  %1421 = vst [vmem:[#allocation2 + $0x9c] sm:$0xf] %v1420_v41  ;;  %v1249_v53 = vsel %vm8207_vm10, %v1241_v39, %v1248_v37  ;;  %v1431_v63 = vsel %vm8074_vm2, %v1250_v18, %v1430_v19  ;;  %v1232_v15 = vsel %vm8207_vm10, %v1224_v35, %v1231_v27  ;;  %v2194_v32 = vrot.slane %v7339_v36, 1  ;;  %v7353_v39 = vld [vmem:[#allocation2 + $0x8c] ss:$0 sps:$4 sm:$0x11]  }
 0x1e1   : > { %v1424_v55 = vsel %vm8074_vm2, %v1233_v43, %v1423_v13  ;;  %1429 = vst [vmem:[#allocation2 + $0xac] sm:$0xf] %v1249_v53  ;;  %1432 = vst [vmem:[#allocation2 + $0xb0] sm:$0x1] %v1431_v63  ;;  %v1882_v38 = vor.u32 %v1881_v26, %v1877_v16  ;;  %v1889_v44 = vshrl.u32 %v7342_v46, 16  ;;  %v1891_v59 = vshll.u32 %v7342_v46, 16 }
 0x1e2   : > { %1422 = vst [vmem:[#allocation2 + $0xa0] sm:$0xf] %v1232_v15  ;;  %1425 = vst [vmem:[#allocation2 + $0xa4] sm:$0x1] %v1424_v55  ;;  %v770_v61 = vadd.f32 %v8407_v54, %v731_v8  ;;  %v773_v60 = vadd.f32 %v8407_v54, %v734_v57  ;;  %v771_v11 = vadd.f32 %v8407_v54, %v732_v47  ;;  %v1896_v4 = vshll.u32 %v7343_v56, 16  ;;  %v7350_v36 = vld [vmem:[#allocation2 + $0x78] sm:$0xff]  }
 0x1e3   : > { %v1887_v62 = vsel %vm1767_vm5, %v1882_v38, %v1886_v42  ;;  %v1893_v1 = vrot.slane %v1891_v59, 1  ;;  %v2195_v3 = vsel %vm2168_vm6, %v2193_v45, %v2194_v32  ;;  %v2196_v34 = vrot.slane %v7344_v5, 1  ;;  %v1440_v13 = vld [vmem:[#allocation2 + $0xc0] sm:$0xf]  ;;  %v7354_v30 = vld [vmem:[#allocation2 + $0x78] sm:$0xfe]  }
 0x1e4   : > { %4674 = vmatprep.mubr.bf16.mxu1 %v1887_v62  ;;  %v1898_v33 = vrot.slane %v1896_v4, 1  ;;  %v804_v8 = vmax.f32 %v8442_v23, 0.0  ;;  %v2197_v57 = vrot.slane %v7345_v40, 1  ;;  %v802_v54 = vmax.f32 %v770_v61, 0.0  ;;  %v1433_v48 = vld [vmem:[#allocation2 + $0xb4] sm:$0xf] }
 0x1e5   : > { %4828 = vmatmul.mubr.bf16.gmra.mrb[48].mxu0 %v2195_v3  ;;  %v1894_v7 = vor.u32 %v1893_v1, %v1889_v44  ;;  %v805_v12 = vmax.f32 %v773_v60, 0.0  ;;  %v803_v50 = vmax.f32 %v771_v11, 0.0  ;;  %v1444_v28 = vld [vmem:[#allocation2 + $0xc8] sm:$0x1]  ;;  %v1901_v47 = vshrl.u32 %v7352_v20, 16  ;;  %v7358_v1 = vld [vmem:[#allocation2 + $0x90] sm:$0xff]  }
 0x1e6   : > { %4835 = vmatprep.mubr.bf16.mxu0 %v7340_v10  ;;  %v6465_v17 = vpack.c.bf16 %v804_v8, %v804_v8  ;;  %v6463_v14 = vpack.c.bf16 %v802_v54, %v802_v54  ;;  %v2198_v31 = vsel %vm2168_vm6, %v2196_v34, %v2197_v57  ;;  %v1903_v27 = vshll.u32 %v7352_v20, 16  ;;  %v7355_v45 = vld [vmem:[#allocation2 + $0x80] ss:$0 sps:$4 sm:$0x11]   ;;  %v1437_v38 = vld [vmem:[#allocation2 + $0xbc] sm:$0x1] }
 0x1e7   : > { %v1899_v58 = vsel %vm1767_vm5, %v1894_v7, %v1898_v33  ;;  %v6466_v22 = vpack.c.bf16 %v805_v12, %v805_v12  ;;  %v6464_v21 = vpack.c.bf16 %v803_v50, %v803_v50  ;;  %v1908_v43 = vshll.u32 %v7353_v39, 16  ;;  %v7359_v10 = vld [vmem:[#allocation2 + $0x98] ss:$0 sps:$4 sm:$0x11]   ;;  %v7360_v34 = vld [vmem:[#allocation2 + $0x84] sm:$0xfe]  }
 0x1e8   : > { %4675 = vmatmul.mubr.bf16.gmra.mrb[52].mxu1 %v7341_v0  ;;  %v1269_v19 = vshrl.u32 %v6465_v17, 16  ;;  %v1272_v23 = vshll.u32 %v6465_v17, 16  ;;  %v1252_v49 = vshrl.u32 %v6463_v14, 16  ;;  %v1255_v16 = vshll.u32 %v6463_v14, 16 }
 0x1e9   : > { %4682 = vmatprep.mubr.bf16.mxu1 %v1899_v58  ;;  %v1277_v24 = vshrl.u32 %v6466_v22, 16  ;;  %v1280_v25 = vshll.u32 %v6466_v22, 16  ;;  %v1260_v9 = vshrl.u32 %v6464_v21, 16  ;;  %v1263_v35 = vshll.u32 %v6464_v21, 16 }
 0x1ea   : > { %v1271_v52 = vrot.slane %v1269_v19, 7  ;;  %v1254_v37 = vrot.slane %v1252_v49, 7  ;;  %v2199_v46 = vrot.slane %v7354_v30, 1  ;;  %v1905_v59 = vrot.slane %v1903_v27, 1  ;;  %v7372_v27 = vld [vmem:[#allocation2 + $0xa8] sm:$0xff]  }
 0x1eb   : > { %v1279_v18 = vrot.slane %v1277_v24, 7  ;;  %v1262_v42 = vrot.slane %v1260_v9, 7  ;;  %v1910_v62 = vrot.slane %v1908_v43, 1  ;;  %v2200_v51 = vrot.slane %v7355_v45, 1  ;;  %v7376_v43 = vld [vmem:[#allocation2 + $0x9c] sm:$0xfe]  }
 0x1ec   : > { %v1274_v41 = vor.u32 %v1272_v23, %v1271_v52  ;;  %v1275_v26 = vrot.slane %v1271_v52, 4  ;;  %v1257_v53 = vor.u32 %v1255_v16, %v1254_v37  ;;  %v1258_v63 = vrot.slane %v1254_v37, 4  ;;  %v7361_v8 = vld [vmem:[#allocation2 + $0x8c] ss:$0 sps:$4 sm:$0x11]   ;;  %v7366_v23 = vld [vmem:[#allocation2 + $0x90] sm:$0xff]  }
 0x1ed   : > { %4836 = vmatmul.mubr.bf16.gmra.mrb[52].mxu0 %v2198_v31  ;;  %v1282_v15 = vor.u32 %v1280_v25, %v1279_v18  ;;  %v1284_v55 = vrot.slane %v1279_v18, 4  ;;  %v1265_v56 = vor.u32 %v1263_v35, %v1262_v42  ;;  %v1267_v44 = vrot.slane %v1262_v42, 4  ;;  %v7369_v14 = vld [vmem:[#allocation2 + $0xa4] ss:$0 sps:$4 sm:$0x11]   ;;  %v7362_v31 = vld [vmem:[#allocation2 + $0x9c] sm:$0xff]  }
 0x1ee   : > { %4843 = vmatprep.mubr.bf16.mxu0 %v7346_v29  ;;  %v1441_v32 = vsel %vm8198_vm9, %v1274_v41, %v1440_v13  ;;  %v1434_v61 = vsel %vm8198_vm9, %v1257_v53, %v1433_v48  ;;  %v1906_v3 = vor.u32 %v1905_v59, %v1901_v47  ;;  %v1913_v40 = vshrl.u32 %v7358_v1, 16  ;;  %v7368_v29 = vld [vmem:[#allocation2 + $0x9c] sm:$0xff]   ;;  %v7371_v19 = vld [vmem:[#allocation2 + $0x98] ss:$0 sps:$4 sm:$0x11]   ;;  %v7374_v16 = vld [vmem:[#allocation2 + $0xa8] sm:$0xff]  }
 0x1ef   : > { %1442 = vst [vmem:[#allocation2 + $0xc0] sm:$0xf] %v1441_v32  ;;  %v1283_v60 = vsel %vm8207_vm10, %v1275_v26, %v1282_v15  ;;  %v1445_v11 = vsel %vm8074_vm2, %v1284_v55, %v1444_v28  ;;  %1435 = vst [vmem:[#allocation2 + $0xb4] sm:$0xf] %v1434_v61  ;;  %v1266_v4 = vsel %vm8207_vm10, %v1258_v63, %v1265_v56  ;;  %v1915_v0 = vshll.u32 %v7358_v1, 16  ;;  %v7373_v26 = vld [vmem:[#allocation2 + $0x9c] sm:$0xff]  }
 0x1f0   : > { %4683 = vmatmul.mubr.bf16.gmra.mrb[56].mxu1 %v7350_v36  ;;  %1443 = vst [vmem:[#allocation2 + $0xc4] sm:$0xf] %v1283_v60  ;;  %1446 = vst [vmem:[#allocation2 + $0xc8] sm:$0x1] %v1445_v11  ;;  %v1438_v5 = vsel %vm8074_vm2, %v1267_v44, %v1437_v38  ;;  %v1911_v7 = vsel %vm1767_vm5, %v1906_v3, %v1910_v62  ;;  %v1920_v33 = vshll.u32 %v7359_v10, 16  ;;  %v2202_v50 = vrot.slane %v7360_v34, 1 }
 0x1f1   : > { %1436 = vst [vmem:[#allocation2 + $0xb8] sm:$0xf] %v1266_v4  ;;  %1439 = vst [vmem:[#allocation2 + $0xbc] sm:$0x1] %v1438_v5  ;;  %4690 = vmatprep.mubr.bf16.mxu1 %v1911_v7  ;;  %v2201_v57 = vsel %vm2168_vm6, %v2199_v46, %v2200_v51  ;;  %v1917_v54 = vrot.slane %v1915_v0, 1  ;;  %v2203_v58 = vrot.slane %v7361_v8, 1 }
 0x1f2   : > { %v1922_v12 = vrot.slane %v1920_v33, 1  ;;  %v1925_v21 = vshrl.u32 %v7368_v29, 16  ;;  %v1927_v20 = vshll.u32 %v7368_v29, 16  ;;  %v1932_v39 = vshll.u32 %v7369_v14, 16  ;;  %v7370_v25 = vld [vmem:[#allocation2 + $0x90] sm:$0xfe]  }
 0x1f3   : > { %v1918_v17 = vor.u32 %v1917_v54, %v1913_v40  ;;  %v2204_v24 = vsel %vm2168_vm6, %v2202_v50, %v2203_v58  ;;  %v7375_v52 = vld [vmem:[#allocation2 + $0xb0] ss:$0 sps:$4 sm:$0x11]   ;;  %v1937_v48 = vshrl.u32 %v7374_v16, 16  ;;  %v1939_v28 = vshll.u32 %v7374_v16, 16  ;;  %v7390_v60 = vld [vmem:[#allocation9 + $0x1a0] sm:$0xff]  }
 0x1f4   : > { %v1929_v13 = vrot.slane %v1927_v20, 1  ;;  %v1934_v49 = vrot.slane %v1932_v39, 1  ;;  %v2205_v35 = vrot.slane %v7370_v25, 1  ;;  %v2206_v36 = vrot.slane %v7371_v19, 1  ;;  %v7386_v61 = vld [vmem:[#allocation2 + $0xa8] sm:$0xfe]   ;;  %6837 = vmatpush3.bf16.msra.mxu0 %v7390_v60 }
 0x1f5   : > { %4844 = vmatmul.mubr.bf16.gmra.mrb[56].mxu0 %v2201_v57  ;;  %v1923_v22 = vsel %vm1767_vm5, %v1918_v17, %v1922_v12  ;;  %v1941_v47 = vrot.slane %v1939_v28, 1  ;;  %v1944_v37 = vshll.u32 %v7375_v52, 16  ;;  %v7377_v41 = vld [vmem:[#allocation2 + $0xa4] ss:$0 sps:$4 sm:$0x11]   ;;  %v2208_v56 = vrot.slane %v7376_v43, 1 }
 0x1f6   : > { %4851 = vmatprep.mubr.bf16.mxu0 %v7356_v2  ;;  %v1930_v30 = vor.u32 %v1929_v13, %v1925_v21  ;;  %v2207_v53 = vsel %vm2168_vm6, %v2205_v35, %v2206_v36  ;;  %v2209_v44 = vrot.slane %v7377_v41, 1  ;;  %v7391_v11 = vld [vmem:[#allocation9 + $0x1e8] sm:$0xff]   ;;  %v6508_v62 = vpop.f32.mrb[16].mxu1  ;;  %v7387_v5 = vld [vmem:[#allocation2 + $0xb0] ss:$0 sps:$4 sm:$0x11]  }
 0x1f7   : > { %v1942_v42 = vor.u32 %v1941_v47, %v1937_v48  ;;  %v1946_v45 = vrot.slane %v1944_v37, 1  ;;  %v7392_v3 = vld [vmem:[#allocation9 + $0x1a8] sm:$0xff]   ;;  %6838 = vmatprep.subr.bf16.mxu0 %v7391_v11  ;;  %v7398_v40 = vld [vmem:[#allocation9 + $0x1f0] sm:$0xff]   ;;  %v2211_v34 = vrot.slane %v7386_v61, 1  ;;  %v7400_v57 = vld [vmem:[#allocation2 + $0x18] sm:$0xff]  }
 0x1f8   : > { %4691 = vmatmul.mubr.bf16.gmra.mrb[60].mxu1 %v7357_v6  ;;  %v1935_v9 = vsel %vm1767_vm5, %v1930_v30, %v1934_v49  ;;  %v7384_v18 = vld [vmem:[#allocation2 + $0xb4] sm:$0xff]   ;;  %v7385_v63 = vld [vmem:[#allocation2 + $0xbc] ss:$0 sps:$4 sm:$0x11]   ;;  %v2210_v0 = vsel %vm2168_vm6, %v2208_v56, %v2209_v44  ;;  %v7382_v7 = vld [vmem:[#allocation2 + $0xa8] sm:$0xff]   ;;  %6839 = vmatpush3.bf16.msra.mxu0 %v7392_v3  ;;  %v2212_v6 = vrot.slane %v7387_v5, 1 }
 0x1f9   : > { %4698 = vmatprep.mubr.bf16.mxu1 %v1923_v22  ;;  %v1949_v46 = vshrl.u32 %v7384_v18, 16  ;;  %v1951_v15 = vshll.u32 %v7384_v18, 16  ;;  %v1956_v38 = vshll.u32 %v7385_v63, 16  ;;  %v1947_v32 = vsel %vm1767_vm5, %v1942_v42, %v1946_v45  ;;  %v7378_v59 = vld [vmem:[#allocation2 + $0xb4] sm:$0xff]   ;;  %v7396_v8 = vld [vmem:[#allocation2 + $0xc] sm:$0xfe]   ;;  %6840 = vmatprep.subr.bf16.mxu0 %v7398_v40 }
 0x1fa   : > { %v8498_v51 = vld [vmem:[#allocation2 + $0xb4] sm:$0xfe]   ;;  %v8500_v10 = vld [vmem:[#allocation2 + $0xbc] ss:$0 sps:$4 sm:$0x11]   ;;  %v7399_v54 = vld [vmem:[#allocation9 + $0x1b0] sm:$0xff]  }
 0x1fb   : > { %v1953_v55 = vrot.slane %v1951_v15, 1  ;;  %v1958_v4 = vrot.slane %v1956_v38, 1  ;;  %v7397_v2 = vld [vmem:[#allocation2 + $0x14] ss:$0 sps:$4 sm:$0x11]   ;;  %v2214_v50 = vrot.slane %v8498_v51, 1 }
 0x1fc   : > { %v7402_v12 = vld [vmem:[#allocation9 + $0x1f8] sm:$0xff]   ;;  %v2215_v58 = vrot.slane %v8500_v10, 1  ;;  %v7401_v17 = vld [vmem:[#allocation2 + $0x20] ss:$0 sps:$4 sm:$0x11]   ;;  %v3373_v29 = vshll.u32 %v7400_v57, 16  ;;  %6841 = vmatpush3.bf16.msra.mxu0 %v7399_v54 }
 0x1fd   : > { %4852 = vmatmul.mubr.bf16.gmra.mrb[60].mxu0 %v2204_v24  ;;  %v1954_v1 = vor.u32 %v1953_v55, %v1949_v46  ;;  %v7404_v14 = vld [vmem:[#allocation9 + $0x200] sm:$0xff]   ;;  %v6509_v22 = vpop.f32.mrb[17].mxu1  ;;  %v7389_v21 = vld [vmem:[#allocation2 + $0xc0] sm:$0xff]   ;;  %v2969_v20 = vrot.slane %v7396_v8, 1  ;;  %v2970_v39 = vrot.slane %v7397_v2, 1  ;;  %v7405_v19 = vld [vmem:[#allocation2 + $0xc] sm:$0xff]   ;;  %6842 = vmatprep.subr.bf16.mxu0 %v7402_v12  ;;  %v2213_v24 = vsel %vm2168_vm6, %v2211_v34, %v2212_v6 }
 0x1fe   : > { %4859 = vmatprep.mubr.bf16.mxu0 %v7362_v31  ;;  %v7403_v31 = vld [vmem:[#allocation9 + $0x1b8] sm:$0xff]   ;;  %v3378_v49 = vshll.u32 %v7401_v17, 16  ;;  %7036 = vmatprep.subr.bf16.mxu1 %v7404_v14  ;;  %v3371_v25 = vshrl.u32 %v7400_v57, 16  ;;  %v3375_v30 = vrot.slane %v3373_v29, 1  ;;  %v2572_v52 = vshll.u32 %v7405_v19, 16  ;;  %v7410_v48 = vld [vmem:[#allocation2 + $0x24] sm:$0xff]  }
 0x1ff   : > { %v1959_v33 = vsel %vm1767_vm5, %v1954_v1, %v1958_v4  ;;  %v7393_v13 = vld [vmem:[#allocation2 + $0xb4] sm:$0xff]   ;;  %v7408_v47 = vld [vmem:[#allocation2 + $0x20] ss:$0 sps:$4 sm:$0x11]   ;;  %v2971_v37 = vsel %vm2168_vm6, %v2969_v20, %v2970_v39  ;;  %v3383_v43 = vshrl.u32 %v7410_v48, 16  ;;  %v3385_v41 = vshll.u32 %v7410_v48, 16 }
 0x200   : > { %4699 = vmatmul.mubr.bf16.gmra.mrb[64].mxu1 %v7366_v23  ;;  %v8506_v23 = vadd.f32 %v6509_v22, %v6508_v62  ;;  %v7406_v16 = vld [vmem:[#allocation2 + $0x14] ss:$0 sps:$4 sm:$0x11]   ;;  %v7412_v35 = vld [vmem:[#allocation2 + $0x18] sm:$0xff]   ;;  %6843 = vmatpush3.bf16.msra.mxu0 %v7403_v31  ;;  %v2574_v36 = vrot.slane %v2572_v52, 1  ;;  %v3380_v18 = vrot.slane %v3378_v49, 1  ;;  %v2216_v38 = vsel %vm2168_vm6, %v2214_v50, %v2215_v58 }
 0x201   : > { %4706 = vmatprep.mubr.bf16.mxu1 %v1935_v9  ;;  %v2577_v28 = vshll.u32 %v7406_v16, 16  ;;  %v7407_v9 = vld [vmem:[#allocation2 + $0x18] sm:$0xfe]   ;;  %v7411_v45 = vld [vmem:[#allocation2 + $0x2c] ss:$0 sps:$4 sm:$0x11]  }
 0x202   : > { %v2584_v63 = vshll.u32 %v7412_v35, 16  ;;  %v2973_v15 = vrot.slane %v7408_v47, 1  ;;  %v7413_v55 = vld [vmem:[#allocation2 + $0x20] ss:$0 sps:$4 sm:$0x11]   ;;  %v3390_v56 = vshll.u32 %v7411_v45, 16 }
 0x203   : > { %v2579_v42 = vrot.slane %v2577_v28, 1  ;;  %v2589_v61 = vshll.u32 %v7413_v55, 16  ;;  %v7414_v60 = vld [vmem:[#allocation2 + $0x24] sm:$0xfe]   ;;  %v7417_v1 = vld [vmem:[#allocation2 + $0x30] sm:$0xff]   ;;  %v2582_v5 = vshrl.u32 %v7412_v35, 16 }
 0x204   : > { %v7415_v62 = vld [vmem:[#allocation2 + $0x2c] ss:$0 sps:$4 sm:$0x11]   ;;  %v3392_v3 = vrot.slane %v3390_v56, 1  ;;  %v7409_v10 = vld [vmem:[#allocation2 + $0x18] sm:$0xff]   ;;  %v7420_v34 = vld [vmem:[#allocation2 + $0x24] sm:$0xff]  }
 0x205   : > { %4860 = vmatmul.mubr.bf16.gmra.mrb[64].mxu0 %v2207_v53  ;;  %v2972_v53 = vrot.slane %v7407_v9, 1  ;;  %v7418_v51 = vld [vmem:[#allocation2 + $0x38] ss:$0 sps:$4 sm:$0x11]   ;;  %v2975_v57 = vrot.slane %v7414_v60, 1  ;;  %v2976_v2 = vrot.slane %v7415_v62, 1 }
 0x206   : > { %4867 = vmatprep.mubr.bf16.mxu0 %v7372_v27  ;;  %v2570_v27 = vshrl.u32 %v7405_v19, 16  ;;  %v3395_v54 = vshrl.u32 %v7417_v1, 16  ;;  %v3402_v6 = vshll.u32 %v7418_v51, 16  ;;  %v7421_v12 = vld [vmem:[#allocation2 + $0x2c] ss:$0 sps:$4 sm:$0x11]  }
 0x207   : > { %v2974_v4 = vsel %vm2168_vm6, %v2972_v53, %v2973_v15  ;;  %v2596_v50 = vshll.u32 %v7420_v34, 16  ;;  %v7425_v17 = vld [vmem:[#allocation2 + $0x3c] sm:$0xff]   ;;  %v2601_v22 = vshll.u32 %v7421_v12, 16  ;;  %v7423_v31 = vld [vmem:[#allocation2 + $0x38] ss:$0 sps:$4 sm:$0x11]   ;;  %v2977_v19 = vsel %vm2168_vm6, %v2975_v57, %v2976_v2 }
 0x208   : > { %4707 = vmatmul.mubr.bf16.gmra.mrb[68].mxu1 %v7373_v26  ;;  %v3376_v26 = vor.u32 %v3375_v30, %v3371_v25  ;;  %v2575_v46 = vor.u32 %v2574_v36, %v2570_v27  ;;  %v3407_v49 = vshrl.u32 %v7425_v17, 16  ;;  %v7416_v25 = vld [vmem:[#allocation2 + $0x24] sm:$0xff]   ;;  %v7427_v48 = vld [vmem:[#allocation2 + $0x30] sm:$0xff]   ;;  %v2979_v35 = vrot.slane %v7423_v31, 1  ;;  %v8520_v62 = vpop.f32.mrb[18].mxu1 }
 0x209   : > { %4714 = vmatprep.mubr.bf16.mxu1 %v1947_v32  ;;  %v3387_v32 = vrot.slane %v3385_v41, 1  ;;  %v2598_v39 = vrot.slane %v2596_v50, 1  ;;  %v2603_v16 = vrot.slane %v2601_v22, 1  ;;  %v7426_v52 = vld [vmem:[#allocation2 + $0x44] ss:$0 sps:$4 sm:$0x11]  }
 0x20a   : > { %v3381_v44 = vsel %vm1767_vm5, %v3376_v26, %v3380_v18  ;;  %v2580_v11 = vsel %vm1767_vm5, %v2575_v46, %v2579_v42  ;;  %v3414_v47 = vshll.u32 %v7426_v52, 16  ;;  %v2608_v18 = vshll.u32 %v7427_v48, 16  ;;  %v7429_v42 = vld [vmem:[#allocation2 + $0x3c] sm:$0xfe]   ;;  %v7432_v45 = vld [vmem:[#allocation2 + $0x48] sm:$0xff]   ;;  %v7424_v56 = vld [vmem:[#allocation2 + $0x30] sm:$0xff]  }
 0x20b   : > { %v3388_v40 = vor.u32 %v3387_v32, %v3383_v43  ;;  %v2606_v43 = vshrl.u32 %v7427_v48, 16  ;;  %v7430_v53 = vld [vmem:[#allocation2 + $0x44] ss:$0 sps:$4 sm:$0x11]   ;;  %v2981_v32 = vrot.slane %v7429_v42, 1  ;;  %v7440_v12 = vld [vmem:[#allocation2 + $0x54] sm:$0xff]  }
 0x20c   : > { %v2610_v41 = vrot.slane %v2608_v18, 1  ;;  %v3416_v55 = vrot.slane %v3414_v47, 1  ;;  %v7438_v57 = vld [vmem:[#allocation2 + $0x50] ss:$0 sps:$4 sm:$0x11]   ;;  %v7431_v50 = vld [vmem:[#allocation2 + $0x3c] sm:$0xff]  }
 0x20d   : > { %4868 = vmatmul.mubr.bf16.gmra.mrb[68].mxu0 %v2210_v0  ;;  %v2591_v0 = vrot.slane %v2589_v61, 1  ;;  %v3393_v29 = vsel %vm1767_vm5, %v3388_v40, %v3392_v3  ;;  %v3421_v61 = vshll.u32 %v7432_v45, 16  ;;  %v7436_v3 = vld [vmem:[#allocation2 + $0x44] ss:$0 sps:$4 sm:$0x11]  }
 0x20e   : > { %4875 = vmatprep.mubr.bf16.mxu0 %v7378_v59  ;;  %v2586_v59 = vrot.slane %v2584_v63, 1  ;;  %v7434_v63 = vld [vmem:[#allocation9 + $0x210] sm:$0xff]   ;;  %v2611_v60 = vor.u32 %v2610_v41, %v2606_v43  ;;  %v7443_v31 = vld [vmem:[#allocation2 + $0x50] ss:$0 sps:$4 sm:$0x11]   ;;  %v7447_v52 = vld [vmem:[#allocation2 + $0x60] sm:$0xff]  }
 0x20f   : > { %v3423_v51 = vrot.slane %v3421_v61, 1  ;;  %v7439_v43 = vld [vmem:[#allocation2 + $0x48] sm:$0xff]   ;;  %v3445_v42 = vshll.u32 %v7447_v52, 16 }
 0x210   : > { %4715 = vmatmul.mubr.bf16.gmra.mrb[72].mxu1 %v7382_v7  ;;  %v3397_v7 = vshll.u32 %v7417_v1, 16  ;;  %v2587_v8 = vor.u32 %v2586_v59, %v2582_v5  ;;  %v7433_v59 = vld [vmem:[#allocation2 + $0x50] ss:$0 sps:$4 sm:$0x11]   ;;  %v2982_v1 = vrot.slane %v7430_v53, 1 }
 0x211   : > { %4722 = vmatprep.mubr.bf16.mxu1 %v1959_v33  ;;  %v7419_v33 = vld [vmem:[#allocation9 + $0x208] sm:$0xff]   ;;  %v3426_v5 = vshll.u32 %v7433_v59, 16 }
 0x212   : > { %v3399_v58 = vrot.slane %v3397_v7, 1  ;;  %v2592_v20 = vsel %vm1767_vm5, %v2587_v8, %v2591_v0  ;;  %v2625_v7 = vshll.u32 %v7436_v3, 16  ;;  %v2983_v2 = vsel %vm2168_vm6, %v2981_v32, %v2982_v1 }
 0x214   : > { %v3400_v30 = vor.u32 %v3399_v58, %v3395_v54  ;;  %v3428_v54 = vrot.slane %v3426_v5, 1 }
 0x215   : > { %4876 = vmatmul.mubr.bf16.gmra.mrb[72].mxu0 %v2213_v24  ;;  %v3409_v24 = vshll.u32 %v7425_v17, 16  ;;  %v7441_v17 = vld [vmem:[#allocation2 + $0x5c] ss:$0 sps:$4 sm:$0x11]  }
 0x216   : > { %4883 = vmatprep.mubr.bf16.mxu0 %v7389_v21  ;;  %v7422_v21 = vld [vmem:[#allocation2 + $0x30] sm:$0xfe]  }
 0x217   : > { %v2978_v9 = vrot.slane %v7422_v21, 1  ;;  %v3411_v36 = vrot.slane %v3409_v24, 1  ;;  %v3433_v21 = vshll.u32 %v7440_v12, 16 }
 0x218   : > { %4723 = vmatmul.mubr.bf16.gmra.mrb[76].mxu1 %v7393_v13  ;;  %v3404_v13 = vrot.slane %v3402_v6, 1  ;;  %v2627_v6 = vrot.slane %v2625_v7, 1 }
 0x219   : > { %4924 = vmatprep.mubr.bf16.mxu1 %v2971_v37  ;;  %v7428_v37 = vld [vmem:[#allocation2 + $0x38] ss:$0 sps:$4 sm:$0x11]   ;;  %v2980_v15 = vsel %vm2168_vm6, %v2978_v9, %v2979_v35  ;;  %v3435_v24 = vrot.slane %v3433_v21, 1  ;;  %v7449_v35 = vld [vmem:[#allocation9 + $0x218] sm:$0xff]  }
 0x21a   : > { %v3405_v27 = vsel %vm1767_vm5, %v3400_v30, %v3404_v13  ;;  %v2613_v26 = vshll.u32 %v7428_v37, 16  ;;  %v3431_v13 = vshrl.u32 %v7440_v12, 16  ;;  %v2637_v30 = vshll.u32 %v7443_v31, 16  ;;  %v7445_v9 = vld [vmem:[#allocation2 + $0x5c] ss:$0 sps:$4 sm:$0x11]  }
 0x21c   : > { %v2639_v37 = vrot.slane %v2637_v30, 1  ;;  %v3436_v41 = vor.u32 %v3435_v24, %v3431_v13 }
 0x21d   : > { %4884 = vmatmul.mubr.bf16.gmra.mrb[76].mxu0 %v2216_v38  ;;  %v2615_v38 = vrot.slane %v2613_v26, 1  ;;  %v7448_v26 = vld [vmem:[#allocation2 + $0x68] ss:$0 sps:$4 sm:$0x11]  }
 0x21e   : > { %5085 = vmatprep.mubr.bf16.mxu0 %v3381_v44  ;;  %v3412_v44 = vor.u32 %v3411_v36, %v3407_v49  ;;  %v3450_v53 = vshll.u32 %v7448_v26, 16 }
 0x220   : > { %4925 = vmatmul.mubr.bf16.vlgmr.msra.gmra.mrb[80].mxu1 %v2580_v11  ;;  %v7435_v11 = vld [vmem:[#allocation2 + $0x3c] sm:$0xff]   ;;  %v3417_v40 = vsel %vm1767_vm5, %v3412_v44, %v3416_v55  ;;  %v3452_v1 = vrot.slane %v3450_v53, 1 }
 0x221   : > { %7037 = vmatpush3.bf16.msra.mxu1 %v7404_v14  ;;  %4932 = vmatprep.mubr.bf16.mxu1 %v2974_v4  ;;  %v2594_v14 = vshrl.u32 %v7420_v34, 16  ;;  %v3419_v4 = vshrl.u32 %v7432_v45, 16  ;;  %v2618_v0 = vshrl.u32 %v7435_v11, 16  ;;  %v2616_v34 = vsel %vm1767_vm5, %v2611_v60, %v2615_v38  ;;  %v7452_v44 = vld [vmem:[#allocation2 + $0x60] sm:$0xfe]  }
 0x222   : > { %7038 = vmatprep.subr.bf16.mxu1 %v7419_v33  ;;  %v3447_v38 = vrot.slane %v3445_v42, 1  ;;  %v7453_v60 = vld [vmem:[#allocation2 + $0x68] ss:$0 sps:$4 sm:$0x11]   ;;  %v2990_v3 = vrot.slane %v7452_v44, 1 }
 0x223   : > { %v2599_v28 = vor.u32 %v2598_v39, %v2594_v14  ;;  %v3424_v58 = vor.u32 %v3423_v51, %v3419_v4  ;;  %v3438_v39 = vshll.u32 %v7441_v17, 16  ;;  %v7446_v51 = vld [vmem:[#allocation2 + $0x54] sm:$0xff]  }
 0x224   : > { %v7467_v42 = vld [vmem:[#allocation2 + $0x78] sm:$0xfe]  }
 0x225   : > { %7039 = vmatpush3.bf16.msra.mxu1 %v7419_v33  ;;  %5086 = vmatmul.mubr.bf16.vlgmr.msra.gmra.mrb[80].mxu0 %v7409_v10  ;;  %v2604_v46 = vsel %vm1767_vm5, %v2599_v28, %v2603_v16  ;;  %v2620_v10 = vshll.u32 %v7435_v11, 16  ;;  %v7437_v33 = vld [vmem:[#allocation2 + $0x48] sm:$0xfe]   ;;  %v3429_v16 = vsel %vm1767_vm5, %v3424_v58, %v3428_v54  ;;  %v7444_v28 = vld [vmem:[#allocation2 + $0x54] sm:$0xfe]   ;;  %v3440_v47 = vrot.slane %v3438_v39, 1 }
 0x226   : > { %5093 = vmatprep.mubr.bf16.mxu0 %v3393_v29  ;;  %7040 = vmatprep.subr.bf16.mxu1 %v7434_v63  ;;  %v7442_v29 = vld [vmem:[#allocation2 + $0x48] sm:$0xff]   ;;  %v2984_v22 = vrot.slane %v7437_v33, 1  ;;  %v2987_v18 = vrot.slane %v7444_v28, 1  ;;  %v7457_v33 = vld [vmem:[#allocation2 + $0x60] sm:$0xff]   ;;  %v2996_v44 = vrot.slane %v7467_v42, 1 }
 0x227   : > { %v2622_v8 = vrot.slane %v2620_v10, 1  ;;  %v2630_v49 = vshrl.u32 %v7442_v29, 16  ;;  %v3441_v55 = vsel %vm1767_vm5, %v3436_v41, %v3440_v47  ;;  %v7458_v54 = vld [vmem:[#allocation2 + $0x68] ss:$0 sps:$4 sm:$0x11]   ;;  %v2656_v12 = vshll.u32 %v7457_v33, 16 }
 0x228   : > { %4933 = vmatmul.mubr.bf16.gmra.mrb[84].mxu1 %v2592_v20  ;;  %v2985_v20 = vrot.slane %v7438_v57, 1  ;;  %v7460_v39 = vld [vmem:[#allocation2 + $0x74] ss:$0 sps:$4 sm:$0x11]  }
 0x229   : > { %4940 = vmatprep.mubr.bf16.mxu1 %v2977_v19  ;;  %7041 = vmatpush3.bf16.msra.mxu1 %v7434_v63  ;;  %v2623_v14 = vor.u32 %v2622_v8, %v2618_v0  ;;  %v2632_v19 = vshll.u32 %v7442_v29, 16  ;;  %v7450_v63 = vld [vmem:[#allocation2 + $0x54] sm:$0xff]   ;;  %v2991_v8 = vrot.slane %v7453_v60, 1  ;;  %v2654_v29 = vshrl.u32 %v7457_v33, 16 }
 0x22a   : > { %v2986_v36 = vsel %vm2168_vm6, %v2984_v22, %v2985_v20  ;;  %7042 = vmatprep.subr.bf16.mxu1 %v7449_v35  ;;  %v2642_v32 = vshrl.u32 %v7450_v63, 16  ;;  %v7456_v0 = vld [vmem:[#allocation2 + $0x74] ss:$0 sps:$4 sm:$0x11]   ;;  %v2658_v21 = vrot.slane %v2656_v12, 1  ;;  %v2994_v28 = vrot.slane %v7460_v39, 1 }
 0x22b   : > { %v2628_v48 = vsel %vm1767_vm5, %v2623_v14, %v2627_v6  ;;  %v3462_v6 = vshll.u32 %v7456_v0, 16  ;;  %v2661_v14 = vshll.u32 %v7458_v54, 16  ;;  %v7459_v20 = vld [vmem:[#allocation2 + $0x6c] sm:$0xfe]   ;;  %v2992_v31 = vsel %vm2168_vm6, %v2990_v3, %v2991_v8 }
 0x22c   : > { %v2993_v24 = vrot.slane %v7459_v20, 1  ;;  %v2659_v30 = vor.u32 %v2658_v21, %v2654_v29  ;;  %v7466_v47 = vld [vmem:[#allocation2 + $0x74] ss:$0 sps:$4 sm:$0x11]   ;;  %v7479_v21 = vld [vmem:[#allocation9 + $0x228] sm:$0xff]  }
 0x22d   : > { %5094 = vmatmul.mubr.bf16.gmra.mrb[84].mxu0 %v7416_v25  ;;  %v2634_v25 = vrot.slane %v2632_v19, 1  ;;  %7043 = vmatpush3.bf16.msra.mxu1 %v7449_v35  ;;  %v7462_v19 = vld [vmem:[#allocation2 + $0x78] sm:$0xff]   ;;  %v2673_v26 = vshll.u32 %v7466_v47, 16  ;;  %v7473_v3 = vld [vmem:[#allocation2 + $0x80] ss:$0 sps:$4 sm:$0x11]  }
 0x22e   : > { %5101 = vmatprep.mubr.bf16.mxu0 %v3405_v27  ;;  %v3443_v27 = vshrl.u32 %v7447_v52, 16  ;;  %v3469_v52 = vshll.u32 %v7462_v19, 16  ;;  %v2685_v33 = vshll.u32 %v7473_v3, 16  ;;  %v7480_v20 = vld [vmem:[#allocation2 + $0x84] sm:$0xff]  }
 0x22f   : > { %v2635_v45 = vor.u32 %v2634_v25, %v2630_v49  ;;  %v2663_v49 = vrot.slane %v2661_v14, 1  ;;  %v7463_v25 = vld [vmem:[#allocation2 + $0x80] ss:$0 sps:$4 sm:$0x11]  }
 0x230   : > { %4941 = vmatmul.mubr.bf16.gmra.mrb[88].mxu1 %v2604_v46  ;;  %v2988_v46 = vrot.slane %v7445_v9, 1  ;;  %v3448_v10 = vor.u32 %v3447_v38, %v3443_v27  ;;  %v7465_v9 = vld [vmem:[#allocation2 + $0x6c] sm:$0xff]   ;;  %v7472_v38 = vld [vmem:[#allocation2 + $0x78] sm:$0xff]   ;;  %v7486_v42 = vld [vmem:[#allocation2 + $0xa4] ss:$0 sps:$4 sm:$0x11]  }
 0x231   : > { %4948 = vmatprep.mubr.bf16.mxu1 %v2980_v15  ;;  %v7451_v15 = vld [vmem:[#allocation2 + $0x5c] ss:$0 sps:$4 sm:$0x11]   ;;  %v2640_v59 = vsel %vm1767_vm5, %v2635_v45, %v2639_v37  ;;  %v3467_v37 = vshrl.u32 %v7462_v19, 16  ;;  %v2666_v27 = vshrl.u32 %v7465_v9, 16  ;;  %v2664_v41 = vsel %vm1767_vm5, %v2659_v30, %v2663_v49 }
 0x232   : > { %v2649_v61 = vshll.u32 %v7451_v15, 16  ;;  %v2989_v11 = vsel %vm2168_vm6, %v2987_v18, %v2988_v46  ;;  %v3453_v58 = vsel %vm1767_vm5, %v3448_v10, %v3452_v1  ;;  %v3471_v18 = vrot.slane %v3469_v52, 1  ;;  %v7468_v45 = vld [vmem:[#allocation2 + $0x80] ss:$0 sps:$4 sm:$0x11]  }
 0x233   : > { %v2995_v46 = vsel %vm2168_vm6, %v2993_v24, %v2994_v28  ;;  %v2997_v60 = vrot.slane %v7468_v45, 1  ;;  %v2692_v49 = vshll.u32 %v7480_v20, 16  ;;  %v2690_v24 = vshrl.u32 %v7480_v20, 16  ;;  %v7482_v28 = vld [vmem:[#allocation2 + $0x90] sm:$0xfe]  }
 0x234   : > { %v2651_v5 = vrot.slane %v2649_v61, 1  ;;  %v7487_v45 = vld [vmem:[#allocation2 + $0x90] sm:$0xff]  }
 0x235   : > { %5102 = vmatmul.mubr.bf16.gmra.mrb[88].mxu0 %v7424_v56  ;;  %v2644_v56 = vshll.u32 %v7450_v63, 16  ;;  %v7470_v63 = vld [vmem:[#allocation2 + $0x84] sm:$0xff]   ;;  %v2998_v8 = vsel %vm2168_vm6, %v2996_v44, %v2997_v60  ;;  %v2694_v52 = vrot.slane %v2692_v49, 1 }
 0x236   : > { %5109 = vmatprep.mubr.bf16.mxu0 %v3417_v40  ;;  %v7455_v40 = vld [vmem:[#allocation2 + $0x6c] sm:$0xff]   ;;  %v3479_v1 = vshrl.u32 %v7470_v63, 16 }
 0x237   : > { %v2646_v4 = vrot.slane %v2644_v56, 1  ;;  %v3455_v57 = vshrl.u32 %v7455_v40, 16  ;;  %v3472_v56 = vor.u32 %v3471_v18, %v3467_v37  ;;  %v7476_v18 = vld [vmem:[#allocation2 + $0x84] sm:$0xff]  }
 0x238   : > { %4949 = vmatmul.mubr.bf16.gmra.mrb[92].mxu1 %v2616_v34  ;;  %v6512_v34 = vpop.f32.mrb[19].mxu1  ;;  %v7497_v49 = vld [vmem:[#allocation2 + $0xa8] sm:$0xfe]  }
 0x239   : > { %4956 = vmatprep.mubr.bf16.mxu1 %v2983_v2  ;;  %v2647_v7 = vor.u32 %v2646_v4, %v2642_v32  ;;  %v3457_v2 = vshll.u32 %v7455_v40, 16  ;;  %v7461_v32 = vld [vmem:[#allocation2 + $0x6c] sm:$0xff]   ;;  %v2680_v4 = vshll.u32 %v7472_v38, 16  ;;  %v2678_v40 = vshrl.u32 %v7472_v38, 16 }
 0x23a   : > { %v2704_v38 = vshll.u32 %v7487_v45, 16 }
 0x23b   : > { %v3459_v17 = vrot.slane %v3457_v2, 1  ;;  %v2652_v22 = vsel %vm1767_vm5, %v2647_v7, %v2651_v5  ;;  %v2682_v7 = vrot.slane %v2680_v4, 1  ;;  %v7477_v2 = vld [vmem:[#allocation2 + $0x90] sm:$0xff]  }
 0x23c   : > { %v3491_v19 = vshrl.u32 %v7477_v2, 16 }
 0x23d   : > { %5110 = vmatmul.mubr.bf16.gmra.mrb[92].mxu0 %v7431_v50  ;;  %v8532_v50 = vadd.f32 %v6512_v34, %v8520_v62  ;;  %v3460_v13 = vor.u32 %v3459_v17, %v3455_v57  ;;  %v3464_v62 = vrot.slane %v3462_v6, 1  ;;  %v7474_v34 = vld [vmem:[#allocation2 + $0x84] sm:$0xfe]   ;;  %v7475_v57 = vld [vmem:[#allocation2 + $0x8c] ss:$0 sps:$4 sm:$0x11]   ;;  %v2683_v29 = vor.u32 %v2682_v7, %v2678_v40 }
 0x23e   : > { %5117 = vmatprep.mubr.bf16.mxu0 %v3429_v16  ;;  %v7454_v16 = vld [vmem:[#allocation2 + $0x60] sm:$0xff]   ;;  %v7469_v6 = vld [vmem:[#allocation2 + $0x78] sm:$0xff]   ;;  %v2999_v14 = vrot.slane %v7474_v34, 1  ;;  %v3000_v39 = vrot.slane %v7475_v57, 1  ;;  %v7484_v40 = vld [vmem:[#allocation2 + $0x90] sm:$0xff]  }
 0x23f   : > { %v3465_v35 = vsel %vm1767_vm5, %v3460_v13, %v3464_v62  ;;  %v7478_v17 = vld [vmem:[#allocation2 + $0x98] ss:$0 sps:$4 sm:$0x11]   ;;  %v7481_v62 = vld [vmem:[#allocation2 + $0x8c] ss:$0 sps:$4 sm:$0x11]  }
 0x240   : > { %4957 = vmatmul.mubr.bf16.gmra.mrb[96].mxu1 %v2628_v48  ;;  %v7464_v48 = vld [vmem:[#allocation9 + $0x220] sm:$0xff]  }
 0x241   : > { %4964 = vmatprep.mubr.bf16.mxu1 %v2986_v36  ;;  %v3474_v36 = vshll.u32 %v7463_v25, 16  ;;  %7044 = vmatprep.subr.bf16.mxu1 %v7464_v48  ;;  %v7485_v25 = vld [vmem:[#allocation2 + $0x9c] sm:$0xff]  }
 0x242   : > { %7045 = vmatpush3.bf16.msra.mxu1 %v7464_v48  ;;  %v2697_v48 = vshll.u32 %v7481_v62, 16  ;;  %v3503_v37 = vshrl.u32 %v7485_v25, 16 }
 0x243   : > { %v3476_v15 = vrot.slane %v3474_v36, 1  ;;  %7046 = vmatprep.subr.bf16.mxu1 %v7479_v21  ;;  %v7483_v36 = vld [vmem:[#allocation2 + $0x98] ss:$0 sps:$4 sm:$0x11]  }
 0x244   : > { %v2699_v47 = vrot.slane %v2697_v48, 1 }
 0x245   : > { %5118 = vmatmul.mubr.bf16.gmra.mrb[96].mxu0 %v7439_v43  ;;  %v2668_v43 = vshll.u32 %v7465_v9, 16  ;;  %v3001_v9 = vsel %vm2168_vm6, %v2999_v14, %v3000_v39  ;;  %v7496_v39 = vld [vmem:[#allocation2 + $0xa4] ss:$0 sps:$4 sm:$0x11]  }
 0x246   : > { %5125 = vmatprep.mubr.bf16.mxu0 %v3441_v55  ;;  %v2675_v55 = vrot.slane %v2673_v26, 1  ;;  %7047 = vmatpush3.bf16.msra.mxu1 %v7479_v21  ;;  %v2695_v26 = vor.u32 %v2694_v52, %v2690_v24 }
 0x247   : > { %v2670_v53 = vrot.slane %v2668_v43, 1  ;;  %v3002_v43 = vrot.slane %v7482_v28, 1  ;;  %v3008_v28 = vrot.slane %v7497_v49, 1 }
 0x248   : > { %4965 = vmatmul.mubr.bf16.gmra.mrb[100].mxu1 %v2640_v59  ;;  %v3481_v59 = vshll.u32 %v7470_v63, 16  ;;  %v3510_v63 = vshll.u32 %v7486_v42, 16 }
 0x249   : > { %4972 = vmatprep.mubr.bf16.mxu1 %v2989_v11  ;;  %v2671_v61 = vor.u32 %v2670_v53, %v2666_v27  ;;  %v7471_v11 = vld [vmem:[#allocation2 + $0x8c] ss:$0 sps:$4 sm:$0x11]  }
 0x24a   : > { %v3486_v5 = vshll.u32 %v7471_v11, 16  ;;  %v3483_v10 = vrot.slane %v3481_v59, 1  ;;  %v3512_v44 = vrot.slane %v3510_v63, 1  ;;  %v7489_v11 = vld [vmem:[#allocation2 + $0x9c] sm:$0xfe]  }
 0x24b   : > { %v2676_v0 = vsel %vm1767_vm5, %v2671_v61, %v2675_v55  ;;  %v2702_v55 = vshrl.u32 %v7487_v45, 16  ;;  %v2706_v61 = vrot.slane %v2704_v38, 1 }
 0x24c   : > { %v3488_v54 = vrot.slane %v3486_v5, 1  ;;  %v3484_v12 = vor.u32 %v3483_v10, %v3479_v1  ;;  %v7490_v5 = vld [vmem:[#allocation2 + $0xa4] ss:$0 sps:$4 sm:$0x11]  }
 0x24d   : > { %5126 = vmatmul.mubr.bf16.gmra.mrb[100].mxu0 %v7446_v51  ;;  %v3477_v51 = vsel %vm1767_vm5, %v3472_v56, %v3476_v15  ;;  %v7488_v15 = vld [vmem:[#allocation2 + $0x98] ss:$0 sps:$4 sm:$0x11]   ;;  %v2700_v56 = vsel %vm1767_vm5, %v2695_v26, %v2699_v47  ;;  %v3006_v34 = vrot.slane %v7490_v5, 1 }
 0x24e   : > { %5133 = vmatprep.mubr.bf16.mxu0 %v3453_v58  ;;  %v2687_v58 = vrot.slane %v2685_v33, 1  ;;  %v2709_v60 = vshll.u32 %v7488_v15, 16  ;;  %v3005_v33 = vrot.slane %v7489_v11, 1 }
 0x250   : > { %4973 = vmatmul.mubr.bf16.gmra.mrb[104].mxu1 %v2652_v22  ;;  %v3493_v22 = vshll.u32 %v7477_v2, 16  ;;  %v2688_v30 = vsel %vm1767_vm5, %v2683_v29, %v2687_v58  ;;  %v2711_v10 = vrot.slane %v2709_v60, 1  ;;  %v3007_v62 = vsel %vm2168_vm6, %v3005_v33, %v3006_v34  ;;  %v7505_v33 = vld [vmem:[#allocation2 + $0xbc] ss:$0 sps:$4 sm:$0x11]   ;;  %v7507_v34 = vld [vmem:[#allocation2 + $0xc0] sm:$0xff]  }
 0x251   : > { %4980 = vmatprep.mubr.bf16.mxu1 %v2992_v31  ;;  %v3498_v31 = vshll.u32 %v7478_v17, 16 }
 0x252   : > { %v3495_v13 = vrot.slane %v3493_v22, 1  ;;  %v7495_v22 = vld [vmem:[#allocation2 + $0x9c] sm:$0xff]  }
 0x254   : > { %v3496_v27 = vor.u32 %v3495_v13, %v3491_v19  ;;  %v2714_v19 = vshrl.u32 %v7495_v22, 16  ;;  %v2716_v13 = vshll.u32 %v7495_v22, 16  ;;  %v3539_v22 = vshrl.u32 %v7507_v34, 16 }
 0x255   : > { %5134 = vmatmul.mubr.bf16.gmra.mrb[104].mxu0 %v7454_v16  ;;  %v3489_v16 = vsel %vm1767_vm5, %v3484_v12, %v3488_v54  ;;  %v2707_v54 = vor.u32 %v2706_v61, %v2702_v55  ;;  %v7494_v12 = vld [vmem:[#allocation9 + $0x230] sm:$0xff]  }
 0x256   : > { %5141 = vmatprep.mubr.bf16.mxu0 %v3465_v35  ;;  %v3500_v35 = vrot.slane %v3498_v31, 1  ;;  %7048 = vmatprep.subr.bf16.mxu1 %v7494_v12  ;;  %v2718_v24 = vrot.slane %v2716_v13, 1 }
 0x257   : > { %7049 = vmatpush3.bf16.msra.mxu1 %v7494_v12  ;;  %v7509_v12 = vld [vmem:[#allocation9 + $0x238] sm:$0xff]  }
 0x258   : > { %4981 = vmatmul.mubr.bf16.gmra.mrb[108].mxu1 %v2664_v41  ;;  %v3505_v41 = vshll.u32 %v7485_v25, 16  ;;  %v7500_v25 = vld [vmem:[#allocation2 + $0xb4] sm:$0xff]   ;;  %v2719_v47 = vor.u32 %v2718_v24, %v2714_v19  ;;  %7050 = vmatprep.subr.bf16.mxu1 %v7509_v12 }
 0x259   : > { %4988 = vmatprep.mubr.bf16.mxu1 %v2995_v46  ;;  %v3003_v46 = vrot.slane %v7483_v36, 1 }
 0x25a   : > { %v3507_v53 = vrot.slane %v3505_v41, 1  ;;  %v3529_v41 = vshll.u32 %v7500_v25, 16 }
 0x25b   : > { %v3004_v1 = vsel %vm2168_vm6, %v3002_v43, %v3003_v46  ;;  %v7501_v43 = vld [vmem:[#allocation2 + $0xbc] ss:$0 sps:$4 sm:$0x11]   ;;  %7051 = vmatpush3.bf16.msra.mxu1 %v7509_v12  ;;  %v7518_v12 = vld [vmem:[#allocation2 + $0xd4] ss:$0 sps:$4 sm:$0x11]  }
 0x25c   : > { %v3531_v55 = vrot.slane %v3529_v41, 1  ;;  %v3534_v38 = vshll.u32 %v7501_v43, 16  ;;  %v7515_v41 = vld [vmem:[#allocation2 + $0xc0] sm:$0xff]  }
 0x25d   : > { %5142 = vmatmul.mubr.bf16.gmra.mrb[108].mxu0 %v7461_v32  ;;  %v3501_v32 = vsel %vm1767_vm5, %v3496_v27, %v3500_v35  ;;  %v7502_v35 = vld [vmem:[#allocation2 + $0xa8] sm:$0xff]  }
 0x25e   : > { %5149 = vmatprep.mubr.bf16.mxu0 %v3477_v51  ;;  %v2726_v61 = vshrl.u32 %v7502_v35, 16  ;;  %v2728_v60 = vshll.u32 %v7502_v35, 16  ;;  %v3536_v5 = vrot.slane %v3534_v38, 1  ;;  %v7511_v35 = vld [vmem:[#allocation2 + $0xbc] ss:$0 sps:$4 sm:$0x11]  }
 0x260   : > { %4989 = vmatmul.mubr.bf16.gmra.mrb[112].mxu1 %v2676_v0  ;;  %v3508_v0 = vor.u32 %v3507_v53, %v3503_v37  ;;  %v3527_v37 = vshrl.u32 %v7500_v25, 16 }
 0x261   : > { %4996 = vmatprep.mubr.bf16.mxu1 %v2998_v8  ;;  %v7492_v8 = vld [vmem:[#allocation2 + $0xa8] sm:$0xff]  }
 0x262   : > { %v3515_v58 = vshrl.u32 %v7492_v8, 16  ;;  %v3517_v17 = vshll.u32 %v7492_v8, 16  ;;  %v3513_v21 = vsel %vm1767_vm5, %v3508_v0, %v3512_v44  ;;  %v7499_v0 = vld [vmem:[#allocation2 + $0xa8] sm:$0xff]  }
 0x264   : > { %v3519_v20 = vrot.slane %v3517_v17, 1 }
 0x265   : > { %5150 = vmatmul.mubr.bf16.gmra.mrb[112].mxu0 %v7469_v6  ;;  %v7493_v6 = vld [vmem:[#allocation2 + $0xb0] ss:$0 sps:$4 sm:$0x11]  }
 0x266   : > { %5157 = vmatprep.mubr.bf16.mxu0 %v3489_v16  ;;  %v3522_v14 = vshll.u32 %v7493_v6, 16  ;;  %v7498_v16 = vld [vmem:[#allocation2 + $0xb0] ss:$0 sps:$4 sm:$0x11]   ;;  %v3520_v52 = vor.u32 %v3519_v20, %v3515_v58 }
 0x268   : > { %4997 = vmatmul.mubr.bf16.gmra.mrb[116].mxu1 %v2688_v30  ;;  %v3524_v31 = vrot.slane %v3522_v14, 1  ;;  %v7491_v30 = vld [vmem:[#allocation2 + $0x9c] sm:$0xff]   ;;  %v3012_v14 = vrot.slane %v7505_v33, 1 }
 0x269   : > { %5004 = vmatprep.mubr.bf16.mxu1 %v3001_v9  ;;  %v3009_v9 = vrot.slane %v7498_v16, 1 }
 0x26a   : > { %v3525_v46 = vsel %vm1767_vm5, %v3520_v52, %v3524_v31 }
 0x26c   : > { %v6620_v59 = vpop.f32.mrb[16].mxu0 }
 0x26d   : > { %5158 = vmatmul.mubr.bf16.gmra.mrb[116].mxu0 %v7476_v18  ;;  %v6621_v4 = vpop.f32.mrb[17].mxu0 }
 0x26e   : > { %5165 = vmatprep.mubr.bf16.mxu0 %v3501_v32  ;;  %v6622_v3 = vadd.f32 %v6621_v4, %v6620_v59  ;;  %v6623_v51 = vpop.f32.mrb[18].mxu0  ;;  %v7503_v59 = vld [vmem:[#allocation2 + $0xb0] ss:$0 sps:$4 sm:$0x11]   ;;  %v3010_v4 = vsel %vm2168_vm6, %v3008_v28, %v3009_v9 }
 0x26f   : > { %v6624_v7 = vpop.f32.mrb[19].mxu0 }
 0x270   : > { %5005 = vmatmul.mubr.bf16.gmra.mrb[120].mxu1 %v2700_v56  ;;  %v8550_v57 = vadd.f32 %v6622_v3, %v8506_v23  ;;  %v6625_v2 = vadd.f32 %v6624_v7, %v6623_v51  ;;  %v2712_v23 = vsel %vm1767_vm5, %v2707_v54, %v2711_v10  ;;  %v2730_v3 = vrot.slane %v2728_v60, 1  ;;  %v7504_v10 = vld [vmem:[#allocation2 + $0xb4] sm:$0xfe]  }
 0x271   : > { %5012 = vmatprep.mubr.bf16.mxu1 %v3004_v1  ;;  %v2733_v51 = vshll.u32 %v7503_v59, 16  ;;  %v3532_v7 = vor.u32 %v3531_v55, %v3527_v37  ;;  %v3011_v6 = vrot.slane %v7504_v10, 1  ;;  %v2752_v10 = vshll.u32 %v7515_v41, 16 }
 0x272   : > { %v8553_v29 = vadd.f32 %v6625_v2, %v8532_v50  ;;  %v2721_v50 = vshll.u32 %v7496_v39, 16  ;;  %v2731_v2 = vor.u32 %v2730_v3, %v2726_v61 }
 0x273   : > { %v2735_v54 = vrot.slane %v2733_v51, 1  ;;  %v3013_v25 = vsel %vm2168_vm6, %v3011_v6, %v3012_v14  ;;  %v2754_v6 = vrot.slane %v2752_v10, 1 }
 0x274   : > { %v2723_v48 = vrot.slane %v2721_v50, 1  ;;  %v3541_v50 = vshll.u32 %v7507_v34, 16  ;;  %v7516_v34 = vld [vmem:[#allocation2 + $0xc8] ss:$0 sps:$4 sm:$0x11]  }
 0x275   : > { %5166 = vmatmul.mubr.bf16.gmra.mrb[120].mxu0 %v7484_v40  ;;  %v2736_v24 = vsel %vm1767_vm5, %v2731_v2, %v2735_v54 }
 0x276   : > { %5173 = vmatprep.mubr.bf16.mxu0 %v3513_v21  ;;  %v2724_v44 = vsel %vm1767_vm5, %v2719_v47, %v2723_v48  ;;  %v3543_v28 = vrot.slane %v3541_v50, 1 }
 0x278   : > { %5013 = vmatmul.mubr.bf16.gmra.mrb[124].mxu1 %v2712_v23  ;;  %v3537_v23 = vsel %vm1767_vm5, %v3532_v7, %v3536_v5 }
 0x279   : > { %5020 = vmatprep.mubr.bf16.mxu1 %v3007_v62  ;;  %v7508_v62 = vld [vmem:[#allocation2 + $0xc8] ss:$0 sps:$4 sm:$0x11]  }
 0x27a   : > { %v6514_v36 = vpop.f32.mrb[20].mxu1  ;;  %v3546_v9 = vshll.u32 %v7508_v62, 16 }
 0x27b   : > { %v6515_v18 = vpop.f32.mrb[21].mxu1  ;;  %v6626_v27 = vpop.f32.mrb[20].mxu0 }
 0x27c   : > { %v6516_v26 = vadd.f32 %v6515_v18, %v6514_v36  ;;  %v6517_v42 = vpop.f32.mrb[22].mxu1  ;;  %v6627_v45 = vpop.f32.mrb[21].mxu0  ;;  %v7506_v18 = vld [vmem:[#allocation2 + $0xb4] sm:$0xff]   ;;  %v3548_v43 = vrot.slane %v3546_v9, 1 }
 0x27d   : > { %5174 = vmatmul.mubr.bf16.gmra.mrb[124].mxu0 %v7491_v30  ;;  %v6628_v53 = vadd.f32 %v6627_v45, %v6626_v27  ;;  %v6518_v63 = vpop.f32.mrb[23].mxu1  ;;  %v6629_v15 = vpop.f32.mrb[22].mxu0  ;;  %v7510_v30 = vld [vmem:[#allocation2 + $0xb4] sm:$0xff]   ;;  %v3544_v27 = vor.u32 %v3543_v28, %v3539_v22  ;;  %v2745_v45 = vshll.u32 %v7511_v35, 16  ;;  %v2757_v22 = vshll.u32 %v7516_v34, 16  ;;  %v7553_v28 = vld [vmem:[#allocation10 + $0x8] sm:$0xff]  }
 0x27e   : > { %5181 = vmatprep.mubr.bf16.mxu0 %v3525_v46  ;;  %v6519_v32 = vadd.f32 %v6518_v63, %v6517_v42  ;;  %v6630_v56 = vpop.f32.mrb[23].mxu0  ;;  %v2738_v36 = vshrl.u32 %v7510_v30, 16  ;;  %v2740_v47 = vshll.u32 %v7510_v30, 16  ;;  %v7512_v46 = vld [vmem:[#allocation2 + $0xc0] sm:$0xfe]  }
 0x27f   : > { %v8560_v11 = vadd.f32 %v6628_v53, %v6516_v26  ;;  %v6631_v1 = vadd.f32 %v6630_v56, %v6629_v15  ;;  %v7517_v53 = vld [vmem:[#allocation2 + $0xcc] sm:$0xff]   ;;  %v7513_v15 = vld [vmem:[#allocation2 + $0xc8] ss:$0 sps:$4 sm:$0x11]   ;;  %v2747_v56 = vrot.slane %v2745_v45, 1  ;;  %v3549_v59 = vsel %vm1767_vm5, %v3544_v27, %v3548_v43 }
 0x280   : > { %5021 = vmatmul.mubr.bf16.gmra.mrb[128].mxu1 %v2724_v44  ;;  %v2742_v42 = vrot.slane %v2740_v47, 1  ;;  %v3014_v44 = vrot.slane %v7512_v46, 1  ;;  %v3553_v2 = vshll.u32 %v7517_v53, 16  ;;  %v2759_v50 = vrot.slane %v2757_v22, 1 }
 0x281   : > { %5028 = vmatprep.mubr.bf16.mxu1 %v3010_v4  ;;  %v8563_v40 = vadd.f32 %v6631_v1, %v6519_v32  ;;  %v3015_v1 = vrot.slane %v7513_v15, 1  ;;  %v2750_v4 = vshrl.u32 %v7515_v41, 16  ;;  %v7522_v41 = vld [vmem:[#allocation2 + $0x24] sm:$0xfe]  }
 0x282   : > { %v6520_v8 = vpop.f32.mrb[24].mxu1  ;;  %v2743_v32 = vor.u32 %v2742_v42, %v2738_v36  ;;  %v7523_v46 = vld [vmem:[#allocation2 + $0x2c] ss:$0 sps:$4 sm:$0x11]  }
 0x283   : > { %v6521_v58 = vpop.f32.mrb[25].mxu1  ;;  %v6632_v17 = vpop.f32.mrb[24].mxu0  ;;  %v3016_v33 = vsel %vm2168_vm6, %v3014_v44, %v3015_v1 }
 0x284   : > { %v6522_v21 = vadd.f32 %v6521_v58, %v6520_v8  ;;  %v6523_v20 = vpop.f32.mrb[26].mxu1  ;;  %v6633_v39 = vpop.f32.mrb[25].mxu0  ;;  %v2748_v51 = vsel %vm1767_vm5, %v2743_v32, %v2747_v56  ;;  %v3551_v8 = vshrl.u32 %v7517_v53, 16  ;;  %v7552_v58 = vld [vmem:[#allocation10] sm:$0xff]   ;;  %v7524_v32 = vld [vmem:[#allocation2 + $0x30] sm:$0xfe]  }
 0x285   : > { %5182 = vmatmul.mubr.bf16.gmra.mrb[128].mxu0 %v7499_v0  ;;  %v6634_v31 = vadd.f32 %v6633_v39, %v6632_v17  ;;  %v6524_v19 = vpop.f32.mrb[27].mxu1  ;;  %v6635_v13 = vpop.f32.mrb[26].mxu0  ;;  %v2755_v39 = vor.u32 %v2754_v6, %v2750_v4  ;;  %7084 = vmatprep.subr.bf16.mxu0 %v7552_v58  ;;  %v7525_v56 = vld [vmem:[#allocation2 + $0x38] ss:$0 sps:$4 sm:$0x11]   ;;  %v3776_v1 = vrot.slane %v7524_v32, 1 }
 0x286   : > { %5189 = vmatprep.mubr.bf16.mxu0 %v3537_v23  ;;  %v6525_v49 = vadd.f32 %v6524_v19, %v6523_v20  ;;  %v6636_v16 = vpop.f32.mrb[27].mxu0  ;;  %v3558_v23 = vshll.u32 %v7518_v12, 16  ;;  %7085 = vmatpush3.bf16.msra.mxu0 %v7552_v58  ;;  %v3777_v4 = vrot.slane %v7525_v56, 1  ;;  %v7528_v12 = vld [vmem:[#allocation2 + $0x48] sm:$0xfe]  }
 0x287   : > { %v8568_v52 = vadd.f32 %v6634_v31, %v6522_v21  ;;  %v6637_v48 = vadd.f32 %v6636_v16, %v6635_v13  ;;  %v3555_v21 = vrot.slane %v3553_v2, 1  ;;  %v7519_v31 = vld [vmem:[#allocation2 + $0x18] sm:$0xfe]   ;;  %v7514_v13 = vld [vmem:[#allocation2 + $0xc0] sm:$0xff]   ;;  %v2760_v27 = vsel %vm1767_vm5, %v2755_v39, %v2759_v50  ;;  %7086 = vmatprep.subr.bf16.mxu0 %v7553_v28 }
 0x288   : > { %5029 = vmatmul.mubr.bf16.gmra.mrb[132].mxu1 %v2736_v24  ;;  %v7520_v16 = vld [vmem:[#allocation2 + $0x20] ss:$0 sps:$4 sm:$0x11]   ;;  %v3560_v30 = vrot.slane %v3558_v23, 1  ;;  %v3778_v6 = vsel %vm2168_vm6, %v3776_v1, %v3777_v4 }
 0x289   : > { %5036 = vmatprep.mubr.bf16.mxu1 %v3013_v25  ;;  %v8570_v37 = vadd.f32 %v6637_v48, %v6525_v49  ;;  %v3556_v49 = vor.u32 %v3555_v21, %v3551_v8  ;;  %v3770_v48 = vrot.slane %v7519_v31, 1  ;;  %v3771_v36 = vrot.slane %v7520_v16, 1  ;;  %v7527_v8 = vld [vmem:[#allocation2 + $0x44] ss:$0 sps:$4 sm:$0x11]  }
 0x28a   : > { %7087 = vmatpush3.bf16.msra.mxu0 %v7553_v28  ;;  %v7529_v58 = vld [vmem:[#allocation2 + $0x50] ss:$0 sps:$4 sm:$0x11]   ;;  %v3780_v23 = vrot.slane %v7527_v8, 1  ;;  %v3782_v31 = vrot.slane %v7528_v12, 1 }
 0x28b   : > { %v6526_v26 = vpop.f32.mrb[28].mxu1  ;;  %v3561_v43 = vsel %vm1767_vm5, %v3556_v49, %v3560_v30  ;;  %v3772_v45 = vsel %vm2168_vm6, %v3770_v48, %v3771_v36  ;;  %v3783_v50 = vrot.slane %v7529_v58, 1  ;;  %v7531_v30 = vld [vmem:[#allocation2 + $0x5c] ss:$0 sps:$4 sm:$0x11]  }
 0x28c   : > { %v6527_v63 = vpop.f32.mrb[29].mxu1  ;;  %v6638_v61 = vpop.f32.mrb[28].mxu0 }
 0x28d   : > { %v6528_v55 = vadd.f32 %v6527_v63, %v6526_v26  ;;  %v6529_v38 = vpop.f32.mrb[30].mxu1  ;;  %5190 = vmatmul.mubr.bf16.gmra.mrb[132].mxu0 %v7506_v18  ;;  %v6639_v5 = vpop.f32.mrb[29].mxu0  ;;  %v7521_v63 = vld [vmem:[#allocation2 + $0xcc] sm:$0xff]   ;;  %v3784_v36 = vsel %vm2168_vm6, %v3782_v31, %v3783_v50 }
 0x28e   : > { %v6530_v60 = vpop.f32.mrb[31].mxu1  ;;  %5197 = vmatprep.mubr.bf16.mxu0 %v3549_v59  ;;  %v6640_v0 = vadd.f32 %v6639_v5, %v6638_v61  ;;  %v6641_v7 = vpop.f32.mrb[30].mxu0  ;;  %v3774_v59 = vrot.slane %v7523_v46, 1 }
 0x28f   : > { %v6531_v3 = vadd.f32 %v6530_v60, %v6529_v38  ;;  %v6642_v54 = vpop.f32.mrb[31].mxu0  ;;  %v3773_v38 = vrot.slane %v7522_v41, 1 }
 0x290   : > { %5037 = vmatmul.mubr.bf16.gmra.mrb[136].mxu1 %v2748_v51  ;;  %v8575_v17 = vadd.f32 %v6640_v0, %v6528_v55  ;;  %v6643_v14 = vadd.f32 %v6642_v54, %v6641_v7  ;;  %v7526_v51 = vld [vmem:[#allocation2 + $0x3c] sm:$0xfe]  }
 0x291   : > { %5044 = vmatprep.mubr.bf16.mxu1 %v3016_v33  ;;  %v3775_v34 = vsel %vm2168_vm6, %v3773_v38, %v3774_v59  ;;  %v3779_v39 = vrot.slane %v7526_v51, 1 }
 0x292   : > { %v8577_v19 = vadd.f32 %v6643_v14, %v6531_v3 }
 0x293   : > { %v6532_v20 = vpop.f32.mrb[32].mxu1  ;;  %v3781_v28 = vsel %vm2168_vm6, %v3779_v39, %v3780_v23 }
 0x294   : > { %v6533_v62 = vpop.f32.mrb[33].mxu1 }
 0x295   : > { %v6534_v24 = vadd.f32 %v6533_v62, %v6532_v20  ;;  %v6535_v25 = vpop.f32.mrb[34].mxu1  ;;  %5198 = vmatmul.mubr.bf16.gmra.mrb[136].mxu0 %v7514_v13 }
 0x296   : > { %v6644_v9 = vpop.f32.mrb[32].mxu0  ;;  %v6536_v35 = vpop.f32.mrb[35].mxu1  ;;  %5205 = vmatprep.mubr.bf16.mxu0 %v3561_v43 }
 0x297   : > { %v6645_v47 = vpop.f32.mrb[33].mxu0  ;;  %v6537_v18 = vadd.f32 %v6536_v35, %v6535_v25  ;;  %v7554_v35 = vld [vmem:[#allocation10 + $0x10] sm:$0xff]  }
 0x298   : > { %v6646_v26 = vadd.f32 %v6645_v47, %v6644_v9  ;;  %v6647_v42 = vpop.f32.mrb[34].mxu0  ;;  %5045 = vmatmul.mubr.bf16.gmra.mrb[140].mxu1 %v2760_v27  ;;  %v7532_v9 = vld [vmem:[#allocation2 + $0x60] sm:$0xfe]   ;;  %v7533_v47 = vld [vmem:[#allocation2 + $0x68] ss:$0 sps:$4 sm:$0x11]   ;;  %7088 = vmatprep.subr.bf16.mxu0 %v7554_v35 }
 0x299   : > { %v6648_v53 = vpop.f32.mrb[35].mxu0  ;;  %7052 = vmatprep.mubr.bf16.mxu1 %v3772_v45  ;;  %7089 = vmatpush3.bf16.msra.mxu0 %v7554_v35  ;;  %v3786_v45 = vrot.slane %v7531_v30, 1  ;;  %v7540_v30 = vld [vmem:[#allocation2 + $0x90] sm:$0xfe]  }
 0x29a   : > { %v8582_v15 = vadd.f32 %v6646_v26, %v6534_v24  ;;  %v6649_v55 = vadd.f32 %v6648_v53, %v6647_v42  ;;  %v7530_v24 = vld [vmem:[#allocation2 + $0x54] sm:$0xfe]  }
 0x29b   : > { %v6538_v44 = vpop.f32.mrb[36].mxu1  ;;  %v3785_v42 = vrot.slane %v7530_v24, 1 }
 0x29c   : > { %v8584_v61 = vadd.f32 %v6649_v55, %v6537_v18  ;;  %v6539_v60 = vpop.f32.mrb[37].mxu1  ;;  %v3789_v55 = vrot.slane %v7533_v47, 1 }
 0x29d   : > { %v6540_v5 = vadd.f32 %v6539_v60, %v6538_v44  ;;  %v6541_v3 = vpop.f32.mrb[38].mxu1  ;;  %5206 = vmatmul.mubr.bf16.gmra.mrb[140].mxu0 %v7521_v63  ;;  %v3788_v63 = vrot.slane %v7532_v9, 1  ;;  %v7535_v60 = vld [vmem:[#allocation2 + $0x74] ss:$0 sps:$4 sm:$0x11]  }
 0x29e   : > { %v6650_v10 = vpop.f32.mrb[36].mxu0  ;;  %v6542_v0 = vpop.f32.mrb[39].mxu1  ;;  %v7541_v9 = vld [vmem:[#allocation2 + $0x98] ss:$0 sps:$4 sm:$0x11]  }
 0x29f   : > { %v6651_v7 = vpop.f32.mrb[37].mxu0  ;;  %v6543_v33 = vadd.f32 %v6542_v0, %v6541_v3  ;;  %v7534_v3 = vld [vmem:[#allocation2 + $0x6c] sm:$0xfe]   ;;  %v3790_v51 = vsel %vm2168_vm6, %v3788_v63, %v3789_v55  ;;  %v7537_v0 = vld [vmem:[#allocation2 + $0x80] ss:$0 sps:$4 sm:$0x11]  }
 0x2a0   : > { %v6652_v2 = vadd.f32 %v6651_v7, %v6650_v10  ;;  %v6653_v54 = vpop.f32.mrb[38].mxu0  ;;  %7053 = vmatmul.mubr.bf16.vlgmr.msra.gmra.mrb[144].mxu1 %v3775_v34  ;;  %v7536_v10 = vld [vmem:[#allocation2 + $0x78] sm:$0xfe]  }
 0x2a1   : > { %v6654_v14 = vpop.f32.mrb[39].mxu0  ;;  %7056 = vmatprep.mubr.bf16.mxu1 %v3778_v6  ;;  %v3792_v6 = vrot.slane %v7535_v60, 1 }
 0x2a2   : > { %v8588_v22 = vadd.f32 %v6652_v2, %v6540_v5  ;;  %v6655_v21 = vadd.f32 %v6654_v14, %v6653_v54  ;;  %v3787_v5 = vsel %vm2168_vm6, %v3785_v42, %v3786_v45  ;;  %v3791_v54 = vrot.slane %v7534_v3, 1 }
 0x2a3   : > { %v6544_v20 = vpop.f32.mrb[40].mxu1  ;;  %v3794_v14 = vrot.slane %v7536_v10, 1  ;;  %v3800_v45 = vrot.slane %v7540_v30, 1  ;;  %v7545_v10 = vld [vmem:[#allocation2 + $0xb0] ss:$0 sps:$4 sm:$0x11]  }
 0x2a4   : > { %v8590_v13 = vadd.f32 %v6655_v21, %v6543_v33  ;;  %v6545_v62 = vpop.f32.mrb[41].mxu1  ;;  %v3795_v21 = vrot.slane %v7537_v0, 1  ;;  %v7546_v30 = vld [vmem:[#allocation2 + $0xb4] sm:$0xfe]  }
 0x2a5   : > { %v6546_v49 = vadd.f32 %v6545_v62, %v6544_v20  ;;  %v6547_v16 = vpop.f32.mrb[42].mxu1  ;;  %v7538_v62 = vld [vmem:[#allocation2 + $0x84] sm:$0xfe]  }
 0x2a6   : > { %v6548_v25 = vpop.f32.mrb[43].mxu1 }
 0x2a7   : > { %v6549_v48 = vadd.f32 %v6548_v25, %v6547_v16  ;;  %v3793_v25 = vsel %vm2168_vm6, %v3791_v54, %v3792_v6 }
 0x2a8   : > { %7057 = vmatmul.mubr.bf16.gmra.mrb[148].mxu1 %v3781_v28  ;;  %v6656_v18 = vpop.f32.mrb[40].mxu0  ;;  %v3796_v28 = vsel %vm2168_vm6, %v3794_v14, %v3795_v21  ;;  %v3807_v14 = vrot.slane %v7545_v10, 1 }
 0x2a9   : > { %7060 = vmatprep.mubr.bf16.mxu1 %v3784_v36  ;;  %v6657_v27 = vpop.f32.mrb[41].mxu0 }
 0x2aa   : > { %v6658_v43 = vadd.f32 %v6657_v27, %v6656_v18  ;;  %v6659_v41 = vpop.f32.mrb[42].mxu0 }
 0x2ab   : > { %v6550_v26 = vpop.f32.mrb[44].mxu1  ;;  %v6660_v46 = vpop.f32.mrb[43].mxu0 }
 0x2ac   : > { %v6551_v53 = vpop.f32.mrb[45].mxu1  ;;  %v8594_v38 = vadd.f32 %v6658_v43, %v6546_v49  ;;  %v6661_v32 = vadd.f32 %v6660_v46, %v6659_v41  ;;  %v7539_v49 = vld [vmem:[#allocation2 + $0x8c] ss:$0 sps:$4 sm:$0x11]   ;;  %v3797_v43 = vrot.slane %v7538_v62, 1  ;;  %v3801_v46 = vrot.slane %v7541_v9, 1 }
 0x2ad   : > { %v6552_v56 = vadd.f32 %v6551_v53, %v6550_v26  ;;  %v6553_v44 = vpop.f32.mrb[46].mxu1  ;;  %v3798_v41 = vrot.slane %v7539_v49, 1  ;;  %v7556_v62 = vld [vmem:[#allocation10 + $0x20] sm:$0xff]   ;;  %v7548_v9 = vld [vmem:[#allocation2 + $0xc0] sm:$0xfe]  }
 0x2ae   : > { %v6554_v59 = vpop.f32.mrb[47].mxu1  ;;  %v8596_v1 = vadd.f32 %v6661_v32, %v6549_v48  ;;  %v7555_v48 = vld [vmem:[#allocation10 + $0x18] sm:$0xff]   ;;  %v3802_v3 = vsel %vm2168_vm6, %v3800_v45, %v3801_v46  ;;  %v3812_v46 = vrot.slane %v7548_v9, 1 }
 0x2af   : > { %v6555_v4 = vadd.f32 %v6554_v59, %v6553_v44  ;;  %7090 = vmatprep.subr.bf16.mxu0 %v7555_v48  ;;  %v3799_v60 = vsel %vm2168_vm6, %v3797_v43, %v3798_v41  ;;  %v3809_v41 = vrot.slane %v7546_v30, 1 }
 0x2b0   : > { %7061 = vmatmul.mubr.bf16.gmra.mrb[152].mxu1 %v3787_v5  ;;  %v6662_v7 = vpop.f32.mrb[44].mxu0  ;;  %7091 = vmatpush3.bf16.msra.mxu0 %v7555_v48  ;;  %v7543_v5 = vld [vmem:[#allocation2 + $0xa4] ss:$0 sps:$4 sm:$0x11]  }
 0x2b1   : > { %7064 = vmatprep.mubr.bf16.mxu1 %v3790_v51  ;;  %v6663_v33 = vpop.f32.mrb[45].mxu0  ;;  %v7544_v51 = vld [vmem:[#allocation2 + $0xa8] sm:$0xfe]   ;;  %v3804_v54 = vrot.slane %v7543_v5, 1  ;;  %7092 = vmatprep.subr.bf16.mxu0 %v7556_v62 }
 0x2b2   : > { %v6664_v34 = vadd.f32 %v6663_v33, %v6662_v7  ;;  %v6665_v8 = vpop.f32.mrb[46].mxu0  ;;  %v7547_v48 = vld [vmem:[#allocation2 + $0xbc] ss:$0 sps:$4 sm:$0x11]  }
 0x2b3   : > { %v6556_v2 = vpop.f32.mrb[48].mxu1  ;;  %v6666_v12 = vpop.f32.mrb[47].mxu0 }
 0x2b4   : > { %v6557_v58 = vpop.f32.mrb[49].mxu1  ;;  %v8600_v20 = vadd.f32 %v6664_v34, %v6552_v56  ;;  %v6667_v39 = vadd.f32 %v6666_v12, %v6665_v8  ;;  %7093 = vmatpush3.bf16.msra.mxu0 %v7556_v62 }
 0x2b5   : > { %v6558_v23 = vadd.f32 %v6557_v58, %v6556_v2  ;;  %v6559_v31 = vpop.f32.mrb[50].mxu1  ;;  %v3806_v58 = vrot.slane %v7544_v51, 1 }
 0x2b6   : > { %v6560_v50 = vpop.f32.mrb[51].mxu1  ;;  %v8602_v16 = vadd.f32 %v6667_v39, %v6555_v4  ;;  %v7542_v4 = vld [vmem:[#allocation2 + $0x9c] sm:$0xfe]  }
 0x2b7   : > { %v6561_v24 = vadd.f32 %v6560_v50, %v6559_v31  ;;  %v3803_v2 = vrot.slane %v7542_v4, 1  ;;  %v7551_v4 = vld [vmem:[#allocation2 + $0xd4] ss:$0 sps:$4 sm:$0x11]  }
 0x2b8   : > { %7065 = vmatmul.mubr.bf16.gmra.mrb[156].mxu1 %v3793_v25  ;;  %v6668_v35 = vpop.f32.mrb[48].mxu0 }
 0x2b9   : > { %7068 = vmatprep.mubr.bf16.mxu1 %v3796_v28  ;;  %v6669_v36 = vpop.f32.mrb[49].mxu0  ;;  %v3805_v25 = vsel %vm2168_vm6, %v3803_v2, %v3804_v54  ;;  %v3808_v28 = vsel %vm2168_vm6, %v3806_v58, %v3807_v14 }
 0x2ba   : > { %v6670_v47 = vadd.f32 %v6669_v36, %v6668_v35  ;;  %v6671_v18 = vpop.f32.mrb[50].mxu0  ;;  %v7549_v35 = vld [vmem:[#allocation2 + $0xc8] ss:$0 sps:$4 sm:$0x11]  }
 0x2bb   : > { %v6562_v27 = vpop.f32.mrb[52].mxu1  ;;  %v6672_v26 = vpop.f32.mrb[51].mxu0 }
 0x2bc   : > { %v6563_v42 = vpop.f32.mrb[53].mxu1  ;;  %v8606_v53 = vadd.f32 %v6670_v47, %v6558_v23  ;;  %v6673_v63 = vadd.f32 %v6672_v26, %v6671_v18  ;;  %v3810_v26 = vrot.slane %v7547_v48, 1 }
 0x2bd   : > { %v6564_v55 = vadd.f32 %v6563_v42, %v6562_v27  ;;  %v6565_v32 = vpop.f32.mrb[54].mxu1 }
 0x2be   : > { %v6566_v56 = vpop.f32.mrb[55].mxu1  ;;  %v8608_v44 = vadd.f32 %v6673_v63, %v6561_v24  ;;  %v3813_v63 = vrot.slane %v7549_v35, 1  ;;  %v3811_v10 = vsel %vm2168_vm6, %v3809_v41, %v3810_v26 }
 0x2bf   : > { %v6567_v59 = vadd.f32 %v6566_v56, %v6565_v32 }
 0x2c0   : > { %7069 = vmatmul.mubr.bf16.gmra.mrb[160].mxu1 %v3799_v60  ;;  %v6674_v0 = vpop.f32.mrb[52].mxu0  ;;  %v7550_v60 = vld [vmem:[#allocation2 + $0xcc] sm:$0xfe]  }
 0x2c1   : > { %7072 = vmatprep.mubr.bf16.mxu1 %v3802_v3  ;;  %v6675_v7 = vpop.f32.mrb[53].mxu0 }
 0x2c2   : > { %v6676_v33 = vadd.f32 %v6675_v7, %v6674_v0  ;;  %v6677_v34 = vpop.f32.mrb[54].mxu0  ;;  %v3814_v0 = vsel %vm2168_vm6, %v3812_v46, %v3813_v63 }
 0x2c3   : > { %v6568_v8 = vpop.f32.mrb[56].mxu1  ;;  %v6678_v6 = vpop.f32.mrb[55].mxu0 }
 0x2c4   : > { %v6569_v12 = vpop.f32.mrb[57].mxu1  ;;  %v8612_v21 = vadd.f32 %v6676_v33, %v6564_v55  ;;  %v6679_v39 = vadd.f32 %v6678_v6, %v6677_v34  ;;  %v3815_v33 = vrot.slane %v7550_v60, 1  ;;  %v3816_v34 = vrot.slane %v7551_v4, 1 }
 0x2c5   : > { %v6570_v23 = vadd.f32 %v6569_v12, %v6568_v8  ;;  %v6571_v31 = vpop.f32.mrb[58].mxu1 }
 0x2c6   : > { %v6572_v50 = vpop.f32.mrb[59].mxu1  ;;  %v8614_v49 = vadd.f32 %v6679_v39, %v6567_v59  ;;  %v3817_v62 = vsel %vm2168_vm6, %v3815_v33, %v3816_v34  ;;  %v7558_v33 = vld [vmem:[#allocation10 + $0x30] sm:$0xff]  }
 0x2c7   : > { %v6573_v24 = vadd.f32 %v6572_v50, %v6571_v31  ;;  %v7557_v50 = vld [vmem:[#allocation10 + $0x28] sm:$0xff]  }
 0x2c8   : > { %7073 = vmatmul.mubr.bf16.gmra.mrb[164].mxu1 %v3805_v25  ;;  %v6680_v36 = vpop.f32.mrb[56].mxu0  ;;  %7094 = vmatprep.subr.bf16.mxu0 %v7557_v50 }
 0x2c9   : > { %7076 = vmatprep.mubr.bf16.mxu1 %v3808_v28  ;;  %v6681_v47 = vpop.f32.mrb[57].mxu0  ;;  %7095 = vmatpush3.bf16.msra.mxu0 %v7557_v50 }
 0x2ca   : > { %v6682_v18 = vadd.f32 %v6681_v47, %v6680_v36  ;;  %v6683_v27 = vpop.f32.mrb[58].mxu0  ;;  %7096 = vmatprep.subr.bf16.mxu0 %v7558_v33 }
 0x2cb   : > { %v6574_v43 = vpop.f32.mrb[60].mxu1  ;;  %v6684_v42 = vpop.f32.mrb[59].mxu0 }
 0x2cc   : > { %v6575_v45 = vpop.f32.mrb[61].mxu1  ;;  %v8618_v55 = vadd.f32 %v6682_v18, %v6570_v23  ;;  %v6685_v32 = vadd.f32 %v6684_v42, %v6683_v27 }
 0x2cd   : > { %v6576_v56 = vadd.f32 %v6575_v45, %v6574_v43  ;;  %v6577_v59 = vpop.f32.mrb[62].mxu1  ;;  %7097 = vmatpush3.bf16.msra.mxu0 %v7558_v33 }
 0x2ce   : > { %v6578_v5 = vpop.f32.mrb[63].mxu1  ;;  %v8620_v3 = vadd.f32 %v6685_v32, %v6573_v24 }
 0x2cf   : > { %v6579_v51 = vadd.f32 %v6578_v5, %v6577_v59 }
 0x2d0   : > { %7077 = vmatmul.mubr.bf16.gmra.mrb[168].mxu1 %v3811_v10  ;;  %v6686_v7 = vpop.f32.mrb[60].mxu0 }
 0x2d1   : > { %7080 = vmatprep.mubr.bf16.mxu1 %v3814_v0  ;;  %v6687_v8 = vpop.f32.mrb[61].mxu0 }
 0x2d2   : > { %v6688_v2 = vadd.f32 %v6687_v8, %v6686_v7  ;;  %v6689_v54 = vpop.f32.mrb[62].mxu0 }
 0x2d3   : > { %v6580_v6 = vpop.f32.mrb[64].mxu1  ;;  %v6690_v12 = vpop.f32.mrb[63].mxu0 }
 0x2d4   : > { %v6581_v58 = vpop.f32.mrb[65].mxu1  ;;  %v8624_v14 = vadd.f32 %v6688_v2, %v6576_v56  ;;  %v6691_v39 = vadd.f32 %v6690_v12, %v6689_v54 }
 0x2d5   : > { %v6582_v23 = vadd.f32 %v6581_v58, %v6580_v6  ;;  %v6583_v31 = vpop.f32.mrb[66].mxu1 }
 0x2d6   : > { %v6584_v24 = vpop.f32.mrb[67].mxu1  ;;  %v8627_v25 = vadd.f32 %v6691_v39, %v6579_v51 }
 0x2d7   : > { %v6585_v30 = vadd.f32 %v6584_v24, %v6583_v31 }
 0x2d8   : > { %7081 = vmatmul.mubr.bf16.gmra.mrb[172].mxu1 %v3817_v62  ;;  %v6692_v48 = vpop.f32.mrb[64].mxu0 }
 0x2d9   : > { %v6693_v28 = vpop.f32.mrb[65].mxu0 }
 0x2da   : > { %v6694_v9 = vadd.f32 %v6693_v28, %v6692_v48  ;;  %v6695_v35 = vpop.f32.mrb[66].mxu0 }
 0x2db   : > { %v6586_v36 = vpop.f32.mrb[68].mxu1  ;;  %v6696_v47 = vpop.f32.mrb[67].mxu0 }
 0x2dc   : > { %v6587_v18 = vpop.f32.mrb[69].mxu1  ;;  %v8629_v27 = vadd.f32 %v6694_v9, %v6582_v23  ;;  %v6697_v43 = vadd.f32 %v6696_v47, %v6695_v35 }
 0x2dd   : > { %v6588_v41 = vadd.f32 %v6587_v18, %v6586_v36  ;;  %v6589_v26 = vpop.f32.mrb[70].mxu1 }
 0x2de   : > { %v6590_v42 = vpop.f32.mrb[71].mxu1  ;;  %v8631_v45 = vadd.f32 %v6697_v43, %v6585_v30 }
 0x2df   : > { %v6591_v46 = vadd.f32 %v6590_v42, %v6589_v26 }
 0x2e0   : > { %v6698_v63 = vpop.f32.mrb[68].mxu0 }
 0x2e1   : > { %v6699_v32 = vpop.f32.mrb[69].mxu0 }
 0x2e2   : > { %v6700_v56 = vadd.f32 %v6699_v32, %v6698_v63  ;;  %v6701_v59 = vpop.f32.mrb[70].mxu0 }
 0x2e3   : > { %v6592_v60 = vpop.f32.mrb[72].mxu1  ;;  %v6702_v4 = vpop.f32.mrb[71].mxu0 }
 0x2e4   : > { %v6593_v5 = vpop.f32.mrb[73].mxu1  ;;  %v8633_v51 = vadd.f32 %v6700_v56, %v6588_v41  ;;  %v6703_v10 = vadd.f32 %v6702_v4, %v6701_v59  ;;  %v7559_v56 = vld [vmem:[#allocation10 + $0x38] sm:$0xff]  }
 0x2e5   : > { %v6594_v0 = vadd.f32 %v6593_v5, %v6592_v60  ;;  %v6595_v7 = vpop.f32.mrb[74].mxu1  ;;  %7098 = vmatprep.subr.bf16.mxu0 %v7559_v56 }
 0x2e6   : > { %v6596_v34 = vpop.f32.mrb[75].mxu1  ;;  %v8635_v8 = vadd.f32 %v6703_v10, %v6591_v46  ;;  %7099 = vmatpush3.bf16.msra.mxu0 %v7559_v56 }
 0x2e7   : > { %v6597_v2 = vadd.f32 %v6596_v34, %v6595_v7 }
 0x2e8   : > { %v6704_v54 = vpop.f32.mrb[72].mxu0 }
 0x2e9   : > { %v6705_v6 = vpop.f32.mrb[73].mxu0 }
 0x2ea   : > { %v6706_v12 = vadd.f32 %v6705_v6, %v6704_v54  ;;  %v6707_v58 = vpop.f32.mrb[74].mxu0 }
 0x2eb   : > { %v6598_v39 = vpop.f32.mrb[76].mxu1  ;;  %v6708_v23 = vpop.f32.mrb[75].mxu0 }
 0x2ec   : > { %v6599_v31 = vpop.f32.mrb[77].mxu1  ;;  %v8637_v62 = vadd.f32 %v6706_v12, %v6594_v0  ;;  %v6709_v50 = vadd.f32 %v6708_v23, %v6707_v58 }
 0x2ed   : > { %v6600_v24 = vadd.f32 %v6599_v31, %v6598_v39  ;;  %v6601_v30 = vpop.f32.mrb[78].mxu1 }
 0x2ee   : > { %v6602_v48 = vpop.f32.mrb[79].mxu1  ;;  %v8639_v28 = vadd.f32 %v6709_v50, %v6597_v2 }
 0x2ef   : > { %v6603_v9 = vadd.f32 %v6602_v48, %v6601_v30 }
 0x2f0   : > { %v6710_v35 = vpop.f32.mrb[76].mxu0 }
 0x2f1   : > { %v6711_v36 = vpop.f32.mrb[77].mxu0 }
 0x2f2   : > { %v6712_v47 = vadd.f32 %v6711_v36, %v6710_v35  ;;  %v6713_v18 = vpop.f32.mrb[78].mxu0 }
 0x2f3   : > { %v6732_v43 = vpop.f32.mrb[80].mxu1  ;;  %v6714_v41 = vpop.f32.mrb[79].mxu0 }
 0x2f4   : > { %v6733_v26 = vpop.f32.mrb[81].mxu1  ;;  %v8641_v42 = vadd.f32 %v6712_v47, %v6600_v24  ;;  %v6715_v46 = vadd.f32 %v6714_v41, %v6713_v18 }
 0x2f5   : > { %v6734_v63 = vadd.f32 %v6733_v26, %v6732_v43  ;;  %v6735_v32 = vpop.f32.mrb[82].mxu1 }
 0x2f6   : > { %v6736_v59 = vpop.f32.mrb[83].mxu1  ;;  %v8643_v60 = vadd.f32 %v6715_v46, %v6603_v9 }
 0x2f7   : > { %v4927_v4 = vadd.f32 %v6734_v63, %v8550_v57  ;;  %v6737_v5 = vadd.f32 %v6736_v59, %v6735_v32 }
 0x2f8   : > { %v6844_v10 = vpop.f32.mrb[80].mxu0 }
 0x2f9   : > { %v4930_v0 = vadd.f32 %v6737_v5, %v8553_v29  ;;  %v6845_v7 = vpop.f32.mrb[81].mxu0 }
 0x2fa   : > { %v6846_v33 = vadd.f32 %v6845_v7, %v6844_v10  ;;  %v6847_v34 = vpop.f32.mrb[82].mxu0 }
 0x2fb   : > { %v6738_v2 = vpop.f32.mrb[84].mxu1  ;;  %v6848_v54 = vpop.f32.mrb[83].mxu0 }
 0x2fc   : > { %v6739_v6 = vpop.f32.mrb[85].mxu1  ;;  %v6849_v12 = vadd.f32 %v6848_v54, %v6847_v34  ;;  %v8647_v23 = vadd.f32 %v6846_v33, %v4927_v4 }
 0x2fd   : > { %v6740_v58 = vadd.f32 %v6739_v6, %v6738_v2  ;;  %v6741_v39 = vpop.f32.mrb[86].mxu1 }
 0x2fe   : > { %v6742_v31 = vpop.f32.mrb[87].mxu1  ;;  %v8650_v24 = vadd.f32 %v6849_v12, %v4930_v0 }
 0x2ff   : > { %v4935_v57 = vadd.f32 %v6740_v58, %v8560_v11  ;;  %v6743_v50 = vadd.f32 %v6742_v31, %v6741_v39 }
 0x300   : > { %v6850_v30 = vpop.f32.mrb[84].mxu0 }
 0x301   : > { %v4938_v29 = vadd.f32 %v6743_v50, %v8563_v40  ;;  %v6851_v48 = vpop.f32.mrb[85].mxu0 }
 0x302   : > { %v6852_v9 = vadd.f32 %v6851_v48, %v6850_v30  ;;  %v6853_v35 = vpop.f32.mrb[86].mxu0 }
 0x303   : > { %v6744_v36 = vpop.f32.mrb[88].mxu1  ;;  %v6854_v47 = vpop.f32.mrb[87].mxu0 }
 0x304   : > { %v6745_v18 = vpop.f32.mrb[89].mxu1  ;;  %v6855_v43 = vadd.f32 %v6854_v47, %v6853_v35  ;;  %v8653_v46 = vadd.f32 %v6852_v9, %v4935_v57 }
 0x305   : > { %v6746_v41 = vadd.f32 %v6745_v18, %v6744_v36  ;;  %v6747_v26 = vpop.f32.mrb[90].mxu1 }
 0x306   : > { %v6748_v63 = vpop.f32.mrb[91].mxu1  ;;  %v8656_v56 = vadd.f32 %v6855_v43, %v4938_v29 }
 0x307   : > { %v4943_v11 = vadd.f32 %v6746_v41, %v8568_v52  ;;  %v6749_v32 = vadd.f32 %v6748_v63, %v6747_v26 }
 0x308   : > { %v6856_v59 = vpop.f32.mrb[88].mxu0 }
 0x309   : > { %v4946_v40 = vadd.f32 %v6749_v32, %v8570_v37  ;;  %v6857_v4 = vpop.f32.mrb[89].mxu0 }
 0x30a   : > { %v6858_v5 = vadd.f32 %v6857_v4, %v6856_v59  ;;  %v6859_v10 = vpop.f32.mrb[90].mxu0 }
 0x30b   : > { %v6750_v0 = vpop.f32.mrb[92].mxu1  ;;  %v6860_v7 = vpop.f32.mrb[91].mxu0 }
 0x30c   : > { %v6751_v33 = vpop.f32.mrb[93].mxu1  ;;  %v6861_v34 = vadd.f32 %v6860_v7, %v6859_v10  ;;  %v8659_v6 = vadd.f32 %v6858_v5, %v4943_v11 }
 0x30d   : > { %v6752_v2 = vadd.f32 %v6751_v33, %v6750_v0  ;;  %v6753_v54 = vpop.f32.mrb[94].mxu1 }
 0x30e   : > { %v6754_v12 = vpop.f32.mrb[95].mxu1  ;;  %v8662_v39 = vadd.f32 %v6861_v34, %v4946_v40 }
 0x30f   : > { %v4951_v52 = vadd.f32 %v6752_v2, %v8575_v17  ;;  %v6755_v58 = vadd.f32 %v6754_v12, %v6753_v54 }
 0x310   : > { %v6862_v31 = vpop.f32.mrb[92].mxu0 }
 0x311   : > { %v4954_v37 = vadd.f32 %v6755_v58, %v8577_v19  ;;  %v6863_v57 = vpop.f32.mrb[93].mxu0 }
 0x312   : > { %v6864_v50 = vadd.f32 %v6863_v57, %v6862_v31  ;;  %v6865_v30 = vpop.f32.mrb[94].mxu0 }
 0x313   : > { %v6756_v29 = vpop.f32.mrb[96].mxu1  ;;  %v6866_v48 = vpop.f32.mrb[95].mxu0 }
 0x314   : > { %v6757_v9 = vpop.f32.mrb[97].mxu1  ;;  %v6867_v35 = vadd.f32 %v6866_v48, %v6865_v30  ;;  %v8665_v18 = vadd.f32 %v6864_v50, %v4951_v52 }
 0x315   : > { %v6758_v36 = vadd.f32 %v6757_v9, %v6756_v29  ;;  %v6759_v47 = vpop.f32.mrb[98].mxu1 }
 0x316   : > { %v6760_v43 = vpop.f32.mrb[99].mxu1  ;;  %v8668_v26 = vadd.f32 %v6867_v35, %v4954_v37 }
 0x317   : > { %v4959_v17 = vadd.f32 %v6758_v36, %v8582_v15  ;;  %v6761_v41 = vadd.f32 %v6760_v43, %v6759_v47 }
 0x318   : > { %v6868_v63 = vpop.f32.mrb[96].mxu0 }
 0x319   : > { %v4962_v19 = vadd.f32 %v6761_v41, %v8584_v61  ;;  %v6869_v11 = vpop.f32.mrb[97].mxu0 }
 0x31a   : > { %v6870_v32 = vadd.f32 %v6869_v11, %v6868_v63  ;;  %v6871_v59 = vpop.f32.mrb[98].mxu0 }
 0x31b   : > { %v6762_v40 = vpop.f32.mrb[100].mxu1  ;;  %v6872_v4 = vpop.f32.mrb[99].mxu0 }
 0x31c   : > { %v6763_v5 = vpop.f32.mrb[101].mxu1  ;;  %v6873_v10 = vadd.f32 %v6872_v4, %v6871_v59  ;;  %v8671_v33 = vadd.f32 %v6870_v32, %v4959_v17 }
 0x31d   : > { %v6764_v0 = vadd.f32 %v6763_v5, %v6762_v40  ;;  %v6765_v7 = vpop.f32.mrb[102].mxu1 }
 0x31e   : > { %v6766_v34 = vpop.f32.mrb[103].mxu1  ;;  %v8674_v54 = vadd.f32 %v6873_v10, %v4962_v19 }
 0x31f   : > { %v4967_v15 = vadd.f32 %v6764_v0, %v8588_v22  ;;  %v6767_v2 = vadd.f32 %v6766_v34, %v6765_v7 }
 0x320   : > { %v6874_v12 = vpop.f32.mrb[100].mxu0 }
 0x321   : > { %v4970_v61 = vadd.f32 %v6767_v2, %v8590_v13  ;;  %v6875_v52 = vpop.f32.mrb[101].mxu0 }
 0x322   : > { %v6876_v58 = vadd.f32 %v6875_v52, %v6874_v12  ;;  %v6877_v31 = vpop.f32.mrb[102].mxu0 }
 0x323   : > { %v6768_v37 = vpop.f32.mrb[104].mxu1  ;;  %v6878_v57 = vpop.f32.mrb[103].mxu0 }
 0x324   : > { %v6769_v50 = vpop.f32.mrb[105].mxu1  ;;  %v6879_v30 = vadd.f32 %v6878_v57, %v6877_v31  ;;  %v8677_v9 = vadd.f32 %v6876_v58, %v4967_v15 }
 0x325   : > { %v6770_v29 = vadd.f32 %v6769_v50, %v6768_v37  ;;  %v6771_v48 = vpop.f32.mrb[106].mxu1 }
 0x326   : > { %v6772_v35 = vpop.f32.mrb[107].mxu1  ;;  %v8680_v47 = vadd.f32 %v6879_v30, %v4970_v61 }
 0x327   : > { %v4975_v22 = vadd.f32 %v6770_v29, %v8594_v38  ;;  %v6773_v36 = vadd.f32 %v6772_v35, %v6771_v48 }
 0x328   : > { %v6880_v43 = vpop.f32.mrb[104].mxu0 }
 0x329   : > { %v4978_v13 = vadd.f32 %v6773_v36, %v8596_v1  ;;  %v6881_v17 = vpop.f32.mrb[105].mxu0 }
 0x32a   : > { %v6882_v41 = vadd.f32 %v6881_v17, %v6880_v43  ;;  %v6883_v63 = vpop.f32.mrb[106].mxu0 }
 0x32b   : > { %v6774_v19 = vpop.f32.mrb[108].mxu1  ;;  %v6884_v11 = vpop.f32.mrb[107].mxu0 }
 0x32c   : > { %v6775_v32 = vpop.f32.mrb[109].mxu1  ;;  %v6885_v59 = vadd.f32 %v6884_v11, %v6883_v63  ;;  %v8683_v5 = vadd.f32 %v6882_v41, %v4975_v22 }
 0x32d   : > { %v6776_v40 = vadd.f32 %v6775_v32, %v6774_v19  ;;  %v6777_v4 = vpop.f32.mrb[110].mxu1 }
 0x32e   : > { %v6778_v10 = vpop.f32.mrb[111].mxu1  ;;  %v8686_v7 = vadd.f32 %v6885_v59, %v4978_v13 }
 0x32f   : > { %v4983_v38 = vadd.f32 %v6776_v40, %v8600_v20  ;;  %v6779_v0 = vadd.f32 %v6778_v10, %v6777_v4 }
 0x330   : > { %v6886_v34 = vpop.f32.mrb[108].mxu0 }
 0x331   : > { %v4986_v1 = vadd.f32 %v6779_v0, %v8602_v16  ;;  %v6887_v15 = vpop.f32.mrb[109].mxu0 }
 0x332   : > { %v6888_v2 = vadd.f32 %v6887_v15, %v6886_v34  ;;  %v6889_v12 = vpop.f32.mrb[110].mxu0 }
 0x333   : > { %v6780_v61 = vpop.f32.mrb[112].mxu1  ;;  %v6890_v52 = vpop.f32.mrb[111].mxu0 }
 0x334   : > { %v6781_v58 = vpop.f32.mrb[113].mxu1  ;;  %v6891_v31 = vadd.f32 %v6890_v52, %v6889_v12  ;;  %v8689_v50 = vadd.f32 %v6888_v2, %v4983_v38 }
 0x335   : > { %v6782_v37 = vadd.f32 %v6781_v58, %v6780_v61  ;;  %v6783_v57 = vpop.f32.mrb[114].mxu1 }
 0x336   : > { %v6784_v30 = vpop.f32.mrb[115].mxu1  ;;  %v8692_v48 = vadd.f32 %v6891_v31, %v4986_v1 }
 0x337   : > { %v4991_v20 = vadd.f32 %v6782_v37, %v8606_v53  ;;  %v6785_v29 = vadd.f32 %v6784_v30, %v6783_v57 }
 0x338   : > { %v6892_v35 = vpop.f32.mrb[112].mxu0 }
 0x339   : > { %v4994_v16 = vadd.f32 %v6785_v29, %v8608_v44  ;;  %v6893_v22 = vpop.f32.mrb[113].mxu0 }
 0x33a   : > { %v6894_v36 = vadd.f32 %v6893_v22, %v6892_v35  ;;  %v6895_v43 = vpop.f32.mrb[114].mxu0 }
 0x33b   : > { %v6786_v13 = vpop.f32.mrb[116].mxu1  ;;  %v6896_v17 = vpop.f32.mrb[115].mxu0 }
 0x33c   : > { %v6787_v41 = vpop.f32.mrb[117].mxu1  ;;  %v6897_v63 = vadd.f32 %v6896_v17, %v6895_v43  ;;  %v8695_v32 = vadd.f32 %v6894_v36, %v4991_v20 }
 0x33d   : > { %v6788_v19 = vadd.f32 %v6787_v41, %v6786_v13  ;;  %v6789_v11 = vpop.f32.mrb[118].mxu1 }
 0x33e   : > { %v6790_v59 = vpop.f32.mrb[119].mxu1  ;;  %v8698_v4 = vadd.f32 %v6897_v63, %v4994_v16 }
 0x33f   : > { %v4999_v53 = vadd.f32 %v6788_v19, %v8612_v21  ;;  %v6791_v40 = vadd.f32 %v6790_v59, %v6789_v11 }
 0x340   : > { %v6898_v10 = vpop.f32.mrb[116].mxu0 }
 0x341   : > { %v5002_v44 = vadd.f32 %v6791_v40, %v8614_v49  ;;  %v6899_v38 = vpop.f32.mrb[117].mxu0 }
 0x342   : > { %v6900_v0 = vadd.f32 %v6899_v38, %v6898_v10  ;;  %v6901_v34 = vpop.f32.mrb[118].mxu0 }
 0x343   : > { %v6792_v1 = vpop.f32.mrb[120].mxu1  ;;  %v6902_v15 = vpop.f32.mrb[119].mxu0 }
 0x344   : > { %v6793_v2 = vpop.f32.mrb[121].mxu1  ;;  %v6903_v12 = vadd.f32 %v6902_v15, %v6901_v34  ;;  %v8701_v58 = vadd.f32 %v6900_v0, %v4999_v53 }
 0x345   : > { %v6794_v61 = vadd.f32 %v6793_v2, %v6792_v1  ;;  %v6795_v52 = vpop.f32.mrb[122].mxu1 }
 0x346   : > { %v6796_v31 = vpop.f32.mrb[123].mxu1  ;;  %v8704_v57 = vadd.f32 %v6903_v12, %v5002_v44 }
 0x347   : > { %v5007_v21 = vadd.f32 %v6794_v61, %v8618_v55  ;;  %v6797_v37 = vadd.f32 %v6796_v31, %v6795_v52 }
 0x348   : > { %v6904_v30 = vpop.f32.mrb[120].mxu0 }
 0x349   : > { %v5010_v49 = vadd.f32 %v6797_v37, %v8620_v3  ;;  %v6905_v20 = vpop.f32.mrb[121].mxu0 }
 0x34a   : > { %v6906_v29 = vadd.f32 %v6905_v20, %v6904_v30  ;;  %v6907_v35 = vpop.f32.mrb[122].mxu0 }
 0x34b   : > { %v6798_v16 = vpop.f32.mrb[124].mxu1  ;;  %v6908_v22 = vpop.f32.mrb[123].mxu0 }
 0x34c   : > { %v6799_v36 = vpop.f32.mrb[125].mxu1  ;;  %v6909_v43 = vadd.f32 %v6908_v22, %v6907_v35  ;;  %v8707_v41 = vadd.f32 %v6906_v29, %v5007_v21 }
 0x34d   : > { %v6800_v13 = vadd.f32 %v6799_v36, %v6798_v16  ;;  %v6801_v17 = vpop.f32.mrb[126].mxu1 }
 0x34e   : > { %v6802_v63 = vpop.f32.mrb[127].mxu1  ;;  %v8710_v11 = vadd.f32 %v6909_v43, %v5010_v49 }
 0x34f   : > { %v5015_v55 = vadd.f32 %v6800_v13, %v8624_v14  ;;  %v6803_v19 = vadd.f32 %v6802_v63, %v6801_v17 }
 0x350   : > { %v6910_v59 = vpop.f32.mrb[124].mxu0 }
 0x351   : > { %v5018_v3 = vadd.f32 %v6803_v19, %v8627_v25  ;;  %v6911_v53 = vpop.f32.mrb[125].mxu0 }
 0x352   : > { %v6912_v40 = vadd.f32 %v6911_v53, %v6910_v59  ;;  %v6913_v10 = vpop.f32.mrb[126].mxu0 }
 0x353   : > { %v6804_v44 = vpop.f32.mrb[128].mxu1  ;;  %v6914_v38 = vpop.f32.mrb[127].mxu0 }
 0x354   : > { %v6805_v0 = vpop.f32.mrb[129].mxu1  ;;  %v6915_v34 = vadd.f32 %v6914_v38, %v6913_v10  ;;  %v8713_v2 = vadd.f32 %v6912_v40, %v5015_v55 }
 0x355   : > { %v6806_v1 = vadd.f32 %v6805_v0, %v6804_v44  ;;  %v6807_v15 = vpop.f32.mrb[130].mxu1 }
 0x356   : > { %v6808_v12 = vpop.f32.mrb[131].mxu1  ;;  %v8716_v52 = vadd.f32 %v6915_v34, %v5018_v3 }
 0x357   : > { %v5023_v14 = vadd.f32 %v6806_v1, %v8629_v27  ;;  %v6809_v61 = vadd.f32 %v6808_v12, %v6807_v15 }
 0x358   : > { %v6916_v31 = vpop.f32.mrb[128].mxu0 }
 0x359   : > { %v5026_v25 = vadd.f32 %v6809_v61, %v8631_v45  ;;  %v6917_v21 = vpop.f32.mrb[129].mxu0 }
 0x35a   : > { %v6918_v37 = vadd.f32 %v6917_v21, %v6916_v31  ;;  %v6919_v30 = vpop.f32.mrb[130].mxu0 }
 0x35b   : > { %v6810_v49 = vpop.f32.mrb[132].mxu1  ;;  %v6920_v20 = vpop.f32.mrb[131].mxu0 }
 0x35c   : > { %v6811_v29 = vpop.f32.mrb[133].mxu1  ;;  %v6921_v35 = vadd.f32 %v6920_v20, %v6919_v30  ;;  %v8719_v36 = vadd.f32 %v6918_v37, %v5023_v14 }
 0x35d   : > { %v6812_v16 = vadd.f32 %v6811_v29, %v6810_v49  ;;  %v6813_v22 = vpop.f32.mrb[134].mxu1 }
 0x35e   : > { %v6814_v43 = vpop.f32.mrb[135].mxu1  ;;  %v8722_v17 = vadd.f32 %v6921_v35, %v5026_v25 }
 0x35f   : > { %v5031_v27 = vadd.f32 %v6812_v16, %v8633_v51  ;;  %v6815_v13 = vadd.f32 %v6814_v43, %v6813_v22 }
 0x360   : > { %v6922_v63 = vpop.f32.mrb[132].mxu0 }
 0x361   : > { %v5034_v45 = vadd.f32 %v6815_v13, %v8635_v8  ;;  %v6923_v55 = vpop.f32.mrb[133].mxu0 }
 0x362   : > { %v6924_v19 = vadd.f32 %v6923_v55, %v6922_v63  ;;  %v6925_v59 = vpop.f32.mrb[134].mxu0  ;;  %v8740_v55 = vld [vmem:[%s9045_s5] ss:$0 sm:$0xff] }
 0x363   : > { %v6816_v3 = vpop.f32.mrb[136].mxu1  ;;  %v6926_v53 = vpop.f32.mrb[135].mxu0 }
 0x364   : > { %v6817_v40 = vpop.f32.mrb[137].mxu1  ;;  %v6927_v10 = vadd.f32 %v6926_v53, %v6925_v59  ;;  %v8725_v0 = vadd.f32 %v6924_v19, %v5031_v27  ;;  %v8746_v53 = vld [vmem:[%s9046_s6] ss:$0 sm:$0xff] }
 0x365   : > { %v6818_v44 = vadd.f32 %v6817_v40, %v6816_v3  ;;  %v6819_v38 = vpop.f32.mrb[138].mxu1 }
 0x366   : > { %v6820_v34 = vpop.f32.mrb[139].mxu1  ;;  %v8728_v15 = vadd.f32 %v6927_v10, %v5034_v45 }
 0x367   : > { %v5039_v51 = vadd.f32 %v6818_v44, %v8637_v62  ;;  %v6821_v1 = vadd.f32 %v6820_v34, %v6819_v38 }
 0x368   : > { %v6928_v12 = vpop.f32.mrb[136].mxu0 }
 0x369   : > { %v5042_v8 = vadd.f32 %v6821_v1, %v8639_v28  ;;  %v6929_v14 = vpop.f32.mrb[137].mxu0 }
 0x36a   : > { %v6930_v61 = vadd.f32 %v6929_v14, %v6928_v12  ;;  %v6931_v31 = vpop.f32.mrb[138].mxu0 }
 0x36b   : > { %v6822_v25 = vpop.f32.mrb[140].mxu1  ;;  %v6932_v21 = vpop.f32.mrb[139].mxu0 }
 0x36c   : > { %v6823_v37 = vpop.f32.mrb[141].mxu1  ;;  %v6933_v30 = vadd.f32 %v6932_v21, %v6931_v31  ;;  %v8731_v29 = vadd.f32 %v6930_v61, %v5039_v51 }
 0x36d   : > { %v6824_v49 = vadd.f32 %v6823_v37, %v6822_v25  ;;  %v6825_v20 = vpop.f32.mrb[142].mxu1 }
 0x36e   : > { %v6826_v35 = vpop.f32.mrb[143].mxu1  ;;  %v8734_v22 = vadd.f32 %v6933_v30, %v5042_v8 }
 0x36f   : > { %v5047_v62 = vadd.f32 %v6824_v49, %v8641_v42  ;;  %v6827_v16 = vadd.f32 %v6826_v35, %v6825_v20 }
 0x370   : > { %v6934_v43 = vpop.f32.mrb[140].mxu0 }
 0x371   : > { %v5050_v28 = vadd.f32 %v6827_v16, %v8643_v60  ;;  %v6935_v27 = vpop.f32.mrb[141].mxu0 }
 0x372   : > { %v6936_v13 = vadd.f32 %v6935_v27, %v6934_v43  ;;  %v6937_v63 = vpop.f32.mrb[142].mxu0 }
 0x373   : > { %v7054_v45 = vpop.f32.mrb[144].mxu1  ;;  %v6938_v19 = vpop.f32.mrb[143].mxu0 }
 0x374   : > { %v5257_v59 = vadd.f32 %v7054_v45, %v8653_v46  ;;  %v5248_v3 = vpop.f32.mrb[145].mxu1  ;;  %v6939_v42 = vadd.f32 %v6938_v19, %v6937_v63  ;;  %v8749_v10 = vadd.f32 %v6936_v13, %v5047_v62 }
 0x375   : > { %v5249_v60 = vadd.f32 %v5248_v3, %v8647_v23  ;;  %v7055_v40 = vpop.f32.mrb[146].mxu1 }
 0x376   : > { %v5384_v44 = vmul.f32 %v8740_v55, %v5257_v59  ;;  %v5260_v38 = vadd.f32 %v7055_v40, %v8656_v56  ;;  %v5251_v34 = vpop.f32.mrb[147].mxu1  ;;  %v8755_v1 = vadd.f32 %v6939_v42, %v5050_v28 }
 0x377   : > { %v5382_v51 = vmul.f32 %v8740_v55, %v5249_v60  ;;  %v5252_v46 = vadd.f32 %v5251_v34, %v8650_v24 }
 0x378   : > { %v5423_v12 = vadd.f32 %v8746_v53, %v5384_v44  ;;  %v5385_v8 = vmul.f32 %v8740_v55, %v5260_v38 }
 0x379   : > { %v5421_v23 = vadd.f32 %v8746_v53, %v5382_v51  ;;  %v5383_v14 = vmul.f32 %v8740_v55, %v5252_v46 }
 0x37a   : > { %v5424_v61 = vadd.f32 %v8746_v53, %v5385_v8  ;;  %v5455_v25 = vmax.f32 %v5423_v12, 0.0 }
 0x37b   : > { %v5422_v31 = vadd.f32 %v8746_v53, %v5383_v14  ;;  %v7058_v56 = vpop.f32.mrb[148].mxu1  ;;  %v5453_v30 = vmax.f32 %v5421_v23, 0.0 }
 0x37c   : > { %v5456_v21 = vmax.f32 %v5424_v61, 0.0  ;;  %v5273_v37 = vadd.f32 %v7058_v56, %v8665_v18  ;;  %v5264_v24 = vpop.f32.mrb[149].mxu1 }
 0x37d   : > { %v5454_v49 = vmax.f32 %v5422_v31, 0.0  ;;  %v5265_v20 = vadd.f32 %v5264_v24, %v8659_v6  ;;  %v7059_v35 = vpop.f32.mrb[150].mxu1 }
 0x37e   : > { %v5486_v62 = vpack.c.bf16 %v5456_v21, %v5455_v25  ;;  %v5388_v16 = vmul.f32 %v8740_v55, %v5273_v37  ;;  %v5276_v43 = vadd.f32 %v7059_v35, %v8668_v26  ;;  %v5267_v28 = vpop.f32.mrb[151].mxu1 }
 0x37f   : > { %v5386_v27 = vmul.f32 %v8740_v55, %v5265_v20  ;;  %v5268_v13 = vadd.f32 %v5267_v28, %v8662_v39  ;;  %v5485_v63 = vpack.c.bf16 %v5454_v49, %v5453_v30 }
 0x380   : > { %v5427_v45 = vadd.f32 %v8746_v53, %v5388_v16  ;;  %v5389_v18 = vmul.f32 %v8740_v55, %v5276_v43 }
 0x381   : > { %v5425_v19 = vadd.f32 %v8746_v53, %v5386_v27  ;;  %v5387_v6 = vmul.f32 %v8740_v55, %v5268_v13  ;;  %7100 = vmatprep.mubr.bf16.mxu0 %v5485_v63 }
 0x382   : > { %v5428_v59 = vadd.f32 %v8746_v53, %v5389_v18  ;;  %7101 = vmatmul.mubr.bf16.vlgmr.msra.gmra.mrb[144].mxu0 %v5486_v62  ;;  %v5459_v42 = vmax.f32 %v5427_v45, 0.0 }
 0x383   : > { %v5426_v26 = vadd.f32 %v8746_v53, %v5387_v6  ;;  %v7062_v3 = vpop.f32.mrb[152].mxu1  ;;  %v5457_v44 = vmax.f32 %v5425_v19, 0.0 }
 0x384   : > { %v5460_v60 = vmax.f32 %v5428_v59, 0.0  ;;  %v5289_v39 = vadd.f32 %v7062_v3, %v8677_v9  ;;  %v5280_v40 = vpop.f32.mrb[153].mxu1 }
 0x385   : > { %v5458_v38 = vmax.f32 %v5426_v26, 0.0  ;;  %v5281_v34 = vadd.f32 %v5280_v40, %v8671_v33  ;;  %v7063_v51 = vpop.f32.mrb[154].mxu1 }
 0x386   : > { %v5392_v46 = vmul.f32 %v8740_v55, %v5289_v39  ;;  %v5292_v12 = vadd.f32 %v7063_v51, %v8680_v47  ;;  %v5283_v8 = vpop.f32.mrb[155].mxu1  ;;  %v5488_v23 = vpack.c.bf16 %v5460_v60, %v5459_v42 }
 0x387   : > { %v5390_v14 = vmul.f32 %v8740_v55, %v5281_v34  ;;  %v5284_v61 = vadd.f32 %v5283_v8, %v8674_v54  ;;  %v5487_v31 = vpack.c.bf16 %v5458_v38, %v5457_v44 }
 0x388   : > { %v5431_v56 = vadd.f32 %v8746_v53, %v5392_v46  ;;  %v5393_v9 = vmul.f32 %v8740_v55, %v5292_v12 }
 0x389   : > { %v5429_v25 = vadd.f32 %v8746_v53, %v5390_v14  ;;  %v5391_v33 = vmul.f32 %v8740_v55, %v5284_v61  ;;  %7104 = vmatprep.mubr.bf16.mxu0 %v5487_v31 }
 0x38a   : > { %v5432_v21 = vadd.f32 %v8746_v53, %v5393_v9  ;;  %7105 = vmatmul.mubr.bf16.gmra.mrb[148].mxu0 %v5488_v23  ;;  %v5463_v24 = vmax.f32 %v5431_v56, 0.0 }
 0x38b   : > { %v5430_v47 = vadd.f32 %v8746_v53, %v5391_v33  ;;  %v7066_v37 = vpop.f32.mrb[156].mxu1  ;;  %v5461_v20 = vmax.f32 %v5429_v25, 0.0 }
 0x38c   : > { %v5464_v30 = vmax.f32 %v5432_v21, 0.0  ;;  %v5305_v54 = vadd.f32 %v7066_v37, %v8689_v50  ;;  %v5296_v49 = vpop.f32.mrb[157].mxu1 }
 0x38d   : > { %v5462_v35 = vmax.f32 %v5430_v47, 0.0  ;;  %v5297_v62 = vadd.f32 %v5296_v49, %v8683_v5  ;;  %v7067_v16 = vpop.f32.mrb[158].mxu1 }
 0x38e   : > { %v5396_v43 = vmul.f32 %v8740_v55, %v5305_v54  ;;  %v5308_v28 = vadd.f32 %v7067_v16, %v8692_v48  ;;  %v5299_v27 = vpop.f32.mrb[159].mxu1  ;;  %v5490_v13 = vpack.c.bf16 %v5464_v30, %v5463_v24 }
 0x38f   : > { %v5394_v63 = vmul.f32 %v8740_v55, %v5297_v62  ;;  %v5300_v45 = vadd.f32 %v5299_v27, %v8686_v7  ;;  %v5489_v18 = vpack.c.bf16 %v5462_v35, %v5461_v20 }
 0x390   : > { %v5435_v19 = vadd.f32 %v8746_v53, %v5396_v43  ;;  %v5397_v50 = vmul.f32 %v8740_v55, %v5308_v28 }
 0x391   : > { %v5433_v6 = vadd.f32 %v8746_v53, %v5394_v63  ;;  %v5395_v5 = vmul.f32 %v8740_v55, %v5300_v45  ;;  %7108 = vmatprep.mubr.bf16.mxu0 %v5489_v18 }
 0x392   : > { %v5436_v59 = vadd.f32 %v8746_v53, %v5397_v50  ;;  %7109 = vmatmul.mubr.bf16.gmra.mrb[152].mxu0 %v5490_v13  ;;  %v5467_v3 = vmax.f32 %v5435_v19, 0.0 }
 0x393   : > { %v5434_v48 = vadd.f32 %v8746_v53, %v5395_v5  ;;  %v7070_v26 = vpop.f32.mrb[160].mxu1  ;;  %v5465_v39 = vmax.f32 %v5433_v6, 0.0 }
 0x394   : > { %v5468_v42 = vmax.f32 %v5436_v59, 0.0  ;;  %v5321_v7 = vadd.f32 %v7070_v26, %v8701_v58  ;;  %v5312_v60 = vpop.f32.mrb[161].mxu1 }
 0x395   : > { %v5466_v40 = vmax.f32 %v5434_v48, 0.0  ;;  %v5313_v44 = vadd.f32 %v5312_v60, %v8695_v32  ;;  %v7071_v38 = vpop.f32.mrb[162].mxu1 }
 0x396   : > { %v5400_v34 = vmul.f32 %v8740_v55, %v5321_v7  ;;  %v5324_v51 = vadd.f32 %v7071_v38, %v8704_v57  ;;  %v5315_v46 = vpop.f32.mrb[163].mxu1  ;;  %v5492_v12 = vpack.c.bf16 %v5468_v42, %v5467_v3 }
 0x397   : > { %v5398_v8 = vmul.f32 %v8740_v55, %v5313_v44  ;;  %v5316_v23 = vadd.f32 %v5315_v46, %v8698_v4  ;;  %v5491_v14 = vpack.c.bf16 %v5466_v40, %v5465_v39 }
 0x398   : > { %v5439_v61 = vadd.f32 %v8746_v53, %v5400_v34  ;;  %v5401_v58 = vmul.f32 %v8740_v55, %v5324_v51 }
 0x399   : > { %v5437_v31 = vadd.f32 %v8746_v53, %v5398_v8  ;;  %v5399_v32 = vmul.f32 %v8740_v55, %v5316_v23  ;;  %7112 = vmatprep.mubr.bf16.mxu0 %v5491_v14 }
 0x39a   : > { %v5440_v56 = vadd.f32 %v8746_v53, %v5401_v58  ;;  %7113 = vmatmul.mubr.bf16.gmra.mrb[156].mxu0 %v5492_v12  ;;  %v5471_v25 = vmax.f32 %v5439_v61, 0.0 }
 0x39b   : > { %v5438_v57 = vadd.f32 %v8746_v53, %v5399_v32  ;;  %v7074_v9 = vpop.f32.mrb[164].mxu1  ;;  %v5469_v47 = vmax.f32 %v5437_v31, 0.0 }
 0x39c   : > { %v5472_v33 = vmax.f32 %v5440_v56, 0.0  ;;  %v5337_v4 = vadd.f32 %v7074_v9, %v8713_v2  ;;  %v5328_v21 = vpop.f32.mrb[165].mxu1 }
 0x39d   : > { %v5470_v37 = vmax.f32 %v5438_v57, 0.0  ;;  %v5329_v24 = vadd.f32 %v5328_v21, %v8707_v41  ;;  %v7075_v30 = vpop.f32.mrb[166].mxu1 }
 0x39e   : > { %v5404_v54 = vmul.f32 %v8740_v55, %v5337_v4  ;;  %v5340_v49 = vadd.f32 %v7075_v30, %v8716_v52  ;;  %v5331_v20 = vpop.f32.mrb[167].mxu1  ;;  %v5494_v35 = vpack.c.bf16 %v5472_v33, %v5471_v25 }
 0x39f   : > { %v5402_v62 = vmul.f32 %v8740_v55, %v5329_v24  ;;  %v5332_v16 = vadd.f32 %v5331_v20, %v8710_v11  ;;  %v5493_v43 = vpack.c.bf16 %v5470_v37, %v5469_v47 }
 0x3a0   : > { %v5443_v28 = vadd.f32 %v8746_v53, %v5404_v54  ;;  %v5405_v2 = vmul.f32 %v8740_v55, %v5340_v49 }
 0x3a1   : > { %v5441_v27 = vadd.f32 %v8746_v53, %v5402_v62  ;;  %v5403_v41 = vmul.f32 %v8740_v55, %v5332_v16  ;;  %7116 = vmatprep.mubr.bf16.mxu0 %v5493_v43  ;;  %v5806_v62 = vld [vmem:[%s8027_s12 + $0x10] sm:$0xff] }
 0x3a2   : > { %v5444_v13 = vadd.f32 %v8746_v53, %v5405_v2  ;;  %7117 = vmatmul.mubr.bf16.gmra.mrb[160].mxu0 %v5494_v35  ;;  %v5475_v45 = vmax.f32 %v5443_v28, 0.0  ;;  %v5804_v2 = vld [vmem:[%s8027_s12] sm:$0xff] }
 0x3a3   : > { %v5442_v52 = vadd.f32 %v8746_v53, %v5403_v41  ;;  %v7078_v63 = vpop.f32.mrb[168].mxu1  ;;  %v5473_v50 = vmax.f32 %v5441_v27, 0.0 }
 0x3a4   : > { %v5476_v18 = vmax.f32 %v5444_v13, 0.0  ;;  %v5353_v11 = vadd.f32 %v7078_v63, %v8725_v0  ;;  %v5344_v19 = vpop.f32.mrb[169].mxu1 }
 0x3a5   : > { %v5474_v6 = vmax.f32 %v5442_v52, 0.0  ;;  %v5345_v5 = vadd.f32 %v5344_v19, %v8719_v36  ;;  %v7079_v59 = vpop.f32.mrb[170].mxu1  ;;  %v5807_v52 = vld [vmem:[%s8027_s12 + $0x18] sm:$0xff] }
 0x3a6   : > { %v5408_v48 = vmul.f32 %v8740_v55, %v5353_v11  ;;  %v5356_v26 = vadd.f32 %v7079_v59, %v8728_v15  ;;  %v5347_v3 = vpop.f32.mrb[171].mxu1  ;;  %v5496_v42 = vpack.c.bf16 %v5476_v18, %v5475_v45  ;;  %v5805_v11 = vld [vmem:[%s8027_s12 + $0x8] sm:$0xff] }
 0x3a7   : > { %v5406_v7 = vmul.f32 %v8740_v55, %v5345_v5  ;;  %v5348_v60 = vadd.f32 %v5347_v3, %v8722_v17  ;;  %v5495_v39 = vpack.c.bf16 %v5474_v6, %v5473_v50 }
 0x3a8   : > { %v5447_v40 = vadd.f32 %v8746_v53, %v5408_v48  ;;  %v5409_v0 = vmul.f32 %v8740_v55, %v5356_v26 }
 0x3a9   : > { %v5445_v44 = vadd.f32 %v8746_v53, %v5406_v7  ;;  %v5407_v36 = vmul.f32 %v8740_v55, %v5348_v60  ;;  %7120 = vmatprep.mubr.bf16.mxu0 %v5495_v39  ;;  %v5810_v39 = vld [vmem:[%s8027_s12 + $0x30] sm:$0xff] }
 0x3aa   : > { %v5448_v38 = vadd.f32 %v8746_v53, %v5409_v0  ;;  %7121 = vmatmul.mubr.bf16.gmra.mrb[164].mxu0 %v5496_v42  ;;  %v5479_v51 = vmax.f32 %v5447_v40, 0.0 }
 0x3ab   : > { %v5446_v15 = vadd.f32 %v8746_v53, %v5407_v36  ;;  %v7082_v34 = vpop.f32.mrb[172].mxu1  ;;  %v5477_v8 = vmax.f32 %v5445_v44, 0.0  ;;  %v5808_v36 = vld [vmem:[%s8027_s12 + $0x20] sm:$0xff] }
 0x3ac   : > { %v5480_v46 = vmax.f32 %v5448_v38, 0.0  ;;  %v5369_v17 = vadd.f32 %v7082_v34, %v8749_v10  ;;  %v5360_v12 = vpop.f32.mrb[173].mxu1 }
 0x3ad   : > { %v5478_v23 = vmax.f32 %v5446_v15, 0.0  ;;  %v5361_v14 = vadd.f32 %v5360_v12, %v8731_v29  ;;  %v7083_v61 = vpop.f32.mrb[174].mxu1 }
 0x3ae   : > { %v5412_v58 = vmul.f32 %v8740_v55, %v5369_v17  ;;  %v5372_v31 = vadd.f32 %v7083_v61, %v8755_v1  ;;  %v5363_v32 = vpop.f32.mrb[175].mxu1  ;;  %v5498_v56 = vpack.c.bf16 %v5480_v46, %v5479_v51  ;;  %v5811_v51 = vld [vmem:[%s8027_s12 + $0x38] sm:$0xff] }
 0x3af   : > { %v5410_v57 = vmul.f32 %v8740_v55, %v5361_v14  ;;  %v5364_v9 = vadd.f32 %v5363_v32, %v8734_v22  ;;  %v5497_v25 = vpack.c.bf16 %v5478_v23, %v5477_v8  ;;  %v5809_v8 = vld [vmem:[%s8027_s12 + $0x28] sm:$0xff] }
 0x3b0   : > { %v5451_v33 = vadd.f32 %v8746_v53, %v5412_v58  ;;  %v5413_v10 = vmul.f32 %v8740_v55, %v5372_v31 }
 0x3b1   : > { %v5449_v4 = vadd.f32 %v8746_v53, %v5410_v57  ;;  %v5411_v29 = vmul.f32 %v8740_v55, %v5364_v9  ;;  %7124 = vmatprep.mubr.bf16.mxu0 %v5497_v25  ;;  %v8850_v55 = vld [vmem:[%s9048_s8] ss:$0 sm:$0xff] }
 0x3b2   : > { %v5452_v21 = vadd.f32 %v8746_v53, %v5413_v10  ;;  %7125 = vmatmul.mubr.bf16.gmra.mrb[168].mxu0 %v5498_v56  ;;  %v5483_v47 = vmax.f32 %v5451_v33, 0.0  ;;  %v5814_v10 = vld [vmem:[%s8027_s12 + $0x50] sm:$0xff] }
 0x3b3   : > { %v5450_v1 = vadd.f32 %v8746_v53, %v5411_v29  ;;  %v5481_v22 = vmax.f32 %v5449_v4, 0.0  ;;  %v8855_v53 = vld [vmem:[%s9083_s23] ss:$0 sm:$0xff] }
 0x3b4   : > { %v5484_v37 = vmax.f32 %v5452_v21, 0.0 }
 0x3b5   : > { %v5482_v24 = vmax.f32 %v5450_v1, 0.0  ;;  %v5812_v1 = vld [vmem:[%s8027_s12 + $0x40] sm:$0xff] }
 0x3b6   : > { %v5500_v30 = vpack.c.bf16 %v5484_v37, %v5483_v47 }
 0x3b7   : > { %v5499_v54 = vpack.c.bf16 %v5482_v24, %v5481_v22  ;;  %v5815_v24 = vld [vmem:[%s8027_s12 + $0x58] sm:$0xff] }
 0x3b9   : > { %7128 = vmatprep.mubr.bf16.mxu0 %v5499_v54 }
 0x3ba   : > { %7129 = vmatmul.mubr.bf16.gmra.mrb[172].mxu0 %v5500_v30 }
 0x455   : > { %v7102_v49 = vpop.f32.mrb[144].mxu0 }
 0x456   : > { %v5735_v20 = vmul.f32 %v7102_v49, %v8850_v55  ;;  %v5599_v35 = vpop.f32.mrb[145].mxu0 }
 0x457   : > { %v5733_v16 = vmul.f32 %v8850_v55, %v5599_v35  ;;  %v7103_v43 = vpop.f32.mrb[146].mxu0 }
 0x458   : > { %v5774_v28 = vadd.f32 %v8855_v53, %v5735_v20  ;;  %v5736_v27 = vmul.f32 %v7103_v43, %v8850_v55  ;;  %v5602_v41 = vpop.f32.mrb[147].mxu0  ;;  %v5813_v20 = vld [vmem:[%s8027_s12 + $0x48] sm:$0xff] }
 0x459   : > { %v5772_v13 = vadd.f32 %v8855_v53, %v5733_v16  ;;  %v5734_v63 = vmul.f32 %v8850_v55, %v5602_v41 }
 0x45a   : > { %v5838_v45 = vadd.f32 %v5806_v62, %v5774_v28  ;;  %v5775_v18 = vadd.f32 %v8855_v53, %v5736_v27 }
 0x45b   : > { %v5836_v19 = vadd.f32 %v5804_v2, %v5772_v13  ;;  %v5773_v50 = vadd.f32 %v8855_v53, %v5734_v63 }
 0x45c   : > { %v5870_v6 = vmax.f32 %v5838_v45, 0.0  ;;  %v5839_v5 = vadd.f32 %v5807_v52, %v5775_v18  ;;  %v5818_v45 = vld [vmem:[%s8027_s12 + $0x70] sm:$0xff] }
 0x45d   : > { %v5868_v59 = vmax.f32 %v5836_v19, 0.0  ;;  %v5837_v48 = vadd.f32 %v5805_v11, %v5773_v50  ;;  %v7106_v26 = vpop.f32.mrb[148].mxu0  ;;  %v5816_v50 = vld [vmem:[%s8027_s12 + $0x60] sm:$0xff] }
 0x45e   : > { %5902 = vst [vmem:[%s8871_s26 + $0x10] sm:$0xff] %v5870_v6  ;;  %v5871_v3 = vmax.f32 %v5839_v5, 0.0  ;;  %v5739_v42 = vmul.f32 %v7106_v26, %v8850_v55  ;;  %v5615_v7 = vpop.f32.mrb[149].mxu0 }
 0x45f   : > { %5900 = vst [vmem:[%s8871_s26] sm:$0xff] %v5868_v59  ;;  %v5869_v60 = vmax.f32 %v5837_v48, 0.0  ;;  %v5737_v40 = vmul.f32 %v8850_v55, %v5615_v7  ;;  %v7107_v0 = vpop.f32.mrb[150].mxu0  ;;  %v5819_v48 = vld [vmem:[%s8027_s12 + $0x78] sm:$0xff]  ;;  %v5817_v7 = vld [vmem:[%s8027_s12 + $0x68] sm:$0xff] }
 0x460   : > { %5903 = vst [vmem:[%s8871_s26 + $0x18] sm:$0xff] %v5871_v3  ;;  %v5778_v44 = vadd.f32 %v8855_v53, %v5739_v42  ;;  %v5740_v38 = vmul.f32 %v7107_v0, %v8850_v55  ;;  %v5618_v15 = vpop.f32.mrb[151].mxu0 }
 0x461   : > { %5901 = vst [vmem:[%s8871_s26 + $0x8] sm:$0xff] %v5869_v60  ;;  %v5776_v34 = vadd.f32 %v8855_v53, %v5737_v40  ;;  %v5738_v46 = vmul.f32 %v8850_v55, %v5618_v15 }
 0x462   : > { %v5842_v17 = vadd.f32 %v5810_v39, %v5778_v44  ;;  %v5779_v12 = vadd.f32 %v8855_v53, %v5740_v38 }
 0x463   : > { %v5840_v23 = vadd.f32 %v5808_v36, %v5776_v34  ;;  %v5777_v14 = vadd.f32 %v8855_v53, %v5738_v46 }
 0x464   : > { %v5874_v61 = vmax.f32 %v5842_v17, 0.0  ;;  %v5843_v58 = vadd.f32 %v5811_v51, %v5779_v12  ;;  %v5822_v17 = vld [vmem:[%s8027_s12 + $0x90] sm:$0xff] }
 0x465   : > { %v5872_v31 = vmax.f32 %v5840_v23, 0.0  ;;  %v5841_v32 = vadd.f32 %v5809_v8, %v5777_v14  ;;  %v7110_v56 = vpop.f32.mrb[152].mxu0  ;;  %v5820_v14 = vld [vmem:[%s8027_s12 + $0x80] sm:$0xff] }
 0x466   : > { %5906 = vst [vmem:[%s8871_s26 + $0x30] sm:$0xff] %v5874_v61  ;;  %v5875_v57 = vmax.f32 %v5843_v58, 0.0  ;;  %v5743_v9 = vmul.f32 %v7110_v56, %v8850_v55  ;;  %v5631_v25 = vpop.f32.mrb[153].mxu0 }
 0x467   : > { %5904 = vst [vmem:[%s8871_s26 + $0x20] sm:$0xff] %v5872_v31  ;;  %v5873_v33 = vmax.f32 %v5841_v32, 0.0  ;;  %v5741_v4 = vmul.f32 %v8850_v55, %v5631_v25  ;;  %v7111_v29 = vpop.f32.mrb[154].mxu0  ;;  %v5823_v32 = vld [vmem:[%s8027_s12 + $0x98] sm:$0xff]  ;;  %v5821_v25 = vld [vmem:[%s8027_s12 + $0x88] sm:$0xff] }
 0x468   : > { %5907 = vst [vmem:[%s8871_s26 + $0x38] sm:$0xff] %v5875_v57  ;;  %v5782_v21 = vadd.f32 %v8855_v53, %v5743_v9  ;;  %v5744_v47 = vmul.f32 %v7111_v29, %v8850_v55  ;;  %v5634_v37 = vpop.f32.mrb[155].mxu0 }
 0x469   : > { %5905 = vst [vmem:[%s8871_s26 + $0x28] sm:$0xff] %v5873_v33  ;;  %v5780_v22 = vadd.f32 %v8855_v53, %v5741_v4  ;;  %v5742_v30 = vmul.f32 %v8850_v55, %v5634_v37 }
 0x46a   : > { %v5846_v54 = vadd.f32 %v5814_v10, %v5782_v21  ;;  %v5783_v49 = vadd.f32 %v8855_v53, %v5744_v47 }
 0x46b   : > { %v5844_v35 = vadd.f32 %v5812_v1, %v5780_v22  ;;  %v5781_v62 = vadd.f32 %v8855_v53, %v5742_v30 }
 0x46c   : > { %v5878_v16 = vmax.f32 %v5846_v54, 0.0  ;;  %v5847_v43 = vadd.f32 %v5815_v24, %v5783_v49  ;;  %v5826_v54 = vld [vmem:[%s8027_s12 + $0xb0] sm:$0xff] }
 0x46d   : > { %v5876_v28 = vmax.f32 %v5844_v35, 0.0  ;;  %v5845_v2 = vadd.f32 %v5813_v20, %v5781_v62  ;;  %v7114_v27 = vpop.f32.mrb[156].mxu0  ;;  %v5824_v62 = vld [vmem:[%s8027_s12 + $0xa0] sm:$0xff] }
 0x46e   : > { %5910 = vst [vmem:[%s8871_s26 + $0x50] sm:$0xff] %v5878_v16  ;;  %v5879_v41 = vmax.f32 %v5847_v43, 0.0  ;;  %v5747_v13 = vmul.f32 %v7114_v27, %v8850_v55  ;;  %v5647_v52 = vpop.f32.mrb[157].mxu0 }
 0x46f   : > { %5908 = vst [vmem:[%s8871_s26 + $0x40] sm:$0xff] %v5876_v28  ;;  %v5877_v63 = vmax.f32 %v5845_v2, 0.0  ;;  %v5745_v18 = vmul.f32 %v8850_v55, %v5647_v52  ;;  %v7115_v11 = vpop.f32.mrb[158].mxu0  ;;  %v5827_v2 = vld [vmem:[%s8027_s12 + $0xb8] sm:$0xff]  ;;  %v5825_v52 = vld [vmem:[%s8027_s12 + $0xa8] sm:$0xff] }
 0x470   : > { %5911 = vst [vmem:[%s8871_s26 + $0x58] sm:$0xff] %v5879_v41  ;;  %v5786_v19 = vadd.f32 %v8855_v53, %v5747_v13  ;;  %v5748_v6 = vmul.f32 %v7115_v11, %v8850_v55  ;;  %v5650_v5 = vpop.f32.mrb[159].mxu0 }
 0x471   : > { %5909 = vst [vmem:[%s8871_s26 + $0x48] sm:$0xff] %v5877_v63  ;;  %v5784_v59 = vadd.f32 %v8855_v53, %v5745_v18  ;;  %v5746_v26 = vmul.f32 %v8850_v55, %v5650_v5 }
 0x472   : > { %v5850_v3 = vadd.f32 %v5818_v45, %v5786_v19  ;;  %v5787_v42 = vadd.f32 %v8855_v53, %v5748_v6 }
 0x473   : > { %v5848_v60 = vadd.f32 %v5816_v50, %v5784_v59  ;;  %v5785_v39 = vadd.f32 %v8855_v53, %v5746_v26 }
 0x474   : > { %v5882_v40 = vmax.f32 %v5850_v3, 0.0  ;;  %v5851_v0 = vadd.f32 %v5819_v48, %v5787_v42  ;;  %v5830_v3 = vld [vmem:[%s8027_s12 + $0xd0] sm:$0xff] }
 0x475   : > { %v5880_v44 = vmax.f32 %v5848_v60, 0.0  ;;  %v5849_v36 = vadd.f32 %v5817_v7, %v5785_v39  ;;  %v7118_v38 = vpop.f32.mrb[160].mxu0  ;;  %v5828_v39 = vld [vmem:[%s8027_s12 + $0xc0] sm:$0xff] }
 0x476   : > { %5914 = vst [vmem:[%s8871_s26 + $0x70] sm:$0xff] %v5882_v40  ;;  %v5883_v15 = vmax.f32 %v5851_v0, 0.0  ;;  %v5751_v34 = vmul.f32 %v7118_v38, %v8850_v55  ;;  %v5663_v51 = vpop.f32.mrb[161].mxu0 }
 0x477   : > { %5912 = vst [vmem:[%s8871_s26 + $0x60] sm:$0xff] %v5880_v44  ;;  %v5881_v46 = vmax.f32 %v5849_v36, 0.0  ;;  %v5749_v12 = vmul.f32 %v8850_v55, %v5663_v51  ;;  %v7119_v8 = vpop.f32.mrb[162].mxu0  ;;  %v5831_v36 = vld [vmem:[%s8027_s12 + $0xd8] sm:$0xff]  ;;  %v5829_v51 = vld [vmem:[%s8027_s12 + $0xc8] sm:$0xff] }
 0x478   : > { %5915 = vst [vmem:[%s8871_s26 + $0x78] sm:$0xff] %v5883_v15  ;;  %v5790_v23 = vadd.f32 %v8855_v53, %v5751_v34  ;;  %v5752_v61 = vmul.f32 %v7119_v8, %v8850_v55  ;;  %v5666_v58 = vpop.f32.mrb[163].mxu0 }
 0x479   : > { %5913 = vst [vmem:[%s8871_s26 + $0x68] sm:$0xff] %v5881_v46  ;;  %v5788_v31 = vadd.f32 %v8855_v53, %v5749_v12  ;;  %v5750_v56 = vmul.f32 %v8850_v55, %v5666_v58 }
 0x47a   : > { %v5854_v57 = vadd.f32 %v5822_v17, %v5790_v23  ;;  %v5791_v9 = vadd.f32 %v8855_v53, %v5752_v61 }
 0x47b   : > { %v5852_v33 = vadd.f32 %v5820_v14, %v5788_v31  ;;  %v5789_v10 = vadd.f32 %v8855_v53, %v5750_v56 }
 0x47c   : > { %v5886_v4 = vmax.f32 %v5854_v57, 0.0  ;;  %v5855_v29 = vadd.f32 %v5823_v32, %v5791_v9  ;;  %v5834_v57 = vld [vmem:[%s8027_s12 + $0xf0] sm:$0xff] }
 0x47d   : > { %v5884_v21 = vmax.f32 %v5852_v33, 0.0  ;;  %v5853_v1 = vadd.f32 %v5821_v25, %v5789_v10  ;;  %v7122_v47 = vpop.f32.mrb[164].mxu0  ;;  %v5832_v10 = vld [vmem:[%s8027_s12 + $0xe0] sm:$0xff] }
 0x47e   : > { %5918 = vst [vmem:[%s8871_s26 + $0x90] sm:$0xff] %v5886_v4  ;;  %v5887_v37 = vmax.f32 %v5855_v29, 0.0  ;;  %v5755_v22 = vmul.f32 %v7122_v47, %v8850_v55  ;;  %v5679_v24 = vpop.f32.mrb[165].mxu0 }
 0x47f   : > { %5916 = vst [vmem:[%s8871_s26 + $0x80] sm:$0xff] %v5884_v21  ;;  %v5885_v30 = vmax.f32 %v5853_v1, 0.0  ;;  %v5753_v49 = vmul.f32 %v8850_v55, %v5679_v24  ;;  %v7123_v20 = vpop.f32.mrb[166].mxu0  ;;  %v5835_v1 = vld [vmem:[%s8027_s12 + $0xf8] sm:$0xff]  ;;  %v5833_v24 = vld [vmem:[%s8027_s12 + $0xe8] sm:$0xff]  ;;  %s7676_s12 = scalar_lea.vmem %s8993_s11, 4096 }
 0x480   : > { %5919 = vst [vmem:[%s8871_s26 + $0x98] sm:$0xff] %v5887_v37  ;;  %v5794_v35 = vadd.f32 %v8855_v53, %v5755_v22  ;;  %v5756_v16 = vmul.f32 %v7123_v20, %v8850_v55  ;;  %v5682_v43 = vpop.f32.mrb[167].mxu0  ;;  %p7677_p10 = scmp.ne.s32.totalorder %s8993_s11, %s7676_s12  ;;  %p7684_p1 = scmp.lt.s32.totalorder %s7682_s21, %s7676_s12 }
 0x481   : > { %5917 = vst [vmem:[%s8871_s26 + $0x88] sm:$0xff] %v5885_v30  ;;  %v5792_v28 = vadd.f32 %v8855_v53, %v5753_v49  ;;  %v5754_v27 = vmul.f32 %v8850_v55, %v5682_v43 }
 0x482   : > { %v5858_v41 = vadd.f32 %v5826_v54, %v5794_v35  ;;  %v5795_v13 = vadd.f32 %v8855_v53, %v5756_v16  ;;  %p7678_p3 = pnand %p7677_p10, %p7973_p5  ;;  %p7685_p2 = por %p7684_p1, %p7683_p12 }
 0x483   : > { %v5856_v63 = vadd.f32 %v5824_v62, %v5792_v28  ;;  %v5793_v45 = vadd.f32 %v8855_v53, %v5754_v27 }
 0x484   : > { %v5890_v18 = vmax.f32 %v5858_v41, 0.0  ;;  %v5859_v11 = vadd.f32 %v5827_v2, %v5795_v13  ;;  %p7679_p7 = pneg %p7678_p3 }
 0x485   : > { %v5888_v19 = vmax.f32 %v5856_v63, 0.0  ;;  %v5857_v50 = vadd.f32 %v5825_v52, %v5793_v45  ;;  %v7126_v6 = vpop.f32.mrb[168].mxu0 }
 0x486   : > { %5922 = vst [vmem:[%s8871_s26 + $0xb0] sm:$0xff] %v5890_v18  ;;  %v5891_v5 = vmax.f32 %v5859_v11, 0.0  ;;  %v5759_v59 = vmul.f32 %v7126_v6, %v8850_v55  ;;  %v5695_v48 = vpop.f32.mrb[169].mxu0  ;;  %p7686_p4 = pnand %p7685_p2, %p7679_p7 }
 0x487   : > { %5920 = vst [vmem:[%s8871_s26 + $0xa0] sm:$0xff] %v5888_v19  ;;  %v5889_v26 = vmax.f32 %v5857_v50, 0.0  ;;  %v5757_v42 = vmul.f32 %v8850_v55, %v5695_v48  ;;  %v7127_v7 = vpop.f32.mrb[170].mxu0 }
 0x488   : > { %5923 = vst [vmem:[%s8871_s26 + $0xb8] sm:$0xff] %v5891_v5  ;;  %v5798_v60 = vadd.f32 %v8855_v53, %v5759_v59  ;;  %v5760_v40 = vmul.f32 %v7127_v7, %v8850_v55  ;;  %v5698_v0 = vpop.f32.mrb[171].mxu0 }
 0x489   : > { %5921 = vst [vmem:[%s8871_s26 + $0xa8] sm:$0xff] %v5889_v26  ;;  %v5796_v44 = vadd.f32 %v8855_v53, %v5757_v42  ;;  %v5758_v38 = vmul.f32 %v8850_v55, %v5698_v0 }
 0x48a   : > { %v5862_v15 = vadd.f32 %v5830_v3, %v5798_v60  ;;  %v5799_v34 = vadd.f32 %v8855_v53, %v5760_v40 }
 0x48b   : > { %v5860_v46 = vadd.f32 %v5828_v39, %v5796_v44  ;;  %v5797_v17 = vadd.f32 %v8855_v53, %v5758_v38 }
 0x48c   : > { %v5894_v12 = vmax.f32 %v5862_v15, 0.0  ;;  %v5863_v8 = vadd.f32 %v5831_v36, %v5799_v34 }
 0x48d   : > { %v5892_v23 = vmax.f32 %v5860_v46, 0.0  ;;  %v5861_v14 = vadd.f32 %v5829_v51, %v5797_v17  ;;  %v7130_v61 = vpop.f32.mrb[172].mxu0 }
 0x48e   : > { %5926 = vst [vmem:[%s8871_s26 + $0xd0] sm:$0xff] %v5894_v12  ;;  %v5895_v58 = vmax.f32 %v5863_v8, 0.0  ;;  %v5763_v31 = vmul.f32 %v7130_v61, %v8850_v55  ;;  %v5711_v32 = vpop.f32.mrb[173].mxu0 }
 0x48f   : > { %5924 = vst [vmem:[%s8871_s26 + $0xc0] sm:$0xff] %v5892_v23  ;;  %v5893_v56 = vmax.f32 %v5861_v14, 0.0  ;;  %v5761_v9 = vmul.f32 %v8850_v55, %v5711_v32  ;;  %v7131_v25 = vpop.f32.mrb[174].mxu0 }
 0x490   : > { %5927 = vst [vmem:[%s8871_s26 + $0xd8] sm:$0xff] %v5895_v58  ;;  %v5802_v33 = vadd.f32 %v8855_v53, %v5763_v31  ;;  %v5764_v4 = vmul.f32 %v7131_v25, %v8850_v55  ;;  %v5714_v29 = vpop.f32.mrb[175].mxu0 }
 0x491   : > { %5925 = vst [vmem:[%s8871_s26 + $0xc8] sm:$0xff] %v5893_v56  ;;  %v5800_v21 = vadd.f32 %v8855_v53, %v5761_v9  ;;  %v5762_v47 = vmul.f32 %v8850_v55, %v5714_v29 }
 0x492   : > { %v5866_v37 = vadd.f32 %v5834_v57, %v5802_v33  ;;  %v5803_v22 = vadd.f32 %v8855_v53, %v5764_v4 }
 0x493   : > { %v5864_v30 = vadd.f32 %v5832_v10, %v5800_v21  ;;  %v5801_v54 = vadd.f32 %v8855_v53, %v5762_v47 }
 0x494   : > { %v5898_v49 = vmax.f32 %v5866_v37, 0.0  ;;  %v5867_v20 = vadd.f32 %v5835_v1, %v5803_v22 }
 0x495   : > { %v5896_v35 = vmax.f32 %v5864_v30, 0.0  ;;  %v5865_v62 = vadd.f32 %v5833_v24, %v5801_v54 }
 0x496   : > { %5930 = vst [vmem:[%s8871_s26 + $0xf0] sm:$0xff] %v5898_v49  ;;  %v5899_v55 = vmax.f32 %v5867_v20, 0.0 }
 0x497   : > { %5928 = vst [vmem:[%s8871_s26 + $0xe0] sm:$0xff] %v5896_v35  ;;  %v5897_v53 = vmax.f32 %v5865_v62, 0.0 }
 0x498   : > { %5931 = vst [vmem:[%s8871_s26 + $0xf8] sm:$0xff] %v5899_v55 }
 0x499   : > { %5929 = vst [vmem:[%s8871_s26 + $0xe8] sm:$0xff] %v5897_v53 }
 0x49a   : > { %7689 = shalt.err (!%p7686_p4)
}
 0x49b   : > { %s7690_s25 = scalar_lea.hbm %s8991_s10, 4096  ;;  %s7694_s26 = scalar_lea.hbm %s9084_s9, 8192 }
 0x49c   : > { %p7691_p9 = scmp.ne.s32.totalorder %s8991_s10, %s7690_s25  ;;  %p7695_p8 = scmp.lt.u32.totalorder %s8991_s10, %s9084_s9 }
 0x49d   : > { %p7696_p13 = scmp.lt.u32.totalorder %s7694_s26, %s7690_s25  ;;  %p7698_p10 = scmp.lt.u32.totalorder %s7690_s25, %s8991_s10 }
 0x49e   : > { %p7692_p0 = pnand %p7691_p9, %p7973_p5 }
 0x49f   : > { %p7697_p6 = por %p7696_p13, %p7695_p8 }
 0x4a0   : > { %p7693_p11 = pneg %p7692_p0 }
 0x4a1   : > { %p7699_p3 = por %p7698_p10, %p7697_p6 }
 0x4a3   : > { %p7700_p7 = pnand %p7699_p3, %p7693_p11 }
 0x4a5   : > { %7703 = shalt.err (!%p7700_p7)
}
 0x4a6   : > { %s7762_s24 = smov 128   ;;  %s7763_s12 = smov 8  }
 0x4a7   : > { %7162 = dma.vmem_to_hbm [thread:$0]  (%p7973_p5), %s8993_s11, 4096, %s8991_s10, %s5933_s17, %s7762_s24, %s7762_s24, %s7763_s12  }
 0x4a8 PF: > { %s9085_s30 = sld [smem:[#allocation17_spill]]  ;;  %s9086_s19 = sld [smem:[#allocation18_spill]] }
 0x4a9   : > { %p9088_p1 = scmp.ge.s32.totalorder %s7750_s16, 2 }
 0x4ae   : > { %s5961_s21 = sand.u32 1, %s9085_s30   ;;  %p9087_p12 = scmp.ne.s32.totalorder %s9086_s19, 0 }
 0x4af   : > { %s5962_s25 = scalar_lea.sflag [#allocation6], %s5961_s21 }
 0x4b0   : > { %p7179_p2 = pnand %p9088_p1, %p9087_p12 }
 0x4b2   : > { %7733 = dma.done.wait (!%p7179_p2), %s5962_s25, 4096  }
 0x4b3   : > { %7735 = vsyncadd (!%p7179_p2), %s5962_s25, 4294963200  ;;  %s9089_s29 = smov %s7969_s13  ;;  %p25_p4 = scmp.ge.s32.totalorder %s7959_s22, 4  }
 0x4b4   : > { %s9090_s13 = smov %s7742_s14  ;;  %s9091_s14 = smov %s7746_s15 }
 0x4b5   : > { %s9092_s15 = smov %s9089_s29  ;;  %s9093_s16 = smov %s7959_s22 }
 0x4b6   :  { %27 = sbr.rel (!%p25_p4) target bundleno = 10 (0xa), region = 120 }
 0x4bd   :  { %5967 = vsyncpa [#allocation5], 1 }
 0x4be   :  { %5969 = vsyncpa [#allocation5 + $0x1], 1 }
 0x4bf   :  { %5970 = vsyncpa [#allocation8], 1 }
 0x4c0   :  { %5971 = vsyncpa [#allocation11], 1 }
 0x4c1   :  { %5972 = vsyncpa [#allocation6], 1 }
 0x4c2   :  { %5974 = vsyncpa [#allocation6 + $0x1], 1 }

</bundles_post_ra>
